<compile_context>
chip_gen: v5e
topology: v5e:2x2
jax: 0.10.0
libtpu: 0.0.40
codegen_flags: <defaults>
</compile_context>

<pallas_src>
import math

import jax
import jax.numpy as jnp
from jax import lax
from jax.experimental import pallas as pl
from jax.experimental.pallas import tpu as pltpu

# ----------------------------- config ---------------------------------------
D = 32          # d_model
H = 4           # nhead
DH = D // H     # head dim
FF = 64         # dim_feedforward
T = 8           # number of target queries
S = 16          # memory sequence length
B = 2           # batch (folded into sublanes)
NUM_LAYERS = 2
LN_EPS = 1e-5
NEG_INF = -1e30


# ----------------------------- kernel helpers -------------------------------
def _batch_id(iota):
    """Batch index of a folded row/col (row = pos * B + batch)."""
    if B & (B - 1) == 0:                      # power-of-two fast path (B=2 here)
        return jnp.bitwise_and(iota, B - 1)
    return iota % B


def _layer_norm(x, w, b):
    mu = jnp.mean(x, axis=-1, keepdims=True)
    var = jnp.mean((x - mu) ** 2, axis=-1, keepdims=True)
    return (x - mu) * lax.rsqrt(var + LN_EPS) * w + b


def _attention(q, k, v, wo, bias):
    """Multi-head attention on batch-folded rows.

    q: (Rq, D) f32, k/v: (Rk, D) f32, wo: (D, D) bf16,
    bias: (Rq, Rk) f32 additive mask (0 = attend, -1e30 = blocked).

    Heads are unrolled (H small & static); softmax runs in f32; matmul inputs
    are cast to bf16 for the MXU.  Per-head contexts are concatenated and a
    single (R, D) @ (D, D) matmul does the output projection.
    """
    scale = 1.0 / math.sqrt(DH)
    q16 = (q * scale).astype(jnp.bfloat16)
    k16 = k.astype(jnp.bfloat16)
    v16 = v.astype(jnp.bfloat16)
    # NOTE: the H per-head score / p@v matmuls could be batched through one
    # lax.dot_general with H as a batch dim; only worth it if the bundle dump
    # shows the MXU push count drops (relayout costs XLU work).  Kept unrolled.
    ctxs = []
    for h in range(H):
        sl = slice(h * DH, (h + 1) * DH)
        # scores = qh @ kh^T  (contract last dims, no explicit transpose)
        s = lax.dot_general(q16[:, sl], k16[:, sl], (((1,), (1,)), ((), ())),
                            preferred_element_type=jnp.float32)
        s = s + bias                              # additive mask, no vselect
        s = s - jnp.max(s, axis=-1, keepdims=True)
        p = jnp.exp(s)
        p = p * pl.reciprocal(jnp.sum(p, axis=-1, keepdims=True), approx=False)
        ctxs.append(jnp.dot(p.astype(jnp.bfloat16), v16[:, sl],
                            preferred_element_type=jnp.float32))   # (Rq, DH)
    ctx = jnp.concatenate(ctxs, axis=-1)          # (Rq, D) f32
    return jnp.dot(ctx.astype(jnp.bfloat16), wo,
                   preferred_element_type=jnp.float32)


# ----------------------------- the fused kernel ------------------------------
def decoder_kernel(
    x_ref, mem_ref, qpos_ref, pos_ref,
    sa_wqk, sa_bqk, sa_wv, sa_bv, sa_wo, sa_bo, ln1_w, ln1_b,
    ca_wq, ca_bq, ca_wk, ca_bk, ca_wv, ca_bv, ca_wo, ca_bo, ln2_w, ln2_b,
    ff_w1, ff_b1, ff_w2, ff_b2, ln3_w, ln3_b,
    fn_w, fn_b,
    out_ref,
):
    x = x_ref[0]        # (T*B, D)   row = t*B + b
    qpos = qpos_ref[0]  # (T*B, D)
    pos = pos_ref[0]    # (S*B, D)

    # Additive block-diagonal "same batch" biases, built once, reused by every
    # head of every layer.
    ri = lax.broadcasted_iota(jnp.int32, (T * B, T * B), 0)
    ci = lax.broadcasted_iota(jnp.int32, (T * B, T * B), 1)
    self_bias = jnp.where(_batch_id(ri) == _batch_id(ci), 0.0, NEG_INF)
    rj = lax.broadcasted_iota(jnp.int32, (T * B, S * B), 0)
    cj = lax.broadcasted_iota(jnp.int32, (T * B, S * B), 1)
    cross_bias = jnp.where(_batch_id(rj) == _batch_id(cj), 0.0, NEG_INF)

    for l in range(NUM_LAYERS):                  # static unroll (NUM_LAYERS = 2)
        mem = mem_ref[0, l]                      # (S*B, D)

        # ---- self attention: q = k = x + query_pos, v = x (post-norm) ----
        qk_in = (x + qpos).astype(jnp.bfloat16)
        qk = jnp.dot(qk_in, sa_wqk[l], preferred_element_type=jnp.float32) + sa_bqk[l]
        v = jnp.dot(x.astype(jnp.bfloat16), sa_wv[l],
                    preferred_element_type=jnp.float32) + sa_bv[l]
        sa = _attention(qk[:, :D], qk[:, D:], v, sa_wo[l], self_bias) + sa_bo[l]
        x = _layer_norm(x + sa, ln1_w[l], ln1_b[l])

        # ---- cross attention: q = x + query_pos, k = mem + pos, v = mem ----
        q = jnp.dot((x + qpos).astype(jnp.bfloat16), ca_wq[l],
                    preferred_element_type=jnp.float32) + ca_bq[l]
        k = jnp.dot((mem + pos).astype(jnp.bfloat16), ca_wk[l],
                    preferred_element_type=jnp.float32) + ca_bk[l]
        v = jnp.dot(mem.astype(jnp.bfloat16), ca_wv[l],
                    preferred_element_type=jnp.float32) + ca_bv[l]
        ca = _attention(q, k, v, ca_wo[l], cross_bias) + ca_bo[l]
        x = _layer_norm(x + ca, ln2_w[l], ln2_b[l])

        # ---- FFN: linear1 -> relu -> linear2 ----
        h1 = jnp.maximum(
            jnp.dot(x.astype(jnp.bfloat16), ff_w1[l],
                    preferred_element_type=jnp.float32) + ff_b1[l], 0.0)
        ff = jnp.dot(h1.astype(jnp.bfloat16), ff_w2[l],
                     preferred_element_type=jnp.float32) + ff_b2[l]
        x = _layer_norm(x + ff, ln3_w[l], ln3_b[l])

    # final decoder LayerNorm (TransformerDecoder.norm)
    x = _layer_norm(x, fn_w[...], fn_b[...])
    out_ref[0] = x.astype(out_ref.dtype)


# ----------------------------- specs ------------------------------------------
def _inst_spec(inner_shape):
    """Per-instance block: leading grid axis selects the instance."""
    nd = len(inner_shape)
    return pl.BlockSpec((1,) + tuple(inner_shape),
                        lambda n, _nd=nd: (n,) + (0,) * _nd)


def _const_spec(shape):
    """Grid-invariant block: weights are DMA'd once and stay resident in VMEM."""
    nd = len(shape)
    return pl.BlockSpec(tuple(shape), lambda n, _nd=nd: (0,) * _nd)


def _cost_estimate(n_inst):
    R, RK = T * B, S * B
    per_layer = (
        2 * R * D * (2 * D) + 2 * R * D * D                       # self qk + v proj
        + H * (2 * R * DH * R + 2 * R * R * DH) + 2 * R * D * D   # self attn + out proj
        + 2 * R * D * D + 2 * 2 * RK * D * D                      # cross q, k, v proj
        + H * (2 * R * DH * RK + 2 * R * RK * DH) + 2 * R * D * D
        + 2 * R * D * FF + 2 * R * FF * D                         # FFN
    )
    transcendentals = NUM_LAYERS * H * (R * R + R * RK)           # exp on scores
    return pl.CostEstimate(flops=n_inst * NUM_LAYERS * per_layer,
                           transcendentals=n_inst * transcendentals,
                           bytes_accessed=0)


# ----------------------------- wrapper ---------------------------------------
@jax.jit
def transformer_decoder(tgt, memory, pos, query_pos, params):
    """Instance-batched TransformerDecoder forward (norm != None,
    return_intermediate=False).  Each instance matches the reference module.

    tgt:       (N, T, B, D)
    memory:    (N, NUM_LAYERS, S, B, D)   -- memory[:, i] consumed by layer i
    pos:       (N, S, B, D)
    query_pos: (N, T, B, D)
    returns:   (N, 1, T, B, D)            -- per-instance output.unsqueeze(0)
    """
    n = tgt.shape[0]
    # Free (bitcast) reshapes: fold batch into the sublane dim, no transposes.
    x2d = tgt.reshape(n, T * B, D)
    qp2d = query_pos.reshape(n, T * B, D)
    p2d = pos.reshape(n, S * B, D)
    mem2d = memory.reshape(n, NUM_LAYERS, S * B, D)

    inputs = [x2d, mem2d, qp2d, p2d] + list(params)

    in_specs = [
        _inst_spec((T * B, D)),                 # tgt          (per instance)
        _inst_spec((NUM_LAYERS, S * B, D)),     # memory       (per instance)
        _inst_spec((T * B, D)),                 # query_pos    (per instance)
        _inst_spec((S * B, D)),                 # pos          (per instance)
    ] + [_const_spec(p.shape) for p in params]  # weights: VMEM-resident, DMA'd once

    bytes_accessed = (sum(int(a.size) * a.dtype.itemsize for a in inputs)
                      + n * T * B * D * 4)
    ce = _cost_estimate(n)
    cost = pl.CostEstimate(flops=ce.flops, transcendentals=ce.transcendentals,
                           bytes_accessed=bytes_accessed)

    out2d = pl.pallas_call(
        decoder_kernel,
        grid=(n,),
        in_specs=in_specs,
        out_specs=_inst_spec((T * B, D)),
        out_shape=jax.ShapeDtypeStruct((n, T * B, D), jnp.float32),
        cost_estimate=cost,
        compiler_params=pltpu.CompilerParams(
            # instance axis is independent -> shard across v7x's two TensorCores
            dimension_semantics=("parallel",),
            vmem_limit_bytes=32 * 1024 * 1024),
    )(*inputs)

    return out2d.reshape(n, T, B, D)[:, None]    # (N, 1, T, B, D)


# ----------------------------- param init ------------------------------------
def init_params(key):
    """Per-layer weights stacked along a leading NUM_LAYERS axis, plus final norm.

    Matmul weights are bf16 (MXU-native, half the DMA/VMEM); biases and
    LayerNorm params stay f32 (added / applied on the f32 VPU path).
    """
    L = NUM_LAYERS
    ks = jax.random.split(key, 18)

    def w(k, shape, scale=0.1):                 # bf16 matmul weight
        return (jax.random.normal(k, shape, jnp.float32) * scale).astype(jnp.bfloat16)

    def b(k, shape, scale=0.1):                 # f32 bias
        return jax.random.normal(k, shape, jnp.float32) * scale

    ones = jnp.ones((L, 1, D), jnp.float32)
    zeros = jnp.zeros((L, 1, D), jnp.float32)
    return [
        # self-attn: fused Q|K proj (input tgt+query_pos), V proj (input tgt), out proj
        w(ks[0], (L, D, 2 * D)), b(ks[1], (L, 1, 2 * D)),
        w(ks[2], (L, D, D)), b(ks[3], (L, 1, D)),
        w(ks[4], (L, D, D)), b(ks[5], (L, 1, D)),
        ones, zeros,                                    # norm1
        # cross-attn: Q, K, V, out proj
        w(ks[6], (L, D, D)), b(ks[7], (L, 1, D)),
        w(ks[8], (L, D, D)), b(ks[9], (L, 1, D)),
        w(ks[10], (L, D, D)), b(ks[11], (L, 1, D)),
        w(ks[12], (L, D, D)), b(ks[13], (L, 1, D)),
        ones, zeros,                                    # norm2
        # FFN
        w(ks[14], (L, D, FF)), b(ks[15], (L, 1, FF)),
        w(ks[16], (L, FF, D)), b(ks[17], (L, 1, D)),
        ones, zeros,                                    # norm3
        # final decoder norm
        jnp.ones((1, D), jnp.float32), jnp.zeros((1, D), jnp.float32),
    ]


# ----------------------------- main ------------------------------------------
if __name__ == "__main__":
    root = jax.random.PRNGKey(0)
    k_tgt, k_mem, k_pos, k_qpos, k_params = jax.random.split(root, 5)

    N_INST = 4     # independent decoder instances amortizing one pallas_call
    tgt = jax.random.normal(k_tgt, (N_INST, T, B, D), jnp.float32)
    memory = jax.random.normal(k_mem, (N_INST, NUM_LAYERS, S, B, D), jnp.float32)
    pos = jax.random.normal(k_pos, (N_INST, S, B, D), jnp.float32)
    query_pos = jax.random.normal(k_qpos, (N_INST, T, B, D), jnp.float32)

    params = init_params(k_params)

    out = transformer_decoder(tgt, memory, pos, query_pos, params)
    out = jax.block_until_ready(out)

    assert out.shape == (N_INST, 1, T, B, D), out.shape
    assert bool(jnp.all(jnp.isfinite(out)))
    print("KERNEL_OK")
</pallas_src>

<mosaic_0001>
module attributes {stable_mosaic.version = 11 : i64} {
  func.func @decoder_kernel(%arg0: i32, %arg1: memref<1x16x32xf32, #tpu.memory_space<vmem>>, %arg2: memref<1x2x32x32xf32, #tpu.memory_space<vmem>>, %arg3: memref<1x16x32xf32, #tpu.memory_space<vmem>>, %arg4: memref<1x32x32xf32, #tpu.memory_space<vmem>>, %arg5: memref<2x32x64xbf16, #tpu.memory_space<vmem>>, %arg6: memref<2x1x64xf32, #tpu.memory_space<vmem>>, %arg7: memref<2x32x32xbf16, #tpu.memory_space<vmem>>, %arg8: memref<2x1x32xf32, #tpu.memory_space<vmem>>, %arg9: memref<2x32x32xbf16, #tpu.memory_space<vmem>>, %arg10: memref<2x1x32xf32, #tpu.memory_space<vmem>>, %arg11: memref<2x1x32xf32, #tpu.memory_space<vmem>>, %arg12: memref<2x1x32xf32, #tpu.memory_space<vmem>>, %arg13: memref<2x32x32xbf16, #tpu.memory_space<vmem>>, %arg14: memref<2x1x32xf32, #tpu.memory_space<vmem>>, %arg15: memref<2x32x32xbf16, #tpu.memory_space<vmem>>, %arg16: memref<2x1x32xf32, #tpu.memory_space<vmem>>, %arg17: memref<2x32x32xbf16, #tpu.memory_space<vmem>>, %arg18: memref<2x1x32xf32, #tpu.memory_space<vmem>>, %arg19: memref<2x32x32xbf16, #tpu.memory_space<vmem>>, %arg20: memref<2x1x32xf32, #tpu.memory_space<vmem>>, %arg21: memref<2x1x32xf32, #tpu.memory_space<vmem>>, %arg22: memref<2x1x32xf32, #tpu.memory_space<vmem>>, %arg23: memref<2x32x64xbf16, #tpu.memory_space<vmem>>, %arg24: memref<2x1x64xf32, #tpu.memory_space<vmem>>, %arg25: memref<2x64x32xbf16, #tpu.memory_space<vmem>>, %arg26: memref<2x1x32xf32, #tpu.memory_space<vmem>>, %arg27: memref<2x1x32xf32, #tpu.memory_space<vmem>>, %arg28: memref<2x1x32xf32, #tpu.memory_space<vmem>>, %arg29: memref<1x32xf32, #tpu.memory_space<vmem>>, %arg30: memref<1x32xf32, #tpu.memory_space<vmem>>, %arg31: memref<1x16x32xf32, #tpu.memory_space<vmem>>) attributes {dimension_semantics = [#tpu.dimension_semantics<parallel>], iteration_bounds = array<i64: 4>, scalar_prefetch = 0 : i64, scratch_operands = 0 : i64, tpu.core_type = #tpu.core_type<tc>, window_params = [{transform_indices = @transform_0, window_bounds = array<i64: 1, 16, 32>}, {transform_indices = @transform_1, window_bounds = array<i64: 1, 2, 32, 32>}, {transform_indices = @transform_2, window_bounds = array<i64: 1, 16, 32>}, {transform_indices = @transform_3, window_bounds = array<i64: 1, 32, 32>}, {pipeline_mode = #tpu.pipeline_mode<synchronous>, transform_indices = @transform_4, window_bounds = array<i64: 2, 32, 64>}, {pipeline_mode = #tpu.pipeline_mode<synchronous>, transform_indices = @transform_5, window_bounds = array<i64: 2, 1, 64>}, {pipeline_mode = #tpu.pipeline_mode<synchronous>, transform_indices = @transform_6, window_bounds = array<i64: 2, 32, 32>}, {pipeline_mode = #tpu.pipeline_mode<synchronous>, transform_indices = @transform_7, window_bounds = array<i64: 2, 1, 32>}, {pipeline_mode = #tpu.pipeline_mode<synchronous>, transform_indices = @transform_8, window_bounds = array<i64: 2, 32, 32>}, {pipeline_mode = #tpu.pipeline_mode<synchronous>, transform_indices = @transform_9, window_bounds = array<i64: 2, 1, 32>}, {pipeline_mode = #tpu.pipeline_mode<synchronous>, transform_indices = @transform_10, window_bounds = array<i64: 2, 1, 32>}, {pipeline_mode = #tpu.pipeline_mode<synchronous>, transform_indices = @transform_11, window_bounds = array<i64: 2, 1, 32>}, {pipeline_mode = #tpu.pipeline_mode<synchronous>, transform_indices = @transform_12, window_bounds = array<i64: 2, 32, 32>}, {pipeline_mode = #tpu.pipeline_mode<synchronous>, transform_indices = @transform_13, window_bounds = array<i64: 2, 1, 32>}, {pipeline_mode = #tpu.pipeline_mode<synchronous>, transform_indices = @transform_14, window_bounds = array<i64: 2, 32, 32>}, {pipeline_mode = #tpu.pipeline_mode<synchronous>, transform_indices = @transform_15, window_bounds = array<i64: 2, 1, 32>}, {pipeline_mode = #tpu.pipeline_mode<synchronous>, transform_indices = @transform_16, window_bounds = array<i64: 2, 32, 32>}, {pipeline_mode = #tpu.pipeline_mode<synchronous>, transform_indices = @transform_17, window_bounds = array<i64: 2, 1, 32>}, {pipeline_mode = #tpu.pipeline_mode<synchronous>, transform_indices = @transform_18, window_bounds = array<i64: 2, 32, 32>}, {pipeline_mode = #tpu.pipeline_mode<synchronous>, transform_indices = @transform_19, window_bounds = array<i64: 2, 1, 32>}, {pipeline_mode = #tpu.pipeline_mode<synchronous>, transform_indices = @transform_20, window_bounds = array<i64: 2, 1, 32>}, {pipeline_mode = #tpu.pipeline_mode<synchronous>, transform_indices = @transform_21, window_bounds = array<i64: 2, 1, 32>}, {pipeline_mode = #tpu.pipeline_mode<synchronous>, transform_indices = @transform_22, window_bounds = array<i64: 2, 32, 64>}, {pipeline_mode = #tpu.pipeline_mode<synchronous>, transform_indices = @transform_23, window_bounds = array<i64: 2, 1, 64>}, {pipeline_mode = #tpu.pipeline_mode<synchronous>, transform_indices = @transform_24, window_bounds = array<i64: 2, 64, 32>}, {pipeline_mode = #tpu.pipeline_mode<synchronous>, transform_indices = @transform_25, window_bounds = array<i64: 2, 1, 32>}, {pipeline_mode = #tpu.pipeline_mode<synchronous>, transform_indices = @transform_26, window_bounds = array<i64: 2, 1, 32>}, {pipeline_mode = #tpu.pipeline_mode<synchronous>, transform_indices = @transform_27, window_bounds = array<i64: 2, 1, 32>}, {pipeline_mode = #tpu.pipeline_mode<synchronous>, transform_indices = @transform_28, window_bounds = array<i64: 1, 32>}, {pipeline_mode = #tpu.pipeline_mode<synchronous>, transform_indices = @transform_29, window_bounds = array<i64: 1, 32>}, {transform_indices = @transform_30, window_bounds = array<i64: 1, 16, 32>}]} {
    %c0 = arith.constant 0 : index
    %c0_0 = arith.constant 0 : index
    %c0_1 = arith.constant 0 : index
    %0 = vector.load %arg1[%c0, %c0_0, %c0_1] : memref<1x16x32xf32, #tpu.memory_space<vmem>>, vector<1x16x32xf32>
    %1 = vector.shape_cast %0 : vector<1x16x32xf32> to vector<16x32xf32>
    %c0_2 = arith.constant 0 : index
    %c0_3 = arith.constant 0 : index
    %c0_4 = arith.constant 0 : index
    %2 = vector.load %arg3[%c0_2, %c0_3, %c0_4] : memref<1x16x32xf32, #tpu.memory_space<vmem>>, vector<1x16x32xf32>
    %3 = vector.shape_cast %2 : vector<1x16x32xf32> to vector<16x32xf32>
    %c0_5 = arith.constant 0 : index
    %c0_6 = arith.constant 0 : index
    %c0_7 = arith.constant 0 : index
    %4 = vector.load %arg4[%c0_5, %c0_6, %c0_7] : memref<1x32x32xf32, #tpu.memory_space<vmem>>, vector<1x32x32xf32>
    %5 = vector.shape_cast %4 : vector<1x32x32xf32> to vector<32x32xf32>
    %6 = tpu.iota {dimensions = array<i32: 0>} : vector<16x16xi32>
    %7 = tpu.iota {dimensions = array<i32: 1>} : vector<16x16xi32>
    %c1_i32 = arith.constant 1 : i32
    %8 = vector.broadcast %c1_i32 : i32 to vector<16x16xi32>
    %9 = arith.andi %6, %8 : vector<16x16xi32>
    %c1_i32_8 = arith.constant 1 : i32
    %10 = vector.broadcast %c1_i32_8 : i32 to vector<16x16xi32>
    %11 = arith.andi %7, %10 : vector<16x16xi32>
    %12 = arith.cmpi eq, %9, %11 : vector<16x16xi32>
    %cst = arith.constant 0.000000e+00 : f32
    %cst_9 = arith.constant -1.000000e+30 : f32
    %13 = vector.broadcast %cst : f32 to vector<16x16xf32>
    %14 = vector.broadcast %cst_9 : f32 to vector<16x16xf32>
    %15 = arith.select %12, %13, %14 : vector<16x16xi1>, vector<16x16xf32>
    %16 = tpu.iota {dimensions = array<i32: 0>} : vector<16x32xi32>
    %17 = tpu.iota {dimensions = array<i32: 1>} : vector<16x32xi32>
    %c1_i32_10 = arith.constant 1 : i32
    %18 = vector.broadcast %c1_i32_10 : i32 to vector<16x32xi32>
    %19 = arith.andi %16, %18 : vector<16x32xi32>
    %c1_i32_11 = arith.constant 1 : i32
    %20 = vector.broadcast %c1_i32_11 : i32 to vector<16x32xi32>
    %21 = arith.andi %17, %20 : vector<16x32xi32>
    %22 = arith.cmpi eq, %19, %21 : vector<16x32xi32>
    %cst_12 = arith.constant 0.000000e+00 : f32
    %cst_13 = arith.constant -1.000000e+30 : f32
    %23 = vector.broadcast %cst_12 : f32 to vector<16x32xf32>
    %24 = vector.broadcast %cst_13 : f32 to vector<16x32xf32>
    %25 = arith.select %22, %23, %24 : vector<16x32xi1>, vector<16x32xf32>
    %c0_14 = arith.constant 0 : index
    %c0_15 = arith.constant 0 : index
    %c0_16 = arith.constant 0 : index
    %c0_17 = arith.constant 0 : index
    %26 = vector.load %arg2[%c0_14, %c0_15, %c0_16, %c0_17] : memref<1x2x32x32xf32, #tpu.memory_space<vmem>>, vector<1x1x32x32xf32>
    %27 = vector.shape_cast %26 : vector<1x1x32x32xf32> to vector<32x32xf32>
    %28 = arith.addf %1, %3 : vector<16x32xf32>
    %29 = arith.truncf %28 : vector<16x32xf32> to vector<16x32xbf16>
    %c0_18 = arith.constant 0 : index
    %c0_19 = arith.constant 0 : index
    %c0_20 = arith.constant 0 : index
    %30 = vector.load %arg5[%c0_18, %c0_19, %c0_20] : memref<2x32x64xbf16, #tpu.memory_space<vmem>>, vector<1x32x64xbf16>
    %31 = vector.shape_cast %30 : vector<1x32x64xbf16> to vector<32x64xbf16>
    %cst_21 = arith.constant dense<0.000000e+00> : vector<16x64xf32>
    %32 = tpu.matmul %29, %31, %cst_21 {dimension_numbers = #tpu.dot_dimension_numbers<[1], [0], [0], [1], [0, 0, 1, 1], [], []>} : vector<16x32xbf16>, vector<32x64xbf16>, vector<16x64xf32> -> vector<16x64xf32>
    %c0_22 = arith.constant 0 : index
    %c0_23 = arith.constant 0 : index
    %c0_24 = arith.constant 0 : index
    %33 = vector.load %arg6[%c0_22, %c0_23, %c0_24] : memref<2x1x64xf32, #tpu.memory_space<vmem>>, vector<1x1x64xf32>
    %34 = vector.shape_cast %33 : vector<1x1x64xf32> to vector<1x64xf32>
    %35 = vector.broadcast %34 : vector<1x64xf32> to vector<16x64xf32>
    %36 = arith.addf %32, %35 : vector<16x64xf32>
    %37 = arith.truncf %1 : vector<16x32xf32> to vector<16x32xbf16>
    %c0_25 = arith.constant 0 : index
    %c0_26 = arith.constant 0 : index
    %c0_27 = arith.constant 0 : index
    %38 = vector.load %arg7[%c0_25, %c0_26, %c0_27] : memref<2x32x32xbf16, #tpu.memory_space<vmem>>, vector<1x32x32xbf16>
    %39 = vector.shape_cast %38 : vector<1x32x32xbf16> to vector<32x32xbf16>
    %cst_28 = arith.constant dense<0.000000e+00> : vector<16x32xf32>
    %40 = tpu.matmul %37, %39, %cst_28 {dimension_numbers = #tpu.dot_dimension_numbers<[1], [0], [0], [1], [0, 0, 1, 1], [], []>} : vector<16x32xbf16>, vector<32x32xbf16>, vector<16x32xf32> -> vector<16x32xf32>
    %c0_29 = arith.constant 0 : index
    %c0_30 = arith.constant 0 : index
    %c0_31 = arith.constant 0 : index
    %41 = vector.load %arg8[%c0_29, %c0_30, %c0_31] : memref<2x1x32xf32, #tpu.memory_space<vmem>>, vector<1x1x32xf32>
    %42 = vector.shape_cast %41 : vector<1x1x32xf32> to vector<1x32xf32>
    %43 = vector.broadcast %42 : vector<1x32xf32> to vector<16x32xf32>
    %44 = arith.addf %40, %43 : vector<16x32xf32>
    %45 = vector.extract_strided_slice %36 {offsets = [0, 0], sizes = [16, 32], strides = [1, 1]} : vector<16x64xf32> to vector<16x32xf32>
    %46 = vector.extract_strided_slice %36 {offsets = [0, 32], sizes = [16, 32], strides = [1, 1]} : vector<16x64xf32> to vector<16x32xf32>
    %c0_32 = arith.constant 0 : index
    %c0_33 = arith.constant 0 : index
    %c0_34 = arith.constant 0 : index
    %47 = vector.load %arg9[%c0_32, %c0_33, %c0_34] : memref<2x32x32xbf16, #tpu.memory_space<vmem>>, vector<1x32x32xbf16>
    %48 = vector.shape_cast %47 : vector<1x32x32xbf16> to vector<32x32xbf16>
    %cst_35 = arith.constant 0.353553385 : f32
    %49 = vector.broadcast %cst_35 : f32 to vector<16x32xf32>
    %50 = arith.mulf %45, %49 : vector<16x32xf32>
    %51 = arith.truncf %50 : vector<16x32xf32> to vector<16x32xbf16>
    %52 = arith.truncf %46 : vector<16x32xf32> to vector<16x32xbf16>
    %53 = arith.truncf %44 : vector<16x32xf32> to vector<16x32xbf16>
    %54 = vector.extract_strided_slice %51 {offsets = [0, 0], sizes = [16, 8], strides = [1, 1]} : vector<16x32xbf16> to vector<16x8xbf16>
    %55 = vector.extract_strided_slice %52 {offsets = [0, 0], sizes = [16, 8], strides = [1, 1]} : vector<16x32xbf16> to vector<16x8xbf16>
    %cst_36 = arith.constant dense<0.000000e+00> : vector<16x16xf32>
    %56 = tpu.matmul %54, %55, %cst_36 {dimension_numbers = #tpu.dot_dimension_numbers<[1], [1], [0], [0], [0, 0, 1, 0], [], []>} : vector<16x8xbf16>, vector<16x8xbf16>, vector<16x16xf32> -> vector<16x16xf32>
    %57 = arith.addf %56, %15 : vector<16x16xf32>
    %cst_37 = arith.constant dense<0xFF800000> : vector<16xf32>
    %58 = vector.multi_reduction <maximumf>, %57, %cst_37 [1] : vector<16x16xf32> to vector<16xf32>
    %59 = vector.shape_cast %58 : vector<16xf32> to vector<16x1xf32>
    %60 = vector.broadcast %59 : vector<16x1xf32> to vector<16x16xf32>
    %61 = arith.subf %57, %60 : vector<16x16xf32>
    %62 = math.exp %61 : vector<16x16xf32>
    %cst_38 = arith.constant dense<0.000000e+00> : vector<16xf32>
    %63 = vector.multi_reduction <add>, %62, %cst_38 [1] : vector<16x16xf32> to vector<16xf32>
    %64 = vector.shape_cast %63 : vector<16xf32> to vector<16x1xf32>
    %65 = tpu.reciprocal %64 : vector<16x1xf32> -> vector<16x1xf32>
    %66 = vector.broadcast %65 : vector<16x1xf32> to vector<16x16xf32>
    %67 = arith.mulf %62, %66 : vector<16x16xf32>
    %68 = arith.truncf %67 : vector<16x16xf32> to vector<16x16xbf16>
    %69 = vector.extract_strided_slice %53 {offsets = [0, 0], sizes = [16, 8], strides = [1, 1]} : vector<16x32xbf16> to vector<16x8xbf16>
    %cst_39 = arith.constant dense<0.000000e+00> : vector<16x8xf32>
    %70 = tpu.matmul %68, %69, %cst_39 {dimension_numbers = #tpu.dot_dimension_numbers<[1], [0], [0], [1], [0, 0, 1, 1], [], []>} : vector<16x16xbf16>, vector<16x8xbf16>, vector<16x8xf32> -> vector<16x8xf32>
    %71 = vector.extract_strided_slice %51 {offsets = [0, 8], sizes = [16, 8], strides = [1, 1]} : vector<16x32xbf16> to vector<16x8xbf16>
    %72 = vector.extract_strided_slice %52 {offsets = [0, 8], sizes = [16, 8], strides = [1, 1]} : vector<16x32xbf16> to vector<16x8xbf16>
    %cst_40 = arith.constant dense<0.000000e+00> : vector<16x16xf32>
    %73 = tpu.matmul %71, %72, %cst_40 {dimension_numbers = #tpu.dot_dimension_numbers<[1], [1], [0], [0], [0, 0, 1, 0], [], []>} : vector<16x8xbf16>, vector<16x8xbf16>, vector<16x16xf32> -> vector<16x16xf32>
    %74 = arith.addf %73, %15 : vector<16x16xf32>
    %cst_41 = arith.constant dense<0xFF800000> : vector<16xf32>
    %75 = vector.multi_reduction <maximumf>, %74, %cst_41 [1] : vector<16x16xf32> to vector<16xf32>
    %76 = vector.shape_cast %75 : vector<16xf32> to vector<16x1xf32>
    %77 = vector.broadcast %76 : vector<16x1xf32> to vector<16x16xf32>
    %78 = arith.subf %74, %77 : vector<16x16xf32>
    %79 = math.exp %78 : vector<16x16xf32>
    %cst_42 = arith.constant dense<0.000000e+00> : vector<16xf32>
    %80 = vector.multi_reduction <add>, %79, %cst_42 [1] : vector<16x16xf32> to vector<16xf32>
    %81 = vector.shape_cast %80 : vector<16xf32> to vector<16x1xf32>
    %82 = tpu.reciprocal %81 : vector<16x1xf32> -> vector<16x1xf32>
    %83 = vector.broadcast %82 : vector<16x1xf32> to vector<16x16xf32>
    %84 = arith.mulf %79, %83 : vector<16x16xf32>
    %85 = arith.truncf %84 : vector<16x16xf32> to vector<16x16xbf16>
    %86 = vector.extract_strided_slice %53 {offsets = [0, 8], sizes = [16, 8], strides = [1, 1]} : vector<16x32xbf16> to vector<16x8xbf16>
    %cst_43 = arith.constant dense<0.000000e+00> : vector<16x8xf32>
    %87 = tpu.matmul %85, %86, %cst_43 {dimension_numbers = #tpu.dot_dimension_numbers<[1], [0], [0], [1], [0, 0, 1, 1], [], []>} : vector<16x16xbf16>, vector<16x8xbf16>, vector<16x8xf32> -> vector<16x8xf32>
    %88 = vector.extract_strided_slice %51 {offsets = [0, 16], sizes = [16, 8], strides = [1, 1]} : vector<16x32xbf16> to vector<16x8xbf16>
    %89 = vector.extract_strided_slice %52 {offsets = [0, 16], sizes = [16, 8], strides = [1, 1]} : vector<16x32xbf16> to vector<16x8xbf16>
    %cst_44 = arith.constant dense<0.000000e+00> : vector<16x16xf32>
    %90 = tpu.matmul %88, %89, %cst_44 {dimension_numbers = #tpu.dot_dimension_numbers<[1], [1], [0], [0], [0, 0, 1, 0], [], []>} : vector<16x8xbf16>, vector<16x8xbf16>, vector<16x16xf32> -> vector<16x16xf32>
    %91 = arith.addf %90, %15 : vector<16x16xf32>
    %cst_45 = arith.constant dense<0xFF800000> : vector<16xf32>
    %92 = vector.multi_reduction <maximumf>, %91, %cst_45 [1] : vector<16x16xf32> to vector<16xf32>
    %93 = vector.shape_cast %92 : vector<16xf32> to vector<16x1xf32>
    %94 = vector.broadcast %93 : vector<16x1xf32> to vector<16x16xf32>
    %95 = arith.subf %91, %94 : vector<16x16xf32>
    %96 = math.exp %95 : vector<16x16xf32>
    %cst_46 = arith.constant dense<0.000000e+00> : vector<16xf32>
    %97 = vector.multi_reduction <add>, %96, %cst_46 [1] : vector<16x16xf32> to vector<16xf32>
    %98 = vector.shape_cast %97 : vector<16xf32> to vector<16x1xf32>
    %99 = tpu.reciprocal %98 : vector<16x1xf32> -> vector<16x1xf32>
    %100 = vector.broadcast %99 : vector<16x1xf32> to vector<16x16xf32>
    %101 = arith.mulf %96, %100 : vector<16x16xf32>
    %102 = arith.truncf %101 : vector<16x16xf32> to vector<16x16xbf16>
    %103 = vector.extract_strided_slice %53 {offsets = [0, 16], sizes = [16, 8], strides = [1, 1]} : vector<16x32xbf16> to vector<16x8xbf16>
    %cst_47 = arith.constant dense<0.000000e+00> : vector<16x8xf32>
    %104 = tpu.matmul %102, %103, %cst_47 {dimension_numbers = #tpu.dot_dimension_numbers<[1], [0], [0], [1], [0, 0, 1, 1], [], []>} : vector<16x16xbf16>, vector<16x8xbf16>, vector<16x8xf32> -> vector<16x8xf32>
    %105 = vector.extract_strided_slice %51 {offsets = [0, 24], sizes = [16, 8], strides = [1, 1]} : vector<16x32xbf16> to vector<16x8xbf16>
    %106 = vector.extract_strided_slice %52 {offsets = [0, 24], sizes = [16, 8], strides = [1, 1]} : vector<16x32xbf16> to vector<16x8xbf16>
    %cst_48 = arith.constant dense<0.000000e+00> : vector<16x16xf32>
    %107 = tpu.matmul %105, %106, %cst_48 {dimension_numbers = #tpu.dot_dimension_numbers<[1], [1], [0], [0], [0, 0, 1, 0], [], []>} : vector<16x8xbf16>, vector<16x8xbf16>, vector<16x16xf32> -> vector<16x16xf32>
    %108 = arith.addf %107, %15 : vector<16x16xf32>
    %cst_49 = arith.constant dense<0xFF800000> : vector<16xf32>
    %109 = vector.multi_reduction <maximumf>, %108, %cst_49 [1] : vector<16x16xf32> to vector<16xf32>
    %110 = vector.shape_cast %109 : vector<16xf32> to vector<16x1xf32>
    %111 = vector.broadcast %110 : vector<16x1xf32> to vector<16x16xf32>
    %112 = arith.subf %108, %111 : vector<16x16xf32>
    %113 = math.exp %112 : vector<16x16xf32>
    %cst_50 = arith.constant dense<0.000000e+00> : vector<16xf32>
    %114 = vector.multi_reduction <add>, %113, %cst_50 [1] : vector<16x16xf32> to vector<16xf32>
    %115 = vector.shape_cast %114 : vector<16xf32> to vector<16x1xf32>
    %116 = tpu.reciprocal %115 : vector<16x1xf32> -> vector<16x1xf32>
    %117 = vector.broadcast %116 : vector<16x1xf32> to vector<16x16xf32>
    %118 = arith.mulf %113, %117 : vector<16x16xf32>
    %119 = arith.truncf %118 : vector<16x16xf32> to vector<16x16xbf16>
    %120 = vector.extract_strided_slice %53 {offsets = [0, 24], sizes = [16, 8], strides = [1, 1]} : vector<16x32xbf16> to vector<16x8xbf16>
    %cst_51 = arith.constant dense<0.000000e+00> : vector<16x8xf32>
    %121 = tpu.matmul %119, %120, %cst_51 {dimension_numbers = #tpu.dot_dimension_numbers<[1], [0], [0], [1], [0, 0, 1, 1], [], []>} : vector<16x16xbf16>, vector<16x8xbf16>, vector<16x8xf32> -> vector<16x8xf32>
    %122 = tpu.concatenate %70, %87, %104, %121 in 1 : vector<16x8xf32>, vector<16x8xf32>, vector<16x8xf32>, vector<16x8xf32> -> vector<16x32xf32>
    %123 = arith.truncf %122 : vector<16x32xf32> to vector<16x32xbf16>
    %cst_52 = arith.constant dense<0.000000e+00> : vector<16x32xf32>
    %124 = tpu.matmul %123, %48, %cst_52 {dimension_numbers = #tpu.dot_dimension_numbers<[1], [0], [0], [1], [0, 0, 1, 1], [], []>} : vector<16x32xbf16>, vector<32x32xbf16>, vector<16x32xf32> -> vector<16x32xf32>
    %c0_53 = arith.constant 0 : index
    %c0_54 = arith.constant 0 : index
    %c0_55 = arith.constant 0 : index
    %125 = vector.load %arg10[%c0_53, %c0_54, %c0_55] : memref<2x1x32xf32, #tpu.memory_space<vmem>>, vector<1x1x32xf32>
    %126 = vector.shape_cast %125 : vector<1x1x32xf32> to vector<1x32xf32>
    %127 = vector.broadcast %126 : vector<1x32xf32> to vector<16x32xf32>
    %128 = arith.addf %124, %127 : vector<16x32xf32>
    %129 = arith.addf %1, %128 : vector<16x32xf32>
    %c0_56 = arith.constant 0 : index
    %c0_57 = arith.constant 0 : index
    %c0_58 = arith.constant 0 : index
    %130 = vector.load %arg11[%c0_56, %c0_57, %c0_58] : memref<2x1x32xf32, #tpu.memory_space<vmem>>, vector<1x1x32xf32>
    %131 = vector.shape_cast %130 : vector<1x1x32xf32> to vector<1x32xf32>
    %c0_59 = arith.constant 0 : index
    %c0_60 = arith.constant 0 : index
    %c0_61 = arith.constant 0 : index
    %132 = vector.load %arg12[%c0_59, %c0_60, %c0_61] : memref<2x1x32xf32, #tpu.memory_space<vmem>>, vector<1x1x32xf32>
    %133 = vector.shape_cast %132 : vector<1x1x32xf32> to vector<1x32xf32>
    %cst_62 = arith.constant dense<0.000000e+00> : vector<16xf32>
    %134 = vector.multi_reduction <add>, %129, %cst_62 [1] : vector<16x32xf32> to vector<16xf32>
    %135 = vector.shape_cast %134 : vector<16xf32> to vector<16x1xf32>
    %cst_63 = arith.constant 3.200000e+01 : f32
    %136 = vector.broadcast %cst_63 : f32 to vector<16x1xf32>
    %137 = arith.divf %135, %136 : vector<16x1xf32>
    %138 = vector.broadcast %137 : vector<16x1xf32> to vector<16x32xf32>
    %139 = arith.subf %129, %138 : vector<16x32xf32>
    %140 = arith.mulf %139, %139 : vector<16x32xf32>
    %cst_64 = arith.constant dense<0.000000e+00> : vector<16xf32>
    %141 = vector.multi_reduction <add>, %140, %cst_64 [1] : vector<16x32xf32> to vector<16xf32>
    %142 = vector.shape_cast %141 : vector<16xf32> to vector<16x1xf32>
    %cst_65 = arith.constant 3.200000e+01 : f32
    %143 = vector.broadcast %cst_65 : f32 to vector<16x1xf32>
    %144 = arith.divf %142, %143 : vector<16x1xf32>
    %145 = vector.broadcast %137 : vector<16x1xf32> to vector<16x32xf32>
    %146 = arith.subf %129, %145 : vector<16x32xf32>
    %cst_66 = arith.constant 9.99999974E-6 : f32
    %147 = vector.broadcast %cst_66 : f32 to vector<16x1xf32>
    %148 = arith.addf %144, %147 : vector<16x1xf32>
    %149 = math.rsqrt %148 : vector<16x1xf32>
    %150 = vector.broadcast %149 : vector<16x1xf32> to vector<16x32xf32>
    %151 = arith.mulf %146, %150 : vector<16x32xf32>
    %152 = vector.broadcast %131 : vector<1x32xf32> to vector<16x32xf32>
    %153 = arith.mulf %151, %152 : vector<16x32xf32>
    %154 = vector.broadcast %133 : vector<1x32xf32> to vector<16x32xf32>
    %155 = arith.addf %153, %154 : vector<16x32xf32>
    %156 = arith.addf %155, %3 : vector<16x32xf32>
    %157 = arith.truncf %156 : vector<16x32xf32> to vector<16x32xbf16>
    %c0_67 = arith.constant 0 : index
    %c0_68 = arith.constant 0 : index
    %c0_69 = arith.constant 0 : index
    %158 = vector.load %arg13[%c0_67, %c0_68, %c0_69] : memref<2x32x32xbf16, #tpu.memory_space<vmem>>, vector<1x32x32xbf16>
    %159 = vector.shape_cast %158 : vector<1x32x32xbf16> to vector<32x32xbf16>
    %cst_70 = arith.constant dense<0.000000e+00> : vector<16x32xf32>
    %160 = tpu.matmul %157, %159, %cst_70 {dimension_numbers = #tpu.dot_dimension_numbers<[1], [0], [0], [1], [0, 0, 1, 1], [], []>} : vector<16x32xbf16>, vector<32x32xbf16>, vector<16x32xf32> -> vector<16x32xf32>
    %c0_71 = arith.constant 0 : index
    %c0_72 = arith.constant 0 : index
    %c0_73 = arith.constant 0 : index
    %161 = vector.load %arg14[%c0_71, %c0_72, %c0_73] : memref<2x1x32xf32, #tpu.memory_space<vmem>>, vector<1x1x32xf32>
    %162 = vector.shape_cast %161 : vector<1x1x32xf32> to vector<1x32xf32>
    %163 = vector.broadcast %162 : vector<1x32xf32> to vector<16x32xf32>
    %164 = arith.addf %160, %163 : vector<16x32xf32>
    %165 = arith.addf %27, %5 : vector<32x32xf32>
    %166 = arith.truncf %165 : vector<32x32xf32> to vector<32x32xbf16>
    %c0_74 = arith.constant 0 : index
    %c0_75 = arith.constant 0 : index
    %c0_76 = arith.constant 0 : index
    %167 = vector.load %arg15[%c0_74, %c0_75, %c0_76] : memref<2x32x32xbf16, #tpu.memory_space<vmem>>, vector<1x32x32xbf16>
    %168 = vector.shape_cast %167 : vector<1x32x32xbf16> to vector<32x32xbf16>
    %cst_77 = arith.constant dense<0.000000e+00> : vector<32x32xf32>
    %169 = tpu.matmul %166, %168, %cst_77 {dimension_numbers = #tpu.dot_dimension_numbers<[1], [0], [0], [1], [0, 0, 1, 1], [], []>} : vector<32x32xbf16>, vector<32x32xbf16>, vector<32x32xf32> -> vector<32x32xf32>
    %c0_78 = arith.constant 0 : index
    %c0_79 = arith.constant 0 : index
    %c0_80 = arith.constant 0 : index
    %170 = vector.load %arg16[%c0_78, %c0_79, %c0_80] : memref<2x1x32xf32, #tpu.memory_space<vmem>>, vector<1x1x32xf32>
    %171 = vector.shape_cast %170 : vector<1x1x32xf32> to vector<1x32xf32>
    %172 = vector.broadcast %171 : vector<1x32xf32> to vector<32x32xf32>
    %173 = arith.addf %169, %172 : vector<32x32xf32>
    %174 = arith.truncf %27 : vector<32x32xf32> to vector<32x32xbf16>
    %c0_81 = arith.constant 0 : index
    %c0_82 = arith.constant 0 : index
    %c0_83 = arith.constant 0 : index
    %175 = vector.load %arg17[%c0_81, %c0_82, %c0_83] : memref<2x32x32xbf16, #tpu.memory_space<vmem>>, vector<1x32x32xbf16>
    %176 = vector.shape_cast %175 : vector<1x32x32xbf16> to vector<32x32xbf16>
    %cst_84 = arith.constant dense<0.000000e+00> : vector<32x32xf32>
    %177 = tpu.matmul %174, %176, %cst_84 {dimension_numbers = #tpu.dot_dimension_numbers<[1], [0], [0], [1], [0, 0, 1, 1], [], []>} : vector<32x32xbf16>, vector<32x32xbf16>, vector<32x32xf32> -> vector<32x32xf32>
    %c0_85 = arith.constant 0 : index
    %c0_86 = arith.constant 0 : index
    %c0_87 = arith.constant 0 : index
    %178 = vector.load %arg18[%c0_85, %c0_86, %c0_87] : memref<2x1x32xf32, #tpu.memory_space<vmem>>, vector<1x1x32xf32>
    %179 = vector.shape_cast %178 : vector<1x1x32xf32> to vector<1x32xf32>
    %180 = vector.broadcast %179 : vector<1x32xf32> to vector<32x32xf32>
    %181 = arith.addf %177, %180 : vector<32x32xf32>
    %c0_88 = arith.constant 0 : index
    %c0_89 = arith.constant 0 : index
    %c0_90 = arith.constant 0 : index
    %182 = vector.load %arg19[%c0_88, %c0_89, %c0_90] : memref<2x32x32xbf16, #tpu.memory_space<vmem>>, vector<1x32x32xbf16>
    %183 = vector.shape_cast %182 : vector<1x32x32xbf16> to vector<32x32xbf16>
    %cst_91 = arith.constant 0.353553385 : f32
    %184 = vector.broadcast %cst_91 : f32 to vector<16x32xf32>
    %185 = arith.mulf %164, %184 : vector<16x32xf32>
    %186 = arith.truncf %185 : vector<16x32xf32> to vector<16x32xbf16>
    %187 = arith.truncf %173 : vector<32x32xf32> to vector<32x32xbf16>
    %188 = arith.truncf %181 : vector<32x32xf32> to vector<32x32xbf16>
    %189 = vector.extract_strided_slice %186 {offsets = [0, 0], sizes = [16, 8], strides = [1, 1]} : vector<16x32xbf16> to vector<16x8xbf16>
    %190 = vector.extract_strided_slice %187 {offsets = [0, 0], sizes = [32, 8], strides = [1, 1]} : vector<32x32xbf16> to vector<32x8xbf16>
    %cst_92 = arith.constant dense<0.000000e+00> : vector<16x32xf32>
    %191 = tpu.matmul %189, %190, %cst_92 {dimension_numbers = #tpu.dot_dimension_numbers<[1], [1], [0], [0], [0, 0, 1, 0], [], []>} : vector<16x8xbf16>, vector<32x8xbf16>, vector<16x32xf32> -> vector<16x32xf32>
    %192 = arith.addf %191, %25 : vector<16x32xf32>
    %cst_93 = arith.constant dense<0xFF800000> : vector<16xf32>
    %193 = vector.multi_reduction <maximumf>, %192, %cst_93 [1] : vector<16x32xf32> to vector<16xf32>
    %194 = vector.shape_cast %193 : vector<16xf32> to vector<16x1xf32>
    %195 = vector.broadcast %194 : vector<16x1xf32> to vector<16x32xf32>
    %196 = arith.subf %192, %195 : vector<16x32xf32>
    %197 = math.exp %196 : vector<16x32xf32>
    %cst_94 = arith.constant dense<0.000000e+00> : vector<16xf32>
    %198 = vector.multi_reduction <add>, %197, %cst_94 [1] : vector<16x32xf32> to vector<16xf32>
    %199 = vector.shape_cast %198 : vector<16xf32> to vector<16x1xf32>
    %200 = tpu.reciprocal %199 : vector<16x1xf32> -> vector<16x1xf32>
    %201 = vector.broadcast %200 : vector<16x1xf32> to vector<16x32xf32>
    %202 = arith.mulf %197, %201 : vector<16x32xf32>
    %203 = arith.truncf %202 : vector<16x32xf32> to vector<16x32xbf16>
    %204 = vector.extract_strided_slice %188 {offsets = [0, 0], sizes = [32, 8], strides = [1, 1]} : vector<32x32xbf16> to vector<32x8xbf16>
    %cst_95 = arith.constant dense<0.000000e+00> : vector<16x8xf32>
    %205 = tpu.matmul %203, %204, %cst_95 {dimension_numbers = #tpu.dot_dimension_numbers<[1], [0], [0], [1], [0, 0, 1, 1], [], []>} : vector<16x32xbf16>, vector<32x8xbf16>, vector<16x8xf32> -> vector<16x8xf32>
    %206 = vector.extract_strided_slice %186 {offsets = [0, 8], sizes = [16, 8], strides = [1, 1]} : vector<16x32xbf16> to vector<16x8xbf16>
    %207 = vector.extract_strided_slice %187 {offsets = [0, 8], sizes = [32, 8], strides = [1, 1]} : vector<32x32xbf16> to vector<32x8xbf16>
    %cst_96 = arith.constant dense<0.000000e+00> : vector<16x32xf32>
    %208 = tpu.matmul %206, %207, %cst_96 {dimension_numbers = #tpu.dot_dimension_numbers<[1], [1], [0], [0], [0, 0, 1, 0], [], []>} : vector<16x8xbf16>, vector<32x8xbf16>, vector<16x32xf32> -> vector<16x32xf32>
    %209 = arith.addf %208, %25 : vector<16x32xf32>
    %cst_97 = arith.constant dense<0xFF800000> : vector<16xf32>
    %210 = vector.multi_reduction <maximumf>, %209, %cst_97 [1] : vector<16x32xf32> to vector<16xf32>
    %211 = vector.shape_cast %210 : vector<16xf32> to vector<16x1xf32>
    %212 = vector.broadcast %211 : vector<16x1xf32> to vector<16x32xf32>
    %213 = arith.subf %209, %212 : vector<16x32xf32>
    %214 = math.exp %213 : vector<16x32xf32>
    %cst_98 = arith.constant dense<0.000000e+00> : vector<16xf32>
    %215 = vector.multi_reduction <add>, %214, %cst_98 [1] : vector<16x32xf32> to vector<16xf32>
    %216 = vector.shape_cast %215 : vector<16xf32> to vector<16x1xf32>
    %217 = tpu.reciprocal %216 : vector<16x1xf32> -> vector<16x1xf32>
    %218 = vector.broadcast %217 : vector<16x1xf32> to vector<16x32xf32>
    %219 = arith.mulf %214, %218 : vector<16x32xf32>
    %220 = arith.truncf %219 : vector<16x32xf32> to vector<16x32xbf16>
    %221 = vector.extract_strided_slice %188 {offsets = [0, 8], sizes = [32, 8], strides = [1, 1]} : vector<32x32xbf16> to vector<32x8xbf16>
    %cst_99 = arith.constant dense<0.000000e+00> : vector<16x8xf32>
    %222 = tpu.matmul %220, %221, %cst_99 {dimension_numbers = #tpu.dot_dimension_numbers<[1], [0], [0], [1], [0, 0, 1, 1], [], []>} : vector<16x32xbf16>, vector<32x8xbf16>, vector<16x8xf32> -> vector<16x8xf32>
    %223 = vector.extract_strided_slice %186 {offsets = [0, 16], sizes = [16, 8], strides = [1, 1]} : vector<16x32xbf16> to vector<16x8xbf16>
    %224 = vector.extract_strided_slice %187 {offsets = [0, 16], sizes = [32, 8], strides = [1, 1]} : vector<32x32xbf16> to vector<32x8xbf16>
    %cst_100 = arith.constant dense<0.000000e+00> : vector<16x32xf32>
    %225 = tpu.matmul %223, %224, %cst_100 {dimension_numbers = #tpu.dot_dimension_numbers<[1], [1], [0], [0], [0, 0, 1, 0], [], []>} : vector<16x8xbf16>, vector<32x8xbf16>, vector<16x32xf32> -> vector<16x32xf32>
    %226 = arith.addf %225, %25 : vector<16x32xf32>
    %cst_101 = arith.constant dense<0xFF800000> : vector<16xf32>
    %227 = vector.multi_reduction <maximumf>, %226, %cst_101 [1] : vector<16x32xf32> to vector<16xf32>
    %228 = vector.shape_cast %227 : vector<16xf32> to vector<16x1xf32>
    %229 = vector.broadcast %228 : vector<16x1xf32> to vector<16x32xf32>
    %230 = arith.subf %226, %229 : vector<16x32xf32>
    %231 = math.exp %230 : vector<16x32xf32>
    %cst_102 = arith.constant dense<0.000000e+00> : vector<16xf32>
    %232 = vector.multi_reduction <add>, %231, %cst_102 [1] : vector<16x32xf32> to vector<16xf32>
    %233 = vector.shape_cast %232 : vector<16xf32> to vector<16x1xf32>
    %234 = tpu.reciprocal %233 : vector<16x1xf32> -> vector<16x1xf32>
    %235 = vector.broadcast %234 : vector<16x1xf32> to vector<16x32xf32>
    %236 = arith.mulf %231, %235 : vector<16x32xf32>
    %237 = arith.truncf %236 : vector<16x32xf32> to vector<16x32xbf16>
    %238 = vector.extract_strided_slice %188 {offsets = [0, 16], sizes = [32, 8], strides = [1, 1]} : vector<32x32xbf16> to vector<32x8xbf16>
    %cst_103 = arith.constant dense<0.000000e+00> : vector<16x8xf32>
    %239 = tpu.matmul %237, %238, %cst_103 {dimension_numbers = #tpu.dot_dimension_numbers<[1], [0], [0], [1], [0, 0, 1, 1], [], []>} : vector<16x32xbf16>, vector<32x8xbf16>, vector<16x8xf32> -> vector<16x8xf32>
    %240 = vector.extract_strided_slice %186 {offsets = [0, 24], sizes = [16, 8], strides = [1, 1]} : vector<16x32xbf16> to vector<16x8xbf16>
    %241 = vector.extract_strided_slice %187 {offsets = [0, 24], sizes = [32, 8], strides = [1, 1]} : vector<32x32xbf16> to vector<32x8xbf16>
    %cst_104 = arith.constant dense<0.000000e+00> : vector<16x32xf32>
    %242 = tpu.matmul %240, %241, %cst_104 {dimension_numbers = #tpu.dot_dimension_numbers<[1], [1], [0], [0], [0, 0, 1, 0], [], []>} : vector<16x8xbf16>, vector<32x8xbf16>, vector<16x32xf32> -> vector<16x32xf32>
    %243 = arith.addf %242, %25 : vector<16x32xf32>
    %cst_105 = arith.constant dense<0xFF800000> : vector<16xf32>
    %244 = vector.multi_reduction <maximumf>, %243, %cst_105 [1] : vector<16x32xf32> to vector<16xf32>
    %245 = vector.shape_cast %244 : vector<16xf32> to vector<16x1xf32>
    %246 = vector.broadcast %245 : vector<16x1xf32> to vector<16x32xf32>
    %247 = arith.subf %243, %246 : vector<16x32xf32>
    %248 = math.exp %247 : vector<16x32xf32>
    %cst_106 = arith.constant dense<0.000000e+00> : vector<16xf32>
    %249 = vector.multi_reduction <add>, %248, %cst_106 [1] : vector<16x32xf32> to vector<16xf32>
    %250 = vector.shape_cast %249 : vector<16xf32> to vector<16x1xf32>
    %251 = tpu.reciprocal %250 : vector<16x1xf32> -> vector<16x1xf32>
    %252 = vector.broadcast %251 : vector<16x1xf32> to vector<16x32xf32>
    %253 = arith.mulf %248, %252 : vector<16x32xf32>
    %254 = arith.truncf %253 : vector<16x32xf32> to vector<16x32xbf16>
    %255 = vector.extract_strided_slice %188 {offsets = [0, 24], sizes = [32, 8], strides = [1, 1]} : vector<32x32xbf16> to vector<32x8xbf16>
    %cst_107 = arith.constant dense<0.000000e+00> : vector<16x8xf32>
    %256 = tpu.matmul %254, %255, %cst_107 {dimension_numbers = #tpu.dot_dimension_numbers<[1], [0], [0], [1], [0, 0, 1, 1], [], []>} : vector<16x32xbf16>, vector<32x8xbf16>, vector<16x8xf32> -> vector<16x8xf32>
    %257 = tpu.concatenate %205, %222, %239, %256 in 1 : vector<16x8xf32>, vector<16x8xf32>, vector<16x8xf32>, vector<16x8xf32> -> vector<16x32xf32>
    %258 = arith.truncf %257 : vector<16x32xf32> to vector<16x32xbf16>
    %cst_108 = arith.constant dense<0.000000e+00> : vector<16x32xf32>
    %259 = tpu.matmul %258, %183, %cst_108 {dimension_numbers = #tpu.dot_dimension_numbers<[1], [0], [0], [1], [0, 0, 1, 1], [], []>} : vector<16x32xbf16>, vector<32x32xbf16>, vector<16x32xf32> -> vector<16x32xf32>
    %c0_109 = arith.constant 0 : index
    %c0_110 = arith.constant 0 : index
    %c0_111 = arith.constant 0 : index
    %260 = vector.load %arg20[%c0_109, %c0_110, %c0_111] : memref<2x1x32xf32, #tpu.memory_space<vmem>>, vector<1x1x32xf32>
    %261 = vector.shape_cast %260 : vector<1x1x32xf32> to vector<1x32xf32>
    %262 = vector.broadcast %261 : vector<1x32xf32> to vector<16x32xf32>
    %263 = arith.addf %259, %262 : vector<16x32xf32>
    %264 = arith.addf %155, %263 : vector<16x32xf32>
    %c0_112 = arith.constant 0 : index
    %c0_113 = arith.constant 0 : index
    %c0_114 = arith.constant 0 : index
    %265 = vector.load %arg21[%c0_112, %c0_113, %c0_114] : memref<2x1x32xf32, #tpu.memory_space<vmem>>, vector<1x1x32xf32>
    %266 = vector.shape_cast %265 : vector<1x1x32xf32> to vector<1x32xf32>
    %c0_115 = arith.constant 0 : index
    %c0_116 = arith.constant 0 : index
    %c0_117 = arith.constant 0 : index
    %267 = vector.load %arg22[%c0_115, %c0_116, %c0_117] : memref<2x1x32xf32, #tpu.memory_space<vmem>>, vector<1x1x32xf32>
    %268 = vector.shape_cast %267 : vector<1x1x32xf32> to vector<1x32xf32>
    %cst_118 = arith.constant dense<0.000000e+00> : vector<16xf32>
    %269 = vector.multi_reduction <add>, %264, %cst_118 [1] : vector<16x32xf32> to vector<16xf32>
    %270 = vector.shape_cast %269 : vector<16xf32> to vector<16x1xf32>
    %cst_119 = arith.constant 3.200000e+01 : f32
    %271 = vector.broadcast %cst_119 : f32 to vector<16x1xf32>
    %272 = arith.divf %270, %271 : vector<16x1xf32>
    %273 = vector.broadcast %272 : vector<16x1xf32> to vector<16x32xf32>
    %274 = arith.subf %264, %273 : vector<16x32xf32>
    %275 = arith.mulf %274, %274 : vector<16x32xf32>
    %cst_120 = arith.constant dense<0.000000e+00> : vector<16xf32>
    %276 = vector.multi_reduction <add>, %275, %cst_120 [1] : vector<16x32xf32> to vector<16xf32>
    %277 = vector.shape_cast %276 : vector<16xf32> to vector<16x1xf32>
    %cst_121 = arith.constant 3.200000e+01 : f32
    %278 = vector.broadcast %cst_121 : f32 to vector<16x1xf32>
    %279 = arith.divf %277, %278 : vector<16x1xf32>
    %280 = vector.broadcast %272 : vector<16x1xf32> to vector<16x32xf32>
    %281 = arith.subf %264, %280 : vector<16x32xf32>
    %cst_122 = arith.constant 9.99999974E-6 : f32
    %282 = vector.broadcast %cst_122 : f32 to vector<16x1xf32>
    %283 = arith.addf %279, %282 : vector<16x1xf32>
    %284 = math.rsqrt %283 : vector<16x1xf32>
    %285 = vector.broadcast %284 : vector<16x1xf32> to vector<16x32xf32>
    %286 = arith.mulf %281, %285 : vector<16x32xf32>
    %287 = vector.broadcast %266 : vector<1x32xf32> to vector<16x32xf32>
    %288 = arith.mulf %286, %287 : vector<16x32xf32>
    %289 = vector.broadcast %268 : vector<1x32xf32> to vector<16x32xf32>
    %290 = arith.addf %288, %289 : vector<16x32xf32>
    %291 = arith.truncf %290 : vector<16x32xf32> to vector<16x32xbf16>
    %c0_123 = arith.constant 0 : index
    %c0_124 = arith.constant 0 : index
    %c0_125 = arith.constant 0 : index
    %292 = vector.load %arg23[%c0_123, %c0_124, %c0_125] : memref<2x32x64xbf16, #tpu.memory_space<vmem>>, vector<1x32x64xbf16>
    %293 = vector.shape_cast %292 : vector<1x32x64xbf16> to vector<32x64xbf16>
    %cst_126 = arith.constant dense<0.000000e+00> : vector<16x64xf32>
    %294 = tpu.matmul %291, %293, %cst_126 {dimension_numbers = #tpu.dot_dimension_numbers<[1], [0], [0], [1], [0, 0, 1, 1], [], []>} : vector<16x32xbf16>, vector<32x64xbf16>, vector<16x64xf32> -> vector<16x64xf32>
    %c0_127 = arith.constant 0 : index
    %c0_128 = arith.constant 0 : index
    %c0_129 = arith.constant 0 : index
    %295 = vector.load %arg24[%c0_127, %c0_128, %c0_129] : memref<2x1x64xf32, #tpu.memory_space<vmem>>, vector<1x1x64xf32>
    %296 = vector.shape_cast %295 : vector<1x1x64xf32> to vector<1x64xf32>
    %297 = vector.broadcast %296 : vector<1x64xf32> to vector<16x64xf32>
    %298 = arith.addf %294, %297 : vector<16x64xf32>
    %cst_130 = arith.constant 0.000000e+00 : f32
    %299 = vector.broadcast %cst_130 : f32 to vector<16x64xf32>
    %300 = arith.maximumf %298, %299 : vector<16x64xf32>
    %301 = arith.truncf %300 : vector<16x64xf32> to vector<16x64xbf16>
    %c0_131 = arith.constant 0 : index
    %c0_132 = arith.constant 0 : index
    %c0_133 = arith.constant 0 : index
    %302 = vector.load %arg25[%c0_131, %c0_132, %c0_133] : memref<2x64x32xbf16, #tpu.memory_space<vmem>>, vector<1x64x32xbf16>
    %303 = vector.shape_cast %302 : vector<1x64x32xbf16> to vector<64x32xbf16>
    %cst_134 = arith.constant dense<0.000000e+00> : vector<16x32xf32>
    %304 = tpu.matmul %301, %303, %cst_134 {dimension_numbers = #tpu.dot_dimension_numbers<[1], [0], [0], [1], [0, 0, 1, 1], [], []>} : vector<16x64xbf16>, vector<64x32xbf16>, vector<16x32xf32> -> vector<16x32xf32>
    %c0_135 = arith.constant 0 : index
    %c0_136 = arith.constant 0 : index
    %c0_137 = arith.constant 0 : index
    %305 = vector.load %arg26[%c0_135, %c0_136, %c0_137] : memref<2x1x32xf32, #tpu.memory_space<vmem>>, vector<1x1x32xf32>
    %306 = vector.shape_cast %305 : vector<1x1x32xf32> to vector<1x32xf32>
    %307 = vector.broadcast %306 : vector<1x32xf32> to vector<16x32xf32>
    %308 = arith.addf %304, %307 : vector<16x32xf32>
    %309 = arith.addf %290, %308 : vector<16x32xf32>
    %c0_138 = arith.constant 0 : index
    %c0_139 = arith.constant 0 : index
    %c0_140 = arith.constant 0 : index
    %310 = vector.load %arg27[%c0_138, %c0_139, %c0_140] : memref<2x1x32xf32, #tpu.memory_space<vmem>>, vector<1x1x32xf32>
    %311 = vector.shape_cast %310 : vector<1x1x32xf32> to vector<1x32xf32>
    %c0_141 = arith.constant 0 : index
    %c0_142 = arith.constant 0 : index
    %c0_143 = arith.constant 0 : index
    %312 = vector.load %arg28[%c0_141, %c0_142, %c0_143] : memref<2x1x32xf32, #tpu.memory_space<vmem>>, vector<1x1x32xf32>
    %313 = vector.shape_cast %312 : vector<1x1x32xf32> to vector<1x32xf32>
    %cst_144 = arith.constant dense<0.000000e+00> : vector<16xf32>
    %314 = vector.multi_reduction <add>, %309, %cst_144 [1] : vector<16x32xf32> to vector<16xf32>
    %315 = vector.shape_cast %314 : vector<16xf32> to vector<16x1xf32>
    %cst_145 = arith.constant 3.200000e+01 : f32
    %316 = vector.broadcast %cst_145 : f32 to vector<16x1xf32>
    %317 = arith.divf %315, %316 : vector<16x1xf32>
    %318 = vector.broadcast %317 : vector<16x1xf32> to vector<16x32xf32>
    %319 = arith.subf %309, %318 : vector<16x32xf32>
    %320 = arith.mulf %319, %319 : vector<16x32xf32>
    %cst_146 = arith.constant dense<0.000000e+00> : vector<16xf32>
    %321 = vector.multi_reduction <add>, %320, %cst_146 [1] : vector<16x32xf32> to vector<16xf32>
    %322 = vector.shape_cast %321 : vector<16xf32> to vector<16x1xf32>
    %cst_147 = arith.constant 3.200000e+01 : f32
    %323 = vector.broadcast %cst_147 : f32 to vector<16x1xf32>
    %324 = arith.divf %322, %323 : vector<16x1xf32>
    %325 = vector.broadcast %317 : vector<16x1xf32> to vector<16x32xf32>
    %326 = arith.subf %309, %325 : vector<16x32xf32>
    %cst_148 = arith.constant 9.99999974E-6 : f32
    %327 = vector.broadcast %cst_148 : f32 to vector<16x1xf32>
    %328 = arith.addf %324, %327 : vector<16x1xf32>
    %329 = math.rsqrt %328 : vector<16x1xf32>
    %330 = vector.broadcast %329 : vector<16x1xf32> to vector<16x32xf32>
    %331 = arith.mulf %326, %330 : vector<16x32xf32>
    %332 = vector.broadcast %311 : vector<1x32xf32> to vector<16x32xf32>
    %333 = arith.mulf %331, %332 : vector<16x32xf32>
    %334 = vector.broadcast %313 : vector<1x32xf32> to vector<16x32xf32>
    %335 = arith.addf %333, %334 : vector<16x32xf32>
    %c0_149 = arith.constant 0 : index
    %c1 = arith.constant 1 : index
    %c0_150 = arith.constant 0 : index
    %c0_151 = arith.constant 0 : index
    %336 = vector.load %arg2[%c0_149, %c1, %c0_150, %c0_151] : memref<1x2x32x32xf32, #tpu.memory_space<vmem>>, vector<1x1x32x32xf32>
    %337 = vector.shape_cast %336 : vector<1x1x32x32xf32> to vector<32x32xf32>
    %338 = arith.addf %335, %3 : vector<16x32xf32>
    %339 = arith.truncf %338 : vector<16x32xf32> to vector<16x32xbf16>
    %c1_152 = arith.constant 1 : index
    %c0_153 = arith.constant 0 : index
    %c0_154 = arith.constant 0 : index
    %340 = vector.load %arg5[%c1_152, %c0_153, %c0_154] : memref<2x32x64xbf16, #tpu.memory_space<vmem>>, vector<1x32x64xbf16>
    %341 = vector.shape_cast %340 : vector<1x32x64xbf16> to vector<32x64xbf16>
    %cst_155 = arith.constant dense<0.000000e+00> : vector<16x64xf32>
    %342 = tpu.matmul %339, %341, %cst_155 {dimension_numbers = #tpu.dot_dimension_numbers<[1], [0], [0], [1], [0, 0, 1, 1], [], []>} : vector<16x32xbf16>, vector<32x64xbf16>, vector<16x64xf32> -> vector<16x64xf32>
    %c1_156 = arith.constant 1 : index
    %c0_157 = arith.constant 0 : index
    %c0_158 = arith.constant 0 : index
    %343 = vector.load %arg6[%c1_156, %c0_157, %c0_158] : memref<2x1x64xf32, #tpu.memory_space<vmem>>, vector<1x1x64xf32>
    %344 = vector.shape_cast %343 : vector<1x1x64xf32> to vector<1x64xf32>
    %345 = vector.broadcast %344 : vector<1x64xf32> to vector<16x64xf32>
    %346 = arith.addf %342, %345 : vector<16x64xf32>
    %347 = arith.truncf %335 : vector<16x32xf32> to vector<16x32xbf16>
    %c1_159 = arith.constant 1 : index
    %c0_160 = arith.constant 0 : index
    %c0_161 = arith.constant 0 : index
    %348 = vector.load %arg7[%c1_159, %c0_160, %c0_161] : memref<2x32x32xbf16, #tpu.memory_space<vmem>>, vector<1x32x32xbf16>
    %349 = vector.shape_cast %348 : vector<1x32x32xbf16> to vector<32x32xbf16>
    %cst_162 = arith.constant dense<0.000000e+00> : vector<16x32xf32>
    %350 = tpu.matmul %347, %349, %cst_162 {dimension_numbers = #tpu.dot_dimension_numbers<[1], [0], [0], [1], [0, 0, 1, 1], [], []>} : vector<16x32xbf16>, vector<32x32xbf16>, vector<16x32xf32> -> vector<16x32xf32>
    %c1_163 = arith.constant 1 : index
    %c0_164 = arith.constant 0 : index
    %c0_165 = arith.constant 0 : index
    %351 = vector.load %arg8[%c1_163, %c0_164, %c0_165] : memref<2x1x32xf32, #tpu.memory_space<vmem>>, vector<1x1x32xf32>
    %352 = vector.shape_cast %351 : vector<1x1x32xf32> to vector<1x32xf32>
    %353 = vector.broadcast %352 : vector<1x32xf32> to vector<16x32xf32>
    %354 = arith.addf %350, %353 : vector<16x32xf32>
    %355 = vector.extract_strided_slice %346 {offsets = [0, 0], sizes = [16, 32], strides = [1, 1]} : vector<16x64xf32> to vector<16x32xf32>
    %356 = vector.extract_strided_slice %346 {offsets = [0, 32], sizes = [16, 32], strides = [1, 1]} : vector<16x64xf32> to vector<16x32xf32>
    %c1_166 = arith.constant 1 : index
    %c0_167 = arith.constant 0 : index
    %c0_168 = arith.constant 0 : index
    %357 = vector.load %arg9[%c1_166, %c0_167, %c0_168] : memref<2x32x32xbf16, #tpu.memory_space<vmem>>, vector<1x32x32xbf16>
    %358 = vector.shape_cast %357 : vector<1x32x32xbf16> to vector<32x32xbf16>
    %cst_169 = arith.constant 0.353553385 : f32
    %359 = vector.broadcast %cst_169 : f32 to vector<16x32xf32>
    %360 = arith.mulf %355, %359 : vector<16x32xf32>
    %361 = arith.truncf %360 : vector<16x32xf32> to vector<16x32xbf16>
    %362 = arith.truncf %356 : vector<16x32xf32> to vector<16x32xbf16>
    %363 = arith.truncf %354 : vector<16x32xf32> to vector<16x32xbf16>
    %364 = vector.extract_strided_slice %361 {offsets = [0, 0], sizes = [16, 8], strides = [1, 1]} : vector<16x32xbf16> to vector<16x8xbf16>
    %365 = vector.extract_strided_slice %362 {offsets = [0, 0], sizes = [16, 8], strides = [1, 1]} : vector<16x32xbf16> to vector<16x8xbf16>
    %cst_170 = arith.constant dense<0.000000e+00> : vector<16x16xf32>
    %366 = tpu.matmul %364, %365, %cst_170 {dimension_numbers = #tpu.dot_dimension_numbers<[1], [1], [0], [0], [0, 0, 1, 0], [], []>} : vector<16x8xbf16>, vector<16x8xbf16>, vector<16x16xf32> -> vector<16x16xf32>
    %367 = arith.addf %366, %15 : vector<16x16xf32>
    %cst_171 = arith.constant dense<0xFF800000> : vector<16xf32>
    %368 = vector.multi_reduction <maximumf>, %367, %cst_171 [1] : vector<16x16xf32> to vector<16xf32>
    %369 = vector.shape_cast %368 : vector<16xf32> to vector<16x1xf32>
    %370 = vector.broadcast %369 : vector<16x1xf32> to vector<16x16xf32>
    %371 = arith.subf %367, %370 : vector<16x16xf32>
    %372 = math.exp %371 : vector<16x16xf32>
    %cst_172 = arith.constant dense<0.000000e+00> : vector<16xf32>
    %373 = vector.multi_reduction <add>, %372, %cst_172 [1] : vector<16x16xf32> to vector<16xf32>
    %374 = vector.shape_cast %373 : vector<16xf32> to vector<16x1xf32>
    %375 = tpu.reciprocal %374 : vector<16x1xf32> -> vector<16x1xf32>
    %376 = vector.broadcast %375 : vector<16x1xf32> to vector<16x16xf32>
    %377 = arith.mulf %372, %376 : vector<16x16xf32>
    %378 = arith.truncf %377 : vector<16x16xf32> to vector<16x16xbf16>
    %379 = vector.extract_strided_slice %363 {offsets = [0, 0], sizes = [16, 8], strides = [1, 1]} : vector<16x32xbf16> to vector<16x8xbf16>
    %cst_173 = arith.constant dense<0.000000e+00> : vector<16x8xf32>
    %380 = tpu.matmul %378, %379, %cst_173 {dimension_numbers = #tpu.dot_dimension_numbers<[1], [0], [0], [1], [0, 0, 1, 1], [], []>} : vector<16x16xbf16>, vector<16x8xbf16>, vector<16x8xf32> -> vector<16x8xf32>
    %381 = vector.extract_strided_slice %361 {offsets = [0, 8], sizes = [16, 8], strides = [1, 1]} : vector<16x32xbf16> to vector<16x8xbf16>
    %382 = vector.extract_strided_slice %362 {offsets = [0, 8], sizes = [16, 8], strides = [1, 1]} : vector<16x32xbf16> to vector<16x8xbf16>
    %cst_174 = arith.constant dense<0.000000e+00> : vector<16x16xf32>
    %383 = tpu.matmul %381, %382, %cst_174 {dimension_numbers = #tpu.dot_dimension_numbers<[1], [1], [0], [0], [0, 0, 1, 0], [], []>} : vector<16x8xbf16>, vector<16x8xbf16>, vector<16x16xf32> -> vector<16x16xf32>
    %384 = arith.addf %383, %15 : vector<16x16xf32>
    %cst_175 = arith.constant dense<0xFF800000> : vector<16xf32>
    %385 = vector.multi_reduction <maximumf>, %384, %cst_175 [1] : vector<16x16xf32> to vector<16xf32>
    %386 = vector.shape_cast %385 : vector<16xf32> to vector<16x1xf32>
    %387 = vector.broadcast %386 : vector<16x1xf32> to vector<16x16xf32>
    %388 = arith.subf %384, %387 : vector<16x16xf32>
    %389 = math.exp %388 : vector<16x16xf32>
    %cst_176 = arith.constant dense<0.000000e+00> : vector<16xf32>
    %390 = vector.multi_reduction <add>, %389, %cst_176 [1] : vector<16x16xf32> to vector<16xf32>
    %391 = vector.shape_cast %390 : vector<16xf32> to vector<16x1xf32>
    %392 = tpu.reciprocal %391 : vector<16x1xf32> -> vector<16x1xf32>
    %393 = vector.broadcast %392 : vector<16x1xf32> to vector<16x16xf32>
    %394 = arith.mulf %389, %393 : vector<16x16xf32>
    %395 = arith.truncf %394 : vector<16x16xf32> to vector<16x16xbf16>
    %396 = vector.extract_strided_slice %363 {offsets = [0, 8], sizes = [16, 8], strides = [1, 1]} : vector<16x32xbf16> to vector<16x8xbf16>
    %cst_177 = arith.constant dense<0.000000e+00> : vector<16x8xf32>
    %397 = tpu.matmul %395, %396, %cst_177 {dimension_numbers = #tpu.dot_dimension_numbers<[1], [0], [0], [1], [0, 0, 1, 1], [], []>} : vector<16x16xbf16>, vector<16x8xbf16>, vector<16x8xf32> -> vector<16x8xf32>
    %398 = vector.extract_strided_slice %361 {offsets = [0, 16], sizes = [16, 8], strides = [1, 1]} : vector<16x32xbf16> to vector<16x8xbf16>
    %399 = vector.extract_strided_slice %362 {offsets = [0, 16], sizes = [16, 8], strides = [1, 1]} : vector<16x32xbf16> to vector<16x8xbf16>
    %cst_178 = arith.constant dense<0.000000e+00> : vector<16x16xf32>
    %400 = tpu.matmul %398, %399, %cst_178 {dimension_numbers = #tpu.dot_dimension_numbers<[1], [1], [0], [0], [0, 0, 1, 0], [], []>} : vector<16x8xbf16>, vector<16x8xbf16>, vector<16x16xf32> -> vector<16x16xf32>
    %401 = arith.addf %400, %15 : vector<16x16xf32>
    %cst_179 = arith.constant dense<0xFF800000> : vector<16xf32>
    %402 = vector.multi_reduction <maximumf>, %401, %cst_179 [1] : vector<16x16xf32> to vector<16xf32>
    %403 = vector.shape_cast %402 : vector<16xf32> to vector<16x1xf32>
    %404 = vector.broadcast %403 : vector<16x1xf32> to vector<16x16xf32>
    %405 = arith.subf %401, %404 : vector<16x16xf32>
    %406 = math.exp %405 : vector<16x16xf32>
    %cst_180 = arith.constant dense<0.000000e+00> : vector<16xf32>
    %407 = vector.multi_reduction <add>, %406, %cst_180 [1] : vector<16x16xf32> to vector<16xf32>
    %408 = vector.shape_cast %407 : vector<16xf32> to vector<16x1xf32>
    %409 = tpu.reciprocal %408 : vector<16x1xf32> -> vector<16x1xf32>
    %410 = vector.broadcast %409 : vector<16x1xf32> to vector<16x16xf32>
    %411 = arith.mulf %406, %410 : vector<16x16xf32>
    %412 = arith.truncf %411 : vector<16x16xf32> to vector<16x16xbf16>
    %413 = vector.extract_strided_slice %363 {offsets = [0, 16], sizes = [16, 8], strides = [1, 1]} : vector<16x32xbf16> to vector<16x8xbf16>
    %cst_181 = arith.constant dense<0.000000e+00> : vector<16x8xf32>
    %414 = tpu.matmul %412, %413, %cst_181 {dimension_numbers = #tpu.dot_dimension_numbers<[1], [0], [0], [1], [0, 0, 1, 1], [], []>} : vector<16x16xbf16>, vector<16x8xbf16>, vector<16x8xf32> -> vector<16x8xf32>
    %415 = vector.extract_strided_slice %361 {offsets = [0, 24], sizes = [16, 8], strides = [1, 1]} : vector<16x32xbf16> to vector<16x8xbf16>
    %416 = vector.extract_strided_slice %362 {offsets = [0, 24], sizes = [16, 8], strides = [1, 1]} : vector<16x32xbf16> to vector<16x8xbf16>
    %cst_182 = arith.constant dense<0.000000e+00> : vector<16x16xf32>
    %417 = tpu.matmul %415, %416, %cst_182 {dimension_numbers = #tpu.dot_dimension_numbers<[1], [1], [0], [0], [0, 0, 1, 0], [], []>} : vector<16x8xbf16>, vector<16x8xbf16>, vector<16x16xf32> -> vector<16x16xf32>
    %418 = arith.addf %417, %15 : vector<16x16xf32>
    %cst_183 = arith.constant dense<0xFF800000> : vector<16xf32>
    %419 = vector.multi_reduction <maximumf>, %418, %cst_183 [1] : vector<16x16xf32> to vector<16xf32>
    %420 = vector.shape_cast %419 : vector<16xf32> to vector<16x1xf32>
    %421 = vector.broadcast %420 : vector<16x1xf32> to vector<16x16xf32>
    %422 = arith.subf %418, %421 : vector<16x16xf32>
    %423 = math.exp %422 : vector<16x16xf32>
    %cst_184 = arith.constant dense<0.000000e+00> : vector<16xf32>
    %424 = vector.multi_reduction <add>, %423, %cst_184 [1] : vector<16x16xf32> to vector<16xf32>
    %425 = vector.shape_cast %424 : vector<16xf32> to vector<16x1xf32>
    %426 = tpu.reciprocal %425 : vector<16x1xf32> -> vector<16x1xf32>
    %427 = vector.broadcast %426 : vector<16x1xf32> to vector<16x16xf32>
    %428 = arith.mulf %423, %427 : vector<16x16xf32>
    %429 = arith.truncf %428 : vector<16x16xf32> to vector<16x16xbf16>
    %430 = vector.extract_strided_slice %363 {offsets = [0, 24], sizes = [16, 8], strides = [1, 1]} : vector<16x32xbf16> to vector<16x8xbf16>
    %cst_185 = arith.constant dense<0.000000e+00> : vector<16x8xf32>
    %431 = tpu.matmul %429, %430, %cst_185 {dimension_numbers = #tpu.dot_dimension_numbers<[1], [0], [0], [1], [0, 0, 1, 1], [], []>} : vector<16x16xbf16>, vector<16x8xbf16>, vector<16x8xf32> -> vector<16x8xf32>
    %432 = tpu.concatenate %380, %397, %414, %431 in 1 : vector<16x8xf32>, vector<16x8xf32>, vector<16x8xf32>, vector<16x8xf32> -> vector<16x32xf32>
    %433 = arith.truncf %432 : vector<16x32xf32> to vector<16x32xbf16>
    %cst_186 = arith.constant dense<0.000000e+00> : vector<16x32xf32>
    %434 = tpu.matmul %433, %358, %cst_186 {dimension_numbers = #tpu.dot_dimension_numbers<[1], [0], [0], [1], [0, 0, 1, 1], [], []>} : vector<16x32xbf16>, vector<32x32xbf16>, vector<16x32xf32> -> vector<16x32xf32>
    %c1_187 = arith.constant 1 : index
    %c0_188 = arith.constant 0 : index
    %c0_189 = arith.constant 0 : index
    %435 = vector.load %arg10[%c1_187, %c0_188, %c0_189] : memref<2x1x32xf32, #tpu.memory_space<vmem>>, vector<1x1x32xf32>
    %436 = vector.shape_cast %435 : vector<1x1x32xf32> to vector<1x32xf32>
    %437 = vector.broadcast %436 : vector<1x32xf32> to vector<16x32xf32>
    %438 = arith.addf %434, %437 : vector<16x32xf32>
    %439 = arith.addf %335, %438 : vector<16x32xf32>
    %c1_190 = arith.constant 1 : index
    %c0_191 = arith.constant 0 : index
    %c0_192 = arith.constant 0 : index
    %440 = vector.load %arg11[%c1_190, %c0_191, %c0_192] : memref<2x1x32xf32, #tpu.memory_space<vmem>>, vector<1x1x32xf32>
    %441 = vector.shape_cast %440 : vector<1x1x32xf32> to vector<1x32xf32>
    %c1_193 = arith.constant 1 : index
    %c0_194 = arith.constant 0 : index
    %c0_195 = arith.constant 0 : index
    %442 = vector.load %arg12[%c1_193, %c0_194, %c0_195] : memref<2x1x32xf32, #tpu.memory_space<vmem>>, vector<1x1x32xf32>
    %443 = vector.shape_cast %442 : vector<1x1x32xf32> to vector<1x32xf32>
    %cst_196 = arith.constant dense<0.000000e+00> : vector<16xf32>
    %444 = vector.multi_reduction <add>, %439, %cst_196 [1] : vector<16x32xf32> to vector<16xf32>
    %445 = vector.shape_cast %444 : vector<16xf32> to vector<16x1xf32>
    %cst_197 = arith.constant 3.200000e+01 : f32
    %446 = vector.broadcast %cst_197 : f32 to vector<16x1xf32>
    %447 = arith.divf %445, %446 : vector<16x1xf32>
    %448 = vector.broadcast %447 : vector<16x1xf32> to vector<16x32xf32>
    %449 = arith.subf %439, %448 : vector<16x32xf32>
    %450 = arith.mulf %449, %449 : vector<16x32xf32>
    %cst_198 = arith.constant dense<0.000000e+00> : vector<16xf32>
    %451 = vector.multi_reduction <add>, %450, %cst_198 [1] : vector<16x32xf32> to vector<16xf32>
    %452 = vector.shape_cast %451 : vector<16xf32> to vector<16x1xf32>
    %cst_199 = arith.constant 3.200000e+01 : f32
    %453 = vector.broadcast %cst_199 : f32 to vector<16x1xf32>
    %454 = arith.divf %452, %453 : vector<16x1xf32>
    %455 = vector.broadcast %447 : vector<16x1xf32> to vector<16x32xf32>
    %456 = arith.subf %439, %455 : vector<16x32xf32>
    %cst_200 = arith.constant 9.99999974E-6 : f32
    %457 = vector.broadcast %cst_200 : f32 to vector<16x1xf32>
    %458 = arith.addf %454, %457 : vector<16x1xf32>
    %459 = math.rsqrt %458 : vector<16x1xf32>
    %460 = vector.broadcast %459 : vector<16x1xf32> to vector<16x32xf32>
    %461 = arith.mulf %456, %460 : vector<16x32xf32>
    %462 = vector.broadcast %441 : vector<1x32xf32> to vector<16x32xf32>
    %463 = arith.mulf %461, %462 : vector<16x32xf32>
    %464 = vector.broadcast %443 : vector<1x32xf32> to vector<16x32xf32>
    %465 = arith.addf %463, %464 : vector<16x32xf32>
    %466 = arith.addf %465, %3 : vector<16x32xf32>
    %467 = arith.truncf %466 : vector<16x32xf32> to vector<16x32xbf16>
    %c1_201 = arith.constant 1 : index
    %c0_202 = arith.constant 0 : index
    %c0_203 = arith.constant 0 : index
    %468 = vector.load %arg13[%c1_201, %c0_202, %c0_203] : memref<2x32x32xbf16, #tpu.memory_space<vmem>>, vector<1x32x32xbf16>
    %469 = vector.shape_cast %468 : vector<1x32x32xbf16> to vector<32x32xbf16>
    %cst_204 = arith.constant dense<0.000000e+00> : vector<16x32xf32>
    %470 = tpu.matmul %467, %469, %cst_204 {dimension_numbers = #tpu.dot_dimension_numbers<[1], [0], [0], [1], [0, 0, 1, 1], [], []>} : vector<16x32xbf16>, vector<32x32xbf16>, vector<16x32xf32> -> vector<16x32xf32>
    %c1_205 = arith.constant 1 : index
    %c0_206 = arith.constant 0 : index
    %c0_207 = arith.constant 0 : index
    %471 = vector.load %arg14[%c1_205, %c0_206, %c0_207] : memref<2x1x32xf32, #tpu.memory_space<vmem>>, vector<1x1x32xf32>
    %472 = vector.shape_cast %471 : vector<1x1x32xf32> to vector<1x32xf32>
    %473 = vector.broadcast %472 : vector<1x32xf32> to vector<16x32xf32>
    %474 = arith.addf %470, %473 : vector<16x32xf32>
    %475 = arith.addf %337, %5 : vector<32x32xf32>
    %476 = arith.truncf %475 : vector<32x32xf32> to vector<32x32xbf16>
    %c1_208 = arith.constant 1 : index
    %c0_209 = arith.constant 0 : index
    %c0_210 = arith.constant 0 : index
    %477 = vector.load %arg15[%c1_208, %c0_209, %c0_210] : memref<2x32x32xbf16, #tpu.memory_space<vmem>>, vector<1x32x32xbf16>
    %478 = vector.shape_cast %477 : vector<1x32x32xbf16> to vector<32x32xbf16>
    %cst_211 = arith.constant dense<0.000000e+00> : vector<32x32xf32>
    %479 = tpu.matmul %476, %478, %cst_211 {dimension_numbers = #tpu.dot_dimension_numbers<[1], [0], [0], [1], [0, 0, 1, 1], [], []>} : vector<32x32xbf16>, vector<32x32xbf16>, vector<32x32xf32> -> vector<32x32xf32>
    %c1_212 = arith.constant 1 : index
    %c0_213 = arith.constant 0 : index
    %c0_214 = arith.constant 0 : index
    %480 = vector.load %arg16[%c1_212, %c0_213, %c0_214] : memref<2x1x32xf32, #tpu.memory_space<vmem>>, vector<1x1x32xf32>
    %481 = vector.shape_cast %480 : vector<1x1x32xf32> to vector<1x32xf32>
    %482 = vector.broadcast %481 : vector<1x32xf32> to vector<32x32xf32>
    %483 = arith.addf %479, %482 : vector<32x32xf32>
    %484 = arith.truncf %337 : vector<32x32xf32> to vector<32x32xbf16>
    %c1_215 = arith.constant 1 : index
    %c0_216 = arith.constant 0 : index
    %c0_217 = arith.constant 0 : index
    %485 = vector.load %arg17[%c1_215, %c0_216, %c0_217] : memref<2x32x32xbf16, #tpu.memory_space<vmem>>, vector<1x32x32xbf16>
    %486 = vector.shape_cast %485 : vector<1x32x32xbf16> to vector<32x32xbf16>
    %cst_218 = arith.constant dense<0.000000e+00> : vector<32x32xf32>
    %487 = tpu.matmul %484, %486, %cst_218 {dimension_numbers = #tpu.dot_dimension_numbers<[1], [0], [0], [1], [0, 0, 1, 1], [], []>} : vector<32x32xbf16>, vector<32x32xbf16>, vector<32x32xf32> -> vector<32x32xf32>
    %c1_219 = arith.constant 1 : index
    %c0_220 = arith.constant 0 : index
    %c0_221 = arith.constant 0 : index
    %488 = vector.load %arg18[%c1_219, %c0_220, %c0_221] : memref<2x1x32xf32, #tpu.memory_space<vmem>>, vector<1x1x32xf32>
    %489 = vector.shape_cast %488 : vector<1x1x32xf32> to vector<1x32xf32>
    %490 = vector.broadcast %489 : vector<1x32xf32> to vector<32x32xf32>
    %491 = arith.addf %487, %490 : vector<32x32xf32>
    %c1_222 = arith.constant 1 : index
    %c0_223 = arith.constant 0 : index
    %c0_224 = arith.constant 0 : index
    %492 = vector.load %arg19[%c1_222, %c0_223, %c0_224] : memref<2x32x32xbf16, #tpu.memory_space<vmem>>, vector<1x32x32xbf16>
    %493 = vector.shape_cast %492 : vector<1x32x32xbf16> to vector<32x32xbf16>
    %cst_225 = arith.constant 0.353553385 : f32
    %494 = vector.broadcast %cst_225 : f32 to vector<16x32xf32>
    %495 = arith.mulf %474, %494 : vector<16x32xf32>
    %496 = arith.truncf %495 : vector<16x32xf32> to vector<16x32xbf16>
    %497 = arith.truncf %483 : vector<32x32xf32> to vector<32x32xbf16>
    %498 = arith.truncf %491 : vector<32x32xf32> to vector<32x32xbf16>
    %499 = vector.extract_strided_slice %496 {offsets = [0, 0], sizes = [16, 8], strides = [1, 1]} : vector<16x32xbf16> to vector<16x8xbf16>
    %500 = vector.extract_strided_slice %497 {offsets = [0, 0], sizes = [32, 8], strides = [1, 1]} : vector<32x32xbf16> to vector<32x8xbf16>
    %cst_226 = arith.constant dense<0.000000e+00> : vector<16x32xf32>
    %501 = tpu.matmul %499, %500, %cst_226 {dimension_numbers = #tpu.dot_dimension_numbers<[1], [1], [0], [0], [0, 0, 1, 0], [], []>} : vector<16x8xbf16>, vector<32x8xbf16>, vector<16x32xf32> -> vector<16x32xf32>
    %502 = arith.addf %501, %25 : vector<16x32xf32>
    %cst_227 = arith.constant dense<0xFF800000> : vector<16xf32>
    %503 = vector.multi_reduction <maximumf>, %502, %cst_227 [1] : vector<16x32xf32> to vector<16xf32>
    %504 = vector.shape_cast %503 : vector<16xf32> to vector<16x1xf32>
    %505 = vector.broadcast %504 : vector<16x1xf32> to vector<16x32xf32>
    %506 = arith.subf %502, %505 : vector<16x32xf32>
    %507 = math.exp %506 : vector<16x32xf32>
    %cst_228 = arith.constant dense<0.000000e+00> : vector<16xf32>
    %508 = vector.multi_reduction <add>, %507, %cst_228 [1] : vector<16x32xf32> to vector<16xf32>
    %509 = vector.shape_cast %508 : vector<16xf32> to vector<16x1xf32>
    %510 = tpu.reciprocal %509 : vector<16x1xf32> -> vector<16x1xf32>
    %511 = vector.broadcast %510 : vector<16x1xf32> to vector<16x32xf32>
    %512 = arith.mulf %507, %511 : vector<16x32xf32>
    %513 = arith.truncf %512 : vector<16x32xf32> to vector<16x32xbf16>
    %514 = vector.extract_strided_slice %498 {offsets = [0, 0], sizes = [32, 8], strides = [1, 1]} : vector<32x32xbf16> to vector<32x8xbf16>
    %cst_229 = arith.constant dense<0.000000e+00> : vector<16x8xf32>
    %515 = tpu.matmul %513, %514, %cst_229 {dimension_numbers = #tpu.dot_dimension_numbers<[1], [0], [0], [1], [0, 0, 1, 1], [], []>} : vector<16x32xbf16>, vector<32x8xbf16>, vector<16x8xf32> -> vector<16x8xf32>
    %516 = vector.extract_strided_slice %496 {offsets = [0, 8], sizes = [16, 8], strides = [1, 1]} : vector<16x32xbf16> to vector<16x8xbf16>
    %517 = vector.extract_strided_slice %497 {offsets = [0, 8], sizes = [32, 8], strides = [1, 1]} : vector<32x32xbf16> to vector<32x8xbf16>
    %cst_230 = arith.constant dense<0.000000e+00> : vector<16x32xf32>
    %518 = tpu.matmul %516, %517, %cst_230 {dimension_numbers = #tpu.dot_dimension_numbers<[1], [1], [0], [0], [0, 0, 1, 0], [], []>} : vector<16x8xbf16>, vector<32x8xbf16>, vector<16x32xf32> -> vector<16x32xf32>
    %519 = arith.addf %518, %25 : vector<16x32xf32>
    %cst_231 = arith.constant dense<0xFF800000> : vector<16xf32>
    %520 = vector.multi_reduction <maximumf>, %519, %cst_231 [1] : vector<16x32xf32> to vector<16xf32>
    %521 = vector.shape_cast %520 : vector<16xf32> to vector<16x1xf32>
    %522 = vector.broadcast %521 : vector<16x1xf32> to vector<16x32xf32>
    %523 = arith.subf %519, %522 : vector<16x32xf32>
    %524 = math.exp %523 : vector<16x32xf32>
    %cst_232 = arith.constant dense<0.000000e+00> : vector<16xf32>
    %525 = vector.multi_reduction <add>, %524, %cst_232 [1] : vector<16x32xf32> to vector<16xf32>
    %526 = vector.shape_cast %525 : vector<16xf32> to vector<16x1xf32>
    %527 = tpu.reciprocal %526 : vector<16x1xf32> -> vector<16x1xf32>
    %528 = vector.broadcast %527 : vector<16x1xf32> to vector<16x32xf32>
    %529 = arith.mulf %524, %528 : vector<16x32xf32>
    %530 = arith.truncf %529 : vector<16x32xf32> to vector<16x32xbf16>
    %531 = vector.extract_strided_slice %498 {offsets = [0, 8], sizes = [32, 8], strides = [1, 1]} : vector<32x32xbf16> to vector<32x8xbf16>
    %cst_233 = arith.constant dense<0.000000e+00> : vector<16x8xf32>
    %532 = tpu.matmul %530, %531, %cst_233 {dimension_numbers = #tpu.dot_dimension_numbers<[1], [0], [0], [1], [0, 0, 1, 1], [], []>} : vector<16x32xbf16>, vector<32x8xbf16>, vector<16x8xf32> -> vector<16x8xf32>
    %533 = vector.extract_strided_slice %496 {offsets = [0, 16], sizes = [16, 8], strides = [1, 1]} : vector<16x32xbf16> to vector<16x8xbf16>
    %534 = vector.extract_strided_slice %497 {offsets = [0, 16], sizes = [32, 8], strides = [1, 1]} : vector<32x32xbf16> to vector<32x8xbf16>
    %cst_234 = arith.constant dense<0.000000e+00> : vector<16x32xf32>
    %535 = tpu.matmul %533, %534, %cst_234 {dimension_numbers = #tpu.dot_dimension_numbers<[1], [1], [0], [0], [0, 0, 1, 0], [], []>} : vector<16x8xbf16>, vector<32x8xbf16>, vector<16x32xf32> -> vector<16x32xf32>
    %536 = arith.addf %535, %25 : vector<16x32xf32>
    %cst_235 = arith.constant dense<0xFF800000> : vector<16xf32>
    %537 = vector.multi_reduction <maximumf>, %536, %cst_235 [1] : vector<16x32xf32> to vector<16xf32>
    %538 = vector.shape_cast %537 : vector<16xf32> to vector<16x1xf32>
    %539 = vector.broadcast %538 : vector<16x1xf32> to vector<16x32xf32>
    %540 = arith.subf %536, %539 : vector<16x32xf32>
    %541 = math.exp %540 : vector<16x32xf32>
    %cst_236 = arith.constant dense<0.000000e+00> : vector<16xf32>
    %542 = vector.multi_reduction <add>, %541, %cst_236 [1] : vector<16x32xf32> to vector<16xf32>
    %543 = vector.shape_cast %542 : vector<16xf32> to vector<16x1xf32>
    %544 = tpu.reciprocal %543 : vector<16x1xf32> -> vector<16x1xf32>
    %545 = vector.broadcast %544 : vector<16x1xf32> to vector<16x32xf32>
    %546 = arith.mulf %541, %545 : vector<16x32xf32>
    %547 = arith.truncf %546 : vector<16x32xf32> to vector<16x32xbf16>
    %548 = vector.extract_strided_slice %498 {offsets = [0, 16], sizes = [32, 8], strides = [1, 1]} : vector<32x32xbf16> to vector<32x8xbf16>
    %cst_237 = arith.constant dense<0.000000e+00> : vector<16x8xf32>
    %549 = tpu.matmul %547, %548, %cst_237 {dimension_numbers = #tpu.dot_dimension_numbers<[1], [0], [0], [1], [0, 0, 1, 1], [], []>} : vector<16x32xbf16>, vector<32x8xbf16>, vector<16x8xf32> -> vector<16x8xf32>
    %550 = vector.extract_strided_slice %496 {offsets = [0, 24], sizes = [16, 8], strides = [1, 1]} : vector<16x32xbf16> to vector<16x8xbf16>
    %551 = vector.extract_strided_slice %497 {offsets = [0, 24], sizes = [32, 8], strides = [1, 1]} : vector<32x32xbf16> to vector<32x8xbf16>
    %cst_238 = arith.constant dense<0.000000e+00> : vector<16x32xf32>
    %552 = tpu.matmul %550, %551, %cst_238 {dimension_numbers = #tpu.dot_dimension_numbers<[1], [1], [0], [0], [0, 0, 1, 0], [], []>} : vector<16x8xbf16>, vector<32x8xbf16>, vector<16x32xf32> -> vector<16x32xf32>
    %553 = arith.addf %552, %25 : vector<16x32xf32>
    %cst_239 = arith.constant dense<0xFF800000> : vector<16xf32>
    %554 = vector.multi_reduction <maximumf>, %553, %cst_239 [1] : vector<16x32xf32> to vector<16xf32>
    %555 = vector.shape_cast %554 : vector<16xf32> to vector<16x1xf32>
    %556 = vector.broadcast %555 : vector<16x1xf32> to vector<16x32xf32>
    %557 = arith.subf %553, %556 : vector<16x32xf32>
    %558 = math.exp %557 : vector<16x32xf32>
    %cst_240 = arith.constant dense<0.000000e+00> : vector<16xf32>
    %559 = vector.multi_reduction <add>, %558, %cst_240 [1] : vector<16x32xf32> to vector<16xf32>
    %560 = vector.shape_cast %559 : vector<16xf32> to vector<16x1xf32>
    %561 = tpu.reciprocal %560 : vector<16x1xf32> -> vector<16x1xf32>
    %562 = vector.broadcast %561 : vector<16x1xf32> to vector<16x32xf32>
    %563 = arith.mulf %558, %562 : vector<16x32xf32>
    %564 = arith.truncf %563 : vector<16x32xf32> to vector<16x32xbf16>
    %565 = vector.extract_strided_slice %498 {offsets = [0, 24], sizes = [32, 8], strides = [1, 1]} : vector<32x32xbf16> to vector<32x8xbf16>
    %cst_241 = arith.constant dense<0.000000e+00> : vector<16x8xf32>
    %566 = tpu.matmul %564, %565, %cst_241 {dimension_numbers = #tpu.dot_dimension_numbers<[1], [0], [0], [1], [0, 0, 1, 1], [], []>} : vector<16x32xbf16>, vector<32x8xbf16>, vector<16x8xf32> -> vector<16x8xf32>
    %567 = tpu.concatenate %515, %532, %549, %566 in 1 : vector<16x8xf32>, vector<16x8xf32>, vector<16x8xf32>, vector<16x8xf32> -> vector<16x32xf32>
    %568 = arith.truncf %567 : vector<16x32xf32> to vector<16x32xbf16>
    %cst_242 = arith.constant dense<0.000000e+00> : vector<16x32xf32>
    %569 = tpu.matmul %568, %493, %cst_242 {dimension_numbers = #tpu.dot_dimension_numbers<[1], [0], [0], [1], [0, 0, 1, 1], [], []>} : vector<16x32xbf16>, vector<32x32xbf16>, vector<16x32xf32> -> vector<16x32xf32>
    %c1_243 = arith.constant 1 : index
    %c0_244 = arith.constant 0 : index
    %c0_245 = arith.constant 0 : index
    %570 = vector.load %arg20[%c1_243, %c0_244, %c0_245] : memref<2x1x32xf32, #tpu.memory_space<vmem>>, vector<1x1x32xf32>
    %571 = vector.shape_cast %570 : vector<1x1x32xf32> to vector<1x32xf32>
    %572 = vector.broadcast %571 : vector<1x32xf32> to vector<16x32xf32>
    %573 = arith.addf %569, %572 : vector<16x32xf32>
    %574 = arith.addf %465, %573 : vector<16x32xf32>
    %c1_246 = arith.constant 1 : index
    %c0_247 = arith.constant 0 : index
    %c0_248 = arith.constant 0 : index
    %575 = vector.load %arg21[%c1_246, %c0_247, %c0_248] : memref<2x1x32xf32, #tpu.memory_space<vmem>>, vector<1x1x32xf32>
    %576 = vector.shape_cast %575 : vector<1x1x32xf32> to vector<1x32xf32>
    %c1_249 = arith.constant 1 : index
    %c0_250 = arith.constant 0 : index
    %c0_251 = arith.constant 0 : index
    %577 = vector.load %arg22[%c1_249, %c0_250, %c0_251] : memref<2x1x32xf32, #tpu.memory_space<vmem>>, vector<1x1x32xf32>
    %578 = vector.shape_cast %577 : vector<1x1x32xf32> to vector<1x32xf32>
    %cst_252 = arith.constant dense<0.000000e+00> : vector<16xf32>
    %579 = vector.multi_reduction <add>, %574, %cst_252 [1] : vector<16x32xf32> to vector<16xf32>
    %580 = vector.shape_cast %579 : vector<16xf32> to vector<16x1xf32>
    %cst_253 = arith.constant 3.200000e+01 : f32
    %581 = vector.broadcast %cst_253 : f32 to vector<16x1xf32>
    %582 = arith.divf %580, %581 : vector<16x1xf32>
    %583 = vector.broadcast %582 : vector<16x1xf32> to vector<16x32xf32>
    %584 = arith.subf %574, %583 : vector<16x32xf32>
    %585 = arith.mulf %584, %584 : vector<16x32xf32>
    %cst_254 = arith.constant dense<0.000000e+00> : vector<16xf32>
    %586 = vector.multi_reduction <add>, %585, %cst_254 [1] : vector<16x32xf32> to vector<16xf32>
    %587 = vector.shape_cast %586 : vector<16xf32> to vector<16x1xf32>
    %cst_255 = arith.constant 3.200000e+01 : f32
    %588 = vector.broadcast %cst_255 : f32 to vector<16x1xf32>
    %589 = arith.divf %587, %588 : vector<16x1xf32>
    %590 = vector.broadcast %582 : vector<16x1xf32> to vector<16x32xf32>
    %591 = arith.subf %574, %590 : vector<16x32xf32>
    %cst_256 = arith.constant 9.99999974E-6 : f32
    %592 = vector.broadcast %cst_256 : f32 to vector<16x1xf32>
    %593 = arith.addf %589, %592 : vector<16x1xf32>
    %594 = math.rsqrt %593 : vector<16x1xf32>
    %595 = vector.broadcast %594 : vector<16x1xf32> to vector<16x32xf32>
    %596 = arith.mulf %591, %595 : vector<16x32xf32>
    %597 = vector.broadcast %576 : vector<1x32xf32> to vector<16x32xf32>
    %598 = arith.mulf %596, %597 : vector<16x32xf32>
    %599 = vector.broadcast %578 : vector<1x32xf32> to vector<16x32xf32>
    %600 = arith.addf %598, %599 : vector<16x32xf32>
    %601 = arith.truncf %600 : vector<16x32xf32> to vector<16x32xbf16>
    %c1_257 = arith.constant 1 : index
    %c0_258 = arith.constant 0 : index
    %c0_259 = arith.constant 0 : index
    %602 = vector.load %arg23[%c1_257, %c0_258, %c0_259] : memref<2x32x64xbf16, #tpu.memory_space<vmem>>, vector<1x32x64xbf16>
    %603 = vector.shape_cast %602 : vector<1x32x64xbf16> to vector<32x64xbf16>
    %cst_260 = arith.constant dense<0.000000e+00> : vector<16x64xf32>
    %604 = tpu.matmul %601, %603, %cst_260 {dimension_numbers = #tpu.dot_dimension_numbers<[1], [0], [0], [1], [0, 0, 1, 1], [], []>} : vector<16x32xbf16>, vector<32x64xbf16>, vector<16x64xf32> -> vector<16x64xf32>
    %c1_261 = arith.constant 1 : index
    %c0_262 = arith.constant 0 : index
    %c0_263 = arith.constant 0 : index
    %605 = vector.load %arg24[%c1_261, %c0_262, %c0_263] : memref<2x1x64xf32, #tpu.memory_space<vmem>>, vector<1x1x64xf32>
    %606 = vector.shape_cast %605 : vector<1x1x64xf32> to vector<1x64xf32>
    %607 = vector.broadcast %606 : vector<1x64xf32> to vector<16x64xf32>
    %608 = arith.addf %604, %607 : vector<16x64xf32>
    %cst_264 = arith.constant 0.000000e+00 : f32
    %609 = vector.broadcast %cst_264 : f32 to vector<16x64xf32>
    %610 = arith.maximumf %608, %609 : vector<16x64xf32>
    %611 = arith.truncf %610 : vector<16x64xf32> to vector<16x64xbf16>
    %c1_265 = arith.constant 1 : index
    %c0_266 = arith.constant 0 : index
    %c0_267 = arith.constant 0 : index
    %612 = vector.load %arg25[%c1_265, %c0_266, %c0_267] : memref<2x64x32xbf16, #tpu.memory_space<vmem>>, vector<1x64x32xbf16>
    %613 = vector.shape_cast %612 : vector<1x64x32xbf16> to vector<64x32xbf16>
    %cst_268 = arith.constant dense<0.000000e+00> : vector<16x32xf32>
    %614 = tpu.matmul %611, %613, %cst_268 {dimension_numbers = #tpu.dot_dimension_numbers<[1], [0], [0], [1], [0, 0, 1, 1], [], []>} : vector<16x64xbf16>, vector<64x32xbf16>, vector<16x32xf32> -> vector<16x32xf32>
    %c1_269 = arith.constant 1 : index
    %c0_270 = arith.constant 0 : index
    %c0_271 = arith.constant 0 : index
    %615 = vector.load %arg26[%c1_269, %c0_270, %c0_271] : memref<2x1x32xf32, #tpu.memory_space<vmem>>, vector<1x1x32xf32>
    %616 = vector.shape_cast %615 : vector<1x1x32xf32> to vector<1x32xf32>
    %617 = vector.broadcast %616 : vector<1x32xf32> to vector<16x32xf32>
    %618 = arith.addf %614, %617 : vector<16x32xf32>
    %619 = arith.addf %600, %618 : vector<16x32xf32>
    %c1_272 = arith.constant 1 : index
    %c0_273 = arith.constant 0 : index
    %c0_274 = arith.constant 0 : index
    %620 = vector.load %arg27[%c1_272, %c0_273, %c0_274] : memref<2x1x32xf32, #tpu.memory_space<vmem>>, vector<1x1x32xf32>
    %621 = vector.shape_cast %620 : vector<1x1x32xf32> to vector<1x32xf32>
    %c1_275 = arith.constant 1 : index
    %c0_276 = arith.constant 0 : index
    %c0_277 = arith.constant 0 : index
    %622 = vector.load %arg28[%c1_275, %c0_276, %c0_277] : memref<2x1x32xf32, #tpu.memory_space<vmem>>, vector<1x1x32xf32>
    %623 = vector.shape_cast %622 : vector<1x1x32xf32> to vector<1x32xf32>
    %cst_278 = arith.constant dense<0.000000e+00> : vector<16xf32>
    %624 = vector.multi_reduction <add>, %619, %cst_278 [1] : vector<16x32xf32> to vector<16xf32>
    %625 = vector.shape_cast %624 : vector<16xf32> to vector<16x1xf32>
    %cst_279 = arith.constant 3.200000e+01 : f32
    %626 = vector.broadcast %cst_279 : f32 to vector<16x1xf32>
    %627 = arith.divf %625, %626 : vector<16x1xf32>
    %628 = vector.broadcast %627 : vector<16x1xf32> to vector<16x32xf32>
    %629 = arith.subf %619, %628 : vector<16x32xf32>
    %630 = arith.mulf %629, %629 : vector<16x32xf32>
    %cst_280 = arith.constant dense<0.000000e+00> : vector<16xf32>
    %631 = vector.multi_reduction <add>, %630, %cst_280 [1] : vector<16x32xf32> to vector<16xf32>
    %632 = vector.shape_cast %631 : vector<16xf32> to vector<16x1xf32>
    %cst_281 = arith.constant 3.200000e+01 : f32
    %633 = vector.broadcast %cst_281 : f32 to vector<16x1xf32>
    %634 = arith.divf %632, %633 : vector<16x1xf32>
    %635 = vector.broadcast %627 : vector<16x1xf32> to vector<16x32xf32>
    %636 = arith.subf %619, %635 : vector<16x32xf32>
    %cst_282 = arith.constant 9.99999974E-6 : f32
    %637 = vector.broadcast %cst_282 : f32 to vector<16x1xf32>
    %638 = arith.addf %634, %637 : vector<16x1xf32>
    %639 = math.rsqrt %638 : vector<16x1xf32>
    %640 = vector.broadcast %639 : vector<16x1xf32> to vector<16x32xf32>
    %641 = arith.mulf %636, %640 : vector<16x32xf32>
    %642 = vector.broadcast %621 : vector<1x32xf32> to vector<16x32xf32>
    %643 = arith.mulf %641, %642 : vector<16x32xf32>
    %644 = vector.broadcast %623 : vector<1x32xf32> to vector<16x32xf32>
    %645 = arith.addf %643, %644 : vector<16x32xf32>
    %c0_283 = arith.constant 0 : index
    %c0_284 = arith.constant 0 : index
    %646 = vector.load %arg29[%c0_283, %c0_284] : memref<1x32xf32, #tpu.memory_space<vmem>>, vector<1x32xf32>
    %c0_285 = arith.constant 0 : index
    %c0_286 = arith.constant 0 : index
    %647 = vector.load %arg30[%c0_285, %c0_286] : memref<1x32xf32, #tpu.memory_space<vmem>>, vector<1x32xf32>
    %cst_287 = arith.constant dense<0.000000e+00> : vector<16xf32>
    %648 = vector.multi_reduction <add>, %645, %cst_287 [1] : vector<16x32xf32> to vector<16xf32>
    %649 = vector.shape_cast %648 : vector<16xf32> to vector<16x1xf32>
    %cst_288 = arith.constant 3.200000e+01 : f32
    %650 = vector.broadcast %cst_288 : f32 to vector<16x1xf32>
    %651 = arith.divf %649, %650 : vector<16x1xf32>
    %652 = vector.broadcast %651 : vector<16x1xf32> to vector<16x32xf32>
    %653 = arith.subf %645, %652 : vector<16x32xf32>
    %654 = arith.mulf %653, %653 : vector<16x32xf32>
    %cst_289 = arith.constant dense<0.000000e+00> : vector<16xf32>
    %655 = vector.multi_reduction <add>, %654, %cst_289 [1] : vector<16x32xf32> to vector<16xf32>
    %656 = vector.shape_cast %655 : vector<16xf32> to vector<16x1xf32>
    %cst_290 = arith.constant 3.200000e+01 : f32
    %657 = vector.broadcast %cst_290 : f32 to vector<16x1xf32>
    %658 = arith.divf %656, %657 : vector<16x1xf32>
    %659 = vector.broadcast %651 : vector<16x1xf32> to vector<16x32xf32>
    %660 = arith.subf %645, %659 : vector<16x32xf32>
    %cst_291 = arith.constant 9.99999974E-6 : f32
    %661 = vector.broadcast %cst_291 : f32 to vector<16x1xf32>
    %662 = arith.addf %658, %661 : vector<16x1xf32>
    %663 = math.rsqrt %662 : vector<16x1xf32>
    %664 = vector.broadcast %663 : vector<16x1xf32> to vector<16x32xf32>
    %665 = arith.mulf %660, %664 : vector<16x32xf32>
    %666 = vector.broadcast %646 : vector<1x32xf32> to vector<16x32xf32>
    %667 = arith.mulf %665, %666 : vector<16x32xf32>
    %668 = vector.broadcast %647 : vector<1x32xf32> to vector<16x32xf32>
    %669 = arith.addf %667, %668 : vector<16x32xf32>
    %c0_292 = arith.constant 0 : index
    %c0_293 = arith.constant 0 : index
    %c0_294 = arith.constant 0 : index
    %670 = vector.load %arg31[%c0_292, %c0_293, %c0_294] : memref<1x16x32xf32, #tpu.memory_space<vmem>>, vector<1x16x32xf32>
    %671 = vector.shape_cast %670 : vector<1x16x32xf32> to vector<16x32xf32>
    %672 = vector.shape_cast %669 : vector<16x32xf32> to vector<1x16x32xf32>
    tpu.vector_store %arg31[%c0_292, %c0_293, %c0_294], %672 {strides = array<i32>} : memref<1x16x32xf32, #tpu.memory_space<vmem>>, vector<1x16x32xf32>,
    return
  }
  func.func @transform_0(%arg0: i32) -> (i32, i32, i32) {
    %c0_i32 = arith.constant 0 : i32
    %c0_i32_0 = arith.constant 0 : i32
    %c0_i32_1 = arith.constant 0 : i32
    return %arg0, %c0_i32, %c0_i32_0 : i32, i32, i32
  }
  func.func @transform_1(%arg0: i32) -> (i32, i32, i32, i32) {
    %c0_i32 = arith.constant 0 : i32
    %c0_i32_0 = arith.constant 0 : i32
    %c0_i32_1 = arith.constant 0 : i32
    %c0_i32_2 = arith.constant 0 : i32
    return %arg0, %c0_i32, %c0_i32_0, %c0_i32_1 : i32, i32, i32, i32
  }
  func.func @transform_2(%arg0: i32) -> (i32, i32, i32) {
    %c0_i32 = arith.constant 0 : i32
    %c0_i32_0 = arith.constant 0 : i32
    %c0_i32_1 = arith.constant 0 : i32
    return %arg0, %c0_i32, %c0_i32_0 : i32, i32, i32
  }
  func.func @transform_3(%arg0: i32) -> (i32, i32, i32) {
    %c0_i32 = arith.constant 0 : i32
    %c0_i32_0 = arith.constant 0 : i32
    %c0_i32_1 = arith.constant 0 : i32
    return %arg0, %c0_i32, %c0_i32_0 : i32, i32, i32
  }
  func.func @transform_4(%arg0: i32) -> (i32, i32, i32) {
    %c0_i32 = arith.constant 0 : i32
    %c0_i32_0 = arith.constant 0 : i32
    %c0_i32_1 = arith.constant 0 : i32
    %c0_i32_2 = arith.constant 0 : i32
    return %c0_i32, %c0_i32_0, %c0_i32_1 : i32, i32, i32
  }
  func.func @transform_5(%arg0: i32) -> (i32, i32, i32) {
    %c0_i32 = arith.constant 0 : i32
    %c0_i32_0 = arith.constant 0 : i32
    %c0_i32_1 = arith.constant 0 : i32
    %c0_i32_2 = arith.constant 0 : i32
    return %c0_i32, %c0_i32_0, %c0_i32_1 : i32, i32, i32
  }
  func.func @transform_6(%arg0: i32) -> (i32, i32, i32) {
    %c0_i32 = arith.constant 0 : i32
    %c0_i32_0 = arith.constant 0 : i32
    %c0_i32_1 = arith.constant 0 : i32
    %c0_i32_2 = arith.constant 0 : i32
    return %c0_i32, %c0_i32_0, %c0_i32_1 : i32, i32, i32
  }
  func.func @transform_7(%arg0: i32) -> (i32, i32, i32) {
    %c0_i32 = arith.constant 0 : i32
    %c0_i32_0 = arith.constant 0 : i32
    %c0_i32_1 = arith.constant 0 : i32
    %c0_i32_2 = arith.constant 0 : i32
    return %c0_i32, %c0_i32_0, %c0_i32_1 : i32, i32, i32
  }
  func.func @transform_8(%arg0: i32) -> (i32, i32, i32) {
    %c0_i32 = arith.constant 0 : i32
    %c0_i32_0 = arith.constant 0 : i32
    %c0_i32_1 = arith.constant 0 : i32
    %c0_i32_2 = arith.constant 0 : i32
    return %c0_i32, %c0_i32_0, %c0_i32_1 : i32, i32, i32
  }
  func.func @transform_9(%arg0: i32) -> (i32, i32, i32) {
    %c0_i32 = arith.constant 0 : i32
    %c0_i32_0 = arith.constant 0 : i32
    %c0_i32_1 = arith.constant 0 : i32
    %c0_i32_2 = arith.constant 0 : i32
    return %c0_i32, %c0_i32_0, %c0_i32_1 : i32, i32, i32
  }
  func.func @transform_10(%arg0: i32) -> (i32, i32, i32) {
    %c0_i32 = arith.constant 0 : i32
    %c0_i32_0 = arith.constant 0 : i32
    %c0_i32_1 = arith.constant 0 : i32
    %c0_i32_2 = arith.constant 0 : i32
    return %c0_i32, %c0_i32_0, %c0_i32_1 : i32, i32, i32
  }
  func.func @transform_11(%arg0: i32) -> (i32, i32, i32) {
    %c0_i32 = arith.constant 0 : i32
    %c0_i32_0 = arith.constant 0 : i32
    %c0_i32_1 = arith.constant 0 : i32
    %c0_i32_2 = arith.constant 0 : i32
    return %c0_i32, %c0_i32_0, %c0_i32_1 : i32, i32, i32
  }
  func.func @transform_12(%arg0: i32) -> (i32, i32, i32) {
    %c0_i32 = arith.constant 0 : i32
    %c0_i32_0 = arith.constant 0 : i32
    %c0_i32_1 = arith.constant 0 : i32
    %c0_i32_2 = arith.constant 0 : i32
    return %c0_i32, %c0_i32_0, %c0_i32_1 : i32, i32, i32
  }
  func.func @transform_13(%arg0: i32) -> (i32, i32, i32) {
    %c0_i32 = arith.constant 0 : i32
    %c0_i32_0 = arith.constant 0 : i32
    %c0_i32_1 = arith.constant 0 : i32
    %c0_i32_2 = arith.constant 0 : i32
    return %c0_i32, %c0_i32_0, %c0_i32_1 : i32, i32, i32
  }
  func.func @transform_14(%arg0: i32) -> (i32, i32, i32) {
    %c0_i32 = arith.constant 0 : i32
    %c0_i32_0 = arith.constant 0 : i32
    %c0_i32_1 = arith.constant 0 : i32
    %c0_i32_2 = arith.constant 0 : i32
    return %c0_i32, %c0_i32_0, %c0_i32_1 : i32, i32, i32
  }
  func.func @transform_15(%arg0: i32) -> (i32, i32, i32) {
    %c0_i32 = arith.constant 0 : i32
    %c0_i32_0 = arith.constant 0 : i32
    %c0_i32_1 = arith.constant 0 : i32
    %c0_i32_2 = arith.constant 0 : i32
    return %c0_i32, %c0_i32_0, %c0_i32_1 : i32, i32, i32
  }
  func.func @transform_16(%arg0: i32) -> (i32, i32, i32) {
    %c0_i32 = arith.constant 0 : i32
    %c0_i32_0 = arith.constant 0 : i32
    %c0_i32_1 = arith.constant 0 : i32
    %c0_i32_2 = arith.constant 0 : i32
    return %c0_i32, %c0_i32_0, %c0_i32_1 : i32, i32, i32
  }
  func.func @transform_17(%arg0: i32) -> (i32, i32, i32) {
    %c0_i32 = arith.constant 0 : i32
    %c0_i32_0 = arith.constant 0 : i32
    %c0_i32_1 = arith.constant 0 : i32
    %c0_i32_2 = arith.constant 0 : i32
    return %c0_i32, %c0_i32_0, %c0_i32_1 : i32, i32, i32
  }
  func.func @transform_18(%arg0: i32) -> (i32, i32, i32) {
    %c0_i32 = arith.constant 0 : i32
    %c0_i32_0 = arith.constant 0 : i32
    %c0_i32_1 = arith.constant 0 : i32
    %c0_i32_2 = arith.constant 0 : i32
    return %c0_i32, %c0_i32_0, %c0_i32_1 : i32, i32, i32
  }
  func.func @transform_19(%arg0: i32) -> (i32, i32, i32) {
    %c0_i32 = arith.constant 0 : i32
    %c0_i32_0 = arith.constant 0 : i32
    %c0_i32_1 = arith.constant 0 : i32
    %c0_i32_2 = arith.constant 0 : i32
    return %c0_i32, %c0_i32_0, %c0_i32_1 : i32, i32, i32
  }
  func.func @transform_20(%arg0: i32) -> (i32, i32, i32) {
    %c0_i32 = arith.constant 0 : i32
    %c0_i32_0 = arith.constant 0 : i32
    %c0_i32_1 = arith.constant 0 : i32
    %c0_i32_2 = arith.constant 0 : i32
    return %c0_i32, %c0_i32_0, %c0_i32_1 : i32, i32, i32
  }
  func.func @transform_21(%arg0: i32) -> (i32, i32, i32) {
    %c0_i32 = arith.constant 0 : i32
    %c0_i32_0 = arith.constant 0 : i32
    %c0_i32_1 = arith.constant 0 : i32
    %c0_i32_2 = arith.constant 0 : i32
    return %c0_i32, %c0_i32_0, %c0_i32_1 : i32, i32, i32
  }
  func.func @transform_22(%arg0: i32) -> (i32, i32, i32) {
    %c0_i32 = arith.constant 0 : i32
    %c0_i32_0 = arith.constant 0 : i32
    %c0_i32_1 = arith.constant 0 : i32
    %c0_i32_2 = arith.constant 0 : i32
    return %c0_i32, %c0_i32_0, %c0_i32_1 : i32, i32, i32
  }
  func.func @transform_23(%arg0: i32) -> (i32, i32, i32) {
    %c0_i32 = arith.constant 0 : i32
    %c0_i32_0 = arith.constant 0 : i32
    %c0_i32_1 = arith.constant 0 : i32
    %c0_i32_2 = arith.constant 0 : i32
    return %c0_i32, %c0_i32_0, %c0_i32_1 : i32, i32, i32
  }
  func.func @transform_24(%arg0: i32) -> (i32, i32, i32) {
    %c0_i32 = arith.constant 0 : i32
    %c0_i32_0 = arith.constant 0 : i32
    %c0_i32_1 = arith.constant 0 : i32
    %c0_i32_2 = arith.constant 0 : i32
    return %c0_i32, %c0_i32_0, %c0_i32_1 : i32, i32, i32
  }
  func.func @transform_25(%arg0: i32) -> (i32, i32, i32) {
    %c0_i32 = arith.constant 0 : i32
    %c0_i32_0 = arith.constant 0 : i32
    %c0_i32_1 = arith.constant 0 : i32
    %c0_i32_2 = arith.constant 0 : i32
    return %c0_i32, %c0_i32_0, %c0_i32_1 : i32, i32, i32
  }
  func.func @transform_26(%arg0: i32) -> (i32, i32, i32) {
    %c0_i32 = arith.constant 0 : i32
    %c0_i32_0 = arith.constant 0 : i32
    %c0_i32_1 = arith.constant 0 : i32
    %c0_i32_2 = arith.constant 0 : i32
    return %c0_i32, %c0_i32_0, %c0_i32_1 : i32, i32, i32
  }
  func.func @transform_27(%arg0: i32) -> (i32, i32, i32) {
    %c0_i32 = arith.constant 0 : i32
    %c0_i32_0 = arith.constant 0 : i32
    %c0_i32_1 = arith.constant 0 : i32
    %c0_i32_2 = arith.constant 0 : i32
    return %c0_i32, %c0_i32_0, %c0_i32_1 : i32, i32, i32
  }
  func.func @transform_28(%arg0: i32) -> (i32, i32) {
    %c0_i32 = arith.constant 0 : i32
    %c0_i32_0 = arith.constant 0 : i32
    %c0_i32_1 = arith.constant 0 : i32
    return %c0_i32, %c0_i32_0 : i32, i32
  }
  func.func @transform_29(%arg0: i32) -> (i32, i32) {
    %c0_i32 = arith.constant 0 : i32
    %c0_i32_0 = arith.constant 0 : i32
    %c0_i32_1 = arith.constant 0 : i32
    return %c0_i32, %c0_i32_0 : i32, i32
  }
  func.func @transform_30(%arg0: i32) -> (i32, i32, i32) {
    %c0_i32 = arith.constant 0 : i32
    %c0_i32_0 = arith.constant 0 : i32
    %c0_i32_1 = arith.constant 0 : i32
    return %arg0, %c0_i32, %c0_i32_0 : i32, i32, i32
  }
}

</mosaic_0001>

<bundles_post_ra>
// kernel: transformer_decoder.1
= control target key start
LH: loop header
LB: loop body
LE: loop exit
PB: predicated region body
PF: predicated region fallthrough
CT: control target
= control target key end

     0   :  { %s5633_s6 = smov 1   ;;  %s5634_s10 = smov 2   ;;  %s6970_s0 = inlined_call_operand.smem [shape: u32[31], index: -1, kind: input, shape index: {}] }
   0x1   :  { %s5698_s5 = sld [smem:[%s6970_s0]]   ;;  %s5635_s14 = smov 3  }
   0x2   :  { %s5703_s9 = sld [smem:[%s6970_s0 + %s5633_s6]]   ;;  %s5636_s18 = smov 4  }
   0x3   :  { %s5708_s13 = sld [smem:[%s6970_s0 + %s5634_s10]]   ;;  %s5637_s22 = smov 5  }
   0x4   :  { %s5713_s17 = sld [smem:[%s6970_s0 + %s5635_s14]]   ;;  %s5638_s26 = smov 6  }
   0x5   :  { %s5718_s21 = sld [smem:[%s6970_s0 + %s5636_s18]]   ;;  %s5639_s30 = smov 7  }
   0x6   :  { %s5723_s25 = sld [smem:[%s6970_s0 + %s5637_s22]]   ;;  %s5640_s4 = smov 8  }
   0x7   :  { %7029 = sst [smem:[#allocation28_spill]] %s5698_s5  ;;  %s5641_s10 = smov 9  }
   0x8   :  { %7030 = sst [smem:[#allocation29_spill]] %s5703_s9  ;;  %s5642_s15 = smov 10  }
   0x9   :  { %7031 = sst [smem:[#allocation30_spill]] %s5708_s13  ;;  %s5643_s20 = smov 11  }
   0xa   :  { %7032 = sst [smem:[#allocation31_spill]] %s5713_s17  ;;  %s5645_s1 = smov 13  }
   0xb   :  { %7033 = sst [smem:[#allocation32_spill]] %s5718_s21  ;;  %s5646_s7 = smov 14  }
   0xc   :  { %7034 = sst [smem:[#allocation33_spill]] %s5723_s25  ;;  %s5648_s22 = smov 16  }
   0xd   :  { %s5728_s29 = sld [smem:[%s6970_s0 + %s5638_s26]]   ;;  %s5644_s26 = smov 12  }
   0xe   :  { %s5733_s3 = sld [smem:[%s6970_s0 + %s5639_s30]]   ;;  %s5649_s28 = smov 17  }
   0xf   :  { %s5738_s8 = sld [smem:[%s6970_s0 + %s5640_s4]]  }
  0x10   :  { %s5743_s14 = sld [smem:[%s6970_s0 + %s5641_s10]]  }
  0x11   :  { %s5748_s19 = sld [smem:[%s6970_s0 + %s5642_s15]]   ;;  %s5647_s15 = smov 15  }
  0x12   :  { %s5753_s24 = sld [smem:[%s6970_s0 + %s5643_s20]]  }
  0x13   :  { %7035 = sst [smem:[#allocation34_spill]] %s5728_s29 }
  0x14   :  { %7036 = sst [smem:[#allocation35_spill]] %s5733_s3 }
  0x15   :  { %7037 = sst [smem:[#allocation36_spill]] %s5738_s8 }
  0x16   :  { %7038 = sst [smem:[#allocation37_spill]] %s5743_s14 }
  0x17   :  { %7039 = sst [smem:[#allocation38_spill]] %s5748_s19 }
  0x18   :  { %7040 = sst [smem:[#allocation39_spill]] %s5753_s24 }
  0x19   :  { %s5758_s30 = sld [smem:[%s6970_s0 + %s5644_s26]]  }
  0x1a   :  { %s5763_s6 = sld [smem:[%s6970_s0 + %s5645_s1]]  }
  0x1b   :  { %s5768_s12 = sld [smem:[%s6970_s0 + %s5646_s7]]   ;;  %s5650_s7 = smov 18  }
  0x1c   :  { %s5773_s20 = sld [smem:[%s6970_s0 + %s5647_s15]]   ;;  %s5651_s15 = smov 19  }
  0x1d   :  { %s5778_s27 = sld [smem:[%s6970_s0 + %s5648_s22]]   ;;  %s5652_s22 = smov 20  }
  0x1e   :  { %s5783_s4 = sld [smem:[%s6970_s0 + %s5649_s28]]   ;;  %s5653_s28 = smov 21  }
  0x1f   :  { %7041 = sst [smem:[#allocation40_spill]] %s5758_s30 }
  0x20   :  { %7042 = sst [smem:[#allocation41_spill]] %s5763_s6 }
  0x21   :  { %7043 = sst [smem:[#allocation42_spill]] %s5768_s12 }
  0x22   :  { %7044 = sst [smem:[#allocation43_spill]] %s5773_s20 }
  0x23   :  { %7045 = sst [smem:[#allocation44_spill]] %s5778_s27 }
  0x24   :  { %7046 = sst [smem:[#allocation45_spill]] %s5783_s4 }
  0x25   :  { %s5788_s6 = sld [smem:[%s6970_s0 + %s5650_s7]]   ;;  %s5654_s7 = smov 22  }
  0x26   :  { %s5793_s24 = sld [smem:[%s6970_s0 + %s5651_s15]]   ;;  %s5655_s15 = smov 23  }
  0x27   :  { %s5798_s19 = sld [smem:[%s6970_s0 + %s5652_s22]]   ;;  %s5656_s22 = smov 24  }
  0x28   :  { %s5803_s4 = sld [smem:[%s6970_s0 + %s5653_s28]]   ;;  %s5657_s28 = smov 25  }
  0x29   :  { %s5808_s20 = sld [smem:[%s6970_s0 + %s5654_s7]]   ;;  %s5658_s7 = smov 26  }
  0x2a   :  { %s5828_s14 = sld [smem:[%s6970_s0 + %s5658_s7]]   ;;  %s5662_s7 = smov 30  }
  0x2b   :  { %7047 = sst [smem:[#allocation46_spill]] %s5788_s6 }
  0x2c   :  { %7048 = sst [smem:[#allocation47_spill]] %s5793_s24 }
  0x2d   :  { %7049 = sst [smem:[#allocation48_spill]] %s5798_s19 }
  0x2e   :  { %7050 = sst [smem:[#allocation49_spill]] %s5803_s4 }
  0x2f   :  { %7051 = sst [smem:[#allocation50_spill]] %s5808_s20 }
  0x30   :  { %s5813_s24 = sld [smem:[%s6970_s0 + %s5655_s15]]   ;;  %s5659_s15 = smov 27  }
  0x31   :  { %s5818_s19 = sld [smem:[%s6970_s0 + %s5656_s22]]   ;;  %s5660_s22 = smov 28  }
  0x32   :  { %s5823_s4 = sld [smem:[%s6970_s0 + %s5657_s28]]   ;;  %s5661_s28 = smov 29  }
  0x33   :  { %7055 = sst [smem:[#allocation54_spill]] %s5828_s14 }
  0x34   :  { %s5848_s14 = sld [smem:[%s6970_s0 + %s5662_s7]]  }
  0x36   :  { %7052 = sst [smem:[#allocation51_spill]] %s5813_s24 }
  0x37   :  { %7053 = sst [smem:[#allocation52_spill]] %s5818_s19 }
  0x38   :  { %7054 = sst [smem:[#allocation53_spill]] %s5823_s4 }
  0x39   :  { %s5833_s24 = sld [smem:[%s6970_s0 + %s5659_s15]]  }
  0x3a   :  { %s5838_s19 = sld [smem:[%s6970_s0 + %s5660_s22]]  }
  0x3b   :  { %s5843_s4 = sld [smem:[%s6970_s0 + %s5661_s28]]  }
  0x3c   :  { %7058 = sst [smem:[#allocation57_spill]] %s5848_s14 }
  0x40   :  { %7056 = sst [smem:[#allocation55_spill]] %s5838_s19 }
  0x41   :  { %7057 = sst [smem:[#allocation56_spill]] %s5843_s4 }
  0x42   :  { %66 = vsyncpa [#allocation3], 0 }
  0x43   :  { %68 = vsyncpa [#allocation3 + $0x1], 0 }
  0x44   :  { %69 = vsyncpa [#allocation6], 0 }
  0x45   :  { %71 = vsyncpa [#allocation6 + $0x1], 0 }
  0x46   :  { %72 = vsyncpa [#allocation9], 0 }
  0x47   :  { %73 = vsyncpa [#allocation12], 0 }
  0x48   :  { %74 = vsyncpa [#allocation15], 0 }
  0x49   :  { %75 = vsyncpa [#allocation18], 0 }
  0x4a   :  { %76 = vsyncpa [#allocation4], 0 }
  0x4b   :  { %78 = vsyncpa [#allocation4 + $0x1], 0  ;;  %s5850_s15 = smov 0   ;;  %s5852_s16 = smov 0  }
  0x4c   :  { %s5854_s18 = smov 0   ;;  %s5856_s22 = smov 0  }
  0x4d LB: > { %s7059_s21 = sld [smem:[#allocation32_spill]]  ;;  %s5874_s23 = sadd.s32 4294967295, %s5631_s22   ;;  %s5627_s18 = sphi %s5854_s18, %s7144_s18   ;;  %s5623_s16 = sphi %s5852_s16, %s7146_s16   ;;  %s5619_s15 = sphi %s5850_s15, %s7145_s15   ;;  %s5631_s22 = sphi %s5856_s22, %s7142_s22  }
  0x4e   : > { %s7060_s17 = sld [smem:[#allocation31_spill]]  ;;  %p4443_p0 = scmp.ge.s32.totalorder %s5631_s22, 1 }
  0x4f   : > { %s7061_s12 = sld [smem:[#allocation42_spill]]  ;;  %p7000_p1 = scmp.eq.s32.totalorder %s5874_s23, 0 }
  0x50   : > { %s7062_s9 = sld [smem:[#allocation29_spill]]  ;;  %p765_p2 = scmp.lt.s32.totalorder %s5631_s22, 5 }
  0x51   : > { %s7063_s8 = sld [smem:[#allocation36_spill]]  ;;  %s5663_s28 = smov [#allocation8]  }
  0x52   : > { %s7064_s6 = sld [smem:[#allocation46_spill]]  ;;  %p5879_p3 = pnand %p4443_p0, %p765_p2 }
  0x53   : > { %s7065_s13 = sld [smem:[#allocation30_spill]]  ;;  %s784_s1 = sshll.u32 %s5663_s28, 4  ;;  %s785_s1 = int_to_ptr.vmem [resolvable:$true] %s784_s1 }
  0x54   : > { %s7066_s30 = sld [smem:[#allocation40_spill]]  ;;  %p4811_p4 = pneg %p5879_p3 }
  0x55   : > { %s7067_s27 = sld [smem:[#allocation44_spill]]  ;;  %s5664_s11 = smov [#allocation11]  }
  0x56   : > { %s7068_s20 = sld [smem:[#allocation50_spill]]  ;;  %p5888_p5 = pnand %p4811_p4, %p7000_p1 }
  0x57   : > { %s7069_s29 = sld [smem:[#allocation34_spill]]  ;;  %s5895_s14 = sshll.u32 %s5664_s11, 4  ;;  %s825_s14 = int_to_ptr.vmem [resolvable:$true] %s5895_s14 }
  0x58   : > { %7070 = sst [smem:[#allocation58_spill]] %s5627_s18  ;;  %p5900_p7 = pneg %p5888_p5 }
  0x59   : > { %s7071_s26 = scalar_select %p5879_p3, 1, 0 }
  0x5a   : > { %s822_s2 = sshll.u32 %s7066_s30, 4  ;;  %s5892_s2 = int_to_ptr.hbm [resolvable:$true] %s822_s2 }
  0x5b   : > { %s856_s10 = sshll.u32 %s7067_s27, 4  ;;  %s5915_s10 = int_to_ptr.hbm [resolvable:$true] %s856_s10 }
  0x5d   : > { %s782_s0 = sshll.u32 %s7069_s29, 4  ;;  %s5222_s3 = scalar_lea.hbm %s7069_s29, 32  ;;  %s5871_s0 = int_to_ptr.hbm [resolvable:$true] %s782_s0 }
  0x5e   : > { %s5215_s4 = sshra.s32 %s5871_s0, 4  ;;  %s5216_s4 = int_to_ptr.hbm [resolvable:$true] %s5215_s4 }
  0x5f   : > { %s5217_s28 = scalar_lea.hbm %s5216_s4, 32  ;;  %p5223_p10 = scmp.lt.s32.totalorder %s5216_s4, %s7069_s29 }
  0x60   : > { %p5218_p6 = scmp.ne.s32.totalorder %s5216_s4, %s5217_s28  ;;  %p5224_p11 = scmp.lt.s32.totalorder %s5222_s3, %s5217_s28 }
  0x62   : > { %p5220_p8 = pnand %p5900_p7, %p5218_p6  ;;  %p5225_p12 = por %p5224_p11, %p5223_p10 }
  0x64   : > { %p5221_p9 = pneg %p5220_p8 }
  0x66   : > { %p5226_p13 = pnand %p5225_p12, %p5221_p9 }
  0x68   : > { %5229 = shalt.err (!%p5226_p13)
}
  0x69   : > { %s6989_s11 = smov 64   ;;  %s6991_s25 = smov 4  }
  0x6a   : > { %4814 = dma.hbm_to_vmem [thread:$0]  (!%p5888_p5), %s5871_s0, 512, %s785_s1, [#allocation9], %s6989_s11, %s6989_s11, %s6991_s25  }
  0x6b   : > { %s5245_s3 = sshra.s32 %s5892_s2, 4  ;;  %s5252_s28 = scalar_lea.hbm %s7066_s30, 32  ;;  %s5246_s3 = int_to_ptr.hbm [resolvable:$true] %s5245_s3 }
  0x6c   : > { %s5247_s4 = scalar_lea.hbm %s5246_s3, 32  ;;  %p5253_p6 = scmp.lt.s32.totalorder %s5246_s3, %s7066_s30 }
  0x6d   : > { %p5248_p0 = scmp.ne.s32.totalorder %s5246_s3, %s5247_s4  ;;  %p5254_p8 = scmp.lt.s32.totalorder %s5252_s28, %s5247_s4 }
  0x6f   : > { %p5250_p2 = pnand %p5248_p0, %p5900_p7  ;;  %p5255_p9 = por %p5254_p8, %p5253_p6 }
  0x71   : > { %p5251_p4 = pneg %p5250_p2 }
  0x73   : > { %p5256_p10 = pnand %p5255_p9, %p5251_p4 }
  0x75   : > { %5259 = shalt.err (!%p5256_p10)
}
  0x76   : > { %4820 = dma.hbm_to_vmem [thread:$0]  (!%p5888_p5), %s5892_s2, 512, %s825_s14, [#allocation12], %s6989_s11, %s6989_s11, %s6991_s25  }
  0x77   : > { %s896_s0 = sshll.u32 %s7068_s20, 4  ;;  %s5667_s1 = smov [#allocation14]   ;;  %s5929_s0 = int_to_ptr.hbm [resolvable:$true] %s896_s0 }
  0x78   : > { %s858_s29 = sshll.u32 %s5667_s1, 4  ;;  %s5275_s3 = sshra.s32 %s5915_s10, 4  ;;  %s859_s29 = int_to_ptr.vmem [resolvable:$true] %s858_s29  ;;  %s5276_s3 = int_to_ptr.hbm [resolvable:$true] %s5275_s3 }
  0x79   : > { %s5277_s4 = scalar_lea.hbm %s5276_s3, 32  ;;  %s5282_s28 = scalar_lea.hbm %s7067_s27, 32 }
  0x7a   : > { %p5278_p11 = scmp.ne.s32.totalorder %s5276_s3, %s5277_s4  ;;  %p5283_p0 = scmp.lt.s32.totalorder %s5276_s3, %s7067_s27 }
  0x7b   : > { %p5284_p2 = scmp.lt.s32.totalorder %s5282_s28, %s5277_s4 }
  0x7c   : > { %p5280_p12 = pnand %p5278_p11, %p5900_p7 }
  0x7d   : > { %p5285_p4 = por %p5284_p2, %p5283_p0 }
  0x7e   : > { %p5281_p13 = pneg %p5280_p12 }
  0x80   : > { %p5286_p6 = pnand %p5285_p4, %p5281_p13 }
  0x82   : > { %5289 = shalt.err (!%p5286_p6)
}
  0x83   : > { %4826 = dma.hbm_to_vmem [thread:$0]  (!%p5888_p5), %s5915_s10, 512, %s859_s29, [#allocation15], %s6989_s11, %s6989_s11, %s6991_s25  }
  0x84   : > { %s5668_s14 = smov [#allocation17]   ;;  %s5305_s1 = sshra.s32 %s5929_s0, 4  ;;  %s5306_s1 = int_to_ptr.hbm [resolvable:$true] %s5305_s1 }
  0x85   : > { %s898_s2 = sshll.u32 %s5668_s14, 4  ;;  %s5307_s3 = scalar_lea.hbm %s5306_s1, 32  ;;  %s899_s2 = int_to_ptr.vmem [resolvable:$true] %s898_s2 }
  0x86   : > { %p5308_p8 = scmp.ne.s32.totalorder %s5306_s1, %s5307_s3  ;;  %s5312_s4 = scalar_lea.hbm %s7068_s20, 32 }
  0x87   : > { %p5313_p11 = scmp.lt.s32.totalorder %s5306_s1, %s7068_s20  ;;  %p5314_p12 = scmp.lt.s32.totalorder %s5312_s4, %s5307_s3 }
  0x88   : > { %p5310_p9 = pnand %p5308_p8, %p5900_p7 }
  0x89   : > { %p5315_p13 = por %p5314_p12, %p5313_p11 }
  0x8a   : > { %p5311_p10 = pneg %p5310_p9 }
  0x8c   : > { %p5316_p0 = pnand %p5315_p13, %p5311_p10 }
  0x8e   : > { %5319 = shalt.err (!%p5316_p0)
}
  0x8f   : > { %4832 = dma.hbm_to_vmem [thread:$0]  (!%p5888_p5), %s5929_s0, 512, %s899_s2, [#allocation18], %s6989_s11, %s6989_s11, %s6991_s25  }
  0x90   : > { %s4442_s29 = sadd.s32 4294967294, %s5631_s22   ;;  %s5955_s10 = sadd.s32 1, %s5631_s22  }
  0x91   : > { %7074 = sst [smem:[#allocation59_spill]] %s5955_s10  ;;  %s114_s28 = ssub.s32 %s5631_s22, %s5955_s10 }
  0x92   : > { %s117_s14 = sadd.s32 1, %s5627_s18  ;;  %p115_p2 = scmp.eq.s32.totalorder %s114_s28, 0 }
  0x93   : > { %p124_p4 = scmp.ne.s32.totalorder %s5627_s18, %s5623_s16  ;;  %p125_p6 = scmp.eq.s32.totalorder %s5631_s22, 0 }
  0x94   : > { %p130_p8 = scmp.ne.s32.totalorder %s5623_s16, %s5619_s15  ;;  %p752_p11 = scmp.eq.s32.totalorder %s5874_s23, 3 }
  0x95   : > { %s5966_s1 = scalar_select %p115_p2, %s5627_s18, %s117_s14  }
  0x96   : > { %p126_p9 = por %p125_p6, %p124_p4  ;;  %p5970_p10 = por %p7000_p1, %p130_p8 }
  0x97   : > { %7075 = sst [smem:[#allocation60_spill]] %s5966_s1  ;;  %p758_p12 = scmp.eq.s32.totalorder %s4442_s29, 3 }
  0x98   : > { %p4858_p13 = scmp.lt.s32.totalorder %s5631_s22, 4  ;;  %s5977_s0 = sand.u32 1, %s5627_s18  }
  0x99   : > { %p5979_p0 = por %p752_p11, %p124_p4  ;;  %p5983_p3 = por %p758_p12, %p130_p8 }
  0x9a   : > { %p5987_p2 = pnand %p4858_p13, %p126_p9  ;;  %s974_s14 = sand.u32 1, %s5631_s22  }
  0x9b   : > { %s7078_s4 = scalar_select %p5983_p3, 1, 0 }
  0x9c   : > { %s4456_s29 = sshll.u32 %s5977_s0, 4  ;;  %s4727_s11 = sshll.u32 %s5631_s22, 4 }
  0x9d   : > { %7079 = sst [smem:[#allocation61_spill]] %s7078_s4  ;;  %s983_s25 = scalar_lea.hbm %s7065_s13, %s4727_s11 }
  0x9e   : > { %s984_s20 = sshll.u32 %s983_s25, 4  ;;  %s978_s27 = scalar_lea.vmem [#allocation5], %s4456_s29  ;;  %s985_s20 = int_to_ptr.hbm [resolvable:$true] %s984_s20 }
  0x9f   : > { %s986_s30 = sshll.u32 %s978_s27, 4  ;;  %s5995_s1 = scalar_lea.sflag [#allocation6], %s974_s14  ;;  %s987_s30 = int_to_ptr.vmem [resolvable:$true] %s986_s30 }
  0xa0   : > { %s5335_s18 = sshra.s32 %s985_s20, 4  ;;  %p5339_p6 = pneg %p5987_p2  ;;  %s5336_s18 = int_to_ptr.hbm [resolvable:$true] %s5335_s18 }
  0xa1   : > { %s5337_s10 = scalar_lea.hbm %s5336_s18, 16  ;;  %s5342_s4 = scalar_lea.hbm %s7065_s13, 64 }
  0xa2   : > { %p5338_p4 = scmp.ne.s32.totalorder %s5336_s18, %s5337_s10  ;;  %p5343_p11 = scmp.lt.s32.totalorder %s5336_s18, %s7065_s13 }
  0xa3   : > { %p5344_p12 = scmp.lt.s32.totalorder %s5342_s4, %s5337_s10 }
  0xa4   : > { %p5340_p8 = pnand %p5339_p6, %p5338_p4 }
  0xa5   : > { %p5345_p13 = por %p5344_p12, %p5343_p11 }
  0xa6   : > { %p5341_p9 = pneg %p5340_p8 }
  0xa8   : > { %p5346_p1 = pnand %p5345_p13, %p5341_p9 }
  0xaa   : > { %5349 = shalt.err (!%p5346_p1)
}
  0xab   : > { %s7002_s25 = smov 128   ;;  %s7004_s27 = smov 8  }
  0xac   : > { %4842 = dma.hbm_to_vmem [thread:$0]  (!%p5987_p2), %s985_s20, 256, %s987_s30, %s5995_s1, %s7002_s25, %s7002_s25, %s7004_s27  }
  0xad   : > { %s799_s11 = sshll.u32 %s7063_s8, 4  ;;  %s5671_s18 = smov [#allocation10]   ;;  %s800_s11 = int_to_ptr.hbm [resolvable:$true] %s799_s11 }
  0xae   : > { %s801_s10 = sshll.u32 %s5671_s18, 4  ;;  %s839_s4 = sshll.u32 %s7061_s12, 4  ;;  %s802_s10 = int_to_ptr.vmem [resolvable:$true] %s801_s10  ;;  %s840_s4 = int_to_ptr.hbm [resolvable:$true] %s839_s4 }
  0xaf   : > { %s5365_s14 = sshra.s32 %s800_s11, 4  ;;  %s5372_s13 = scalar_lea.hbm %s7063_s8, 32  ;;  %s5366_s14 = int_to_ptr.hbm [resolvable:$true] %s5365_s14 }
  0xb0   : > { %s5367_s29 = scalar_lea.hbm %s5366_s14, 32  ;;  %p5373_p9 = scmp.lt.s32.totalorder %s5366_s14, %s7063_s8 }
  0xb1   : > { %p5368_p1 = scmp.ne.s32.totalorder %s5366_s14, %s5367_s29  ;;  %p5374_p11 = scmp.lt.s32.totalorder %s5372_s13, %s5367_s29 }
  0xb3   : > { %p5370_p4 = pnand %p5368_p1, %p5900_p7  ;;  %p5375_p12 = por %p5374_p11, %p5373_p9 }
  0xb5   : > { %p5371_p8 = pneg %p5370_p4 }
  0xb7   : > { %p5376_p13 = pnand %p5375_p12, %p5371_p8 }
  0xb9   : > { %5379 = shalt.err (!%p5376_p13)
}
  0xba   : > { %s7081_s30 = smov 4   ;;  %s7082_s20 = smov 64  }
  0xbb   : > { %4817 = dma.hbm_to_vmem [thread:$0]  (!%p5888_p5), %s800_s11, 512, %s802_s10, [#allocation9], %s7082_s20, %s7082_s20, %s7081_s30  }
  0xbc   : > { %s5672_s18 = smov [#allocation13]   ;;  %s873_s27 = sshll.u32 %s7064_s6, 4  ;;  %s6022_s27 = int_to_ptr.hbm [resolvable:$true] %s873_s27 }
  0xbd   : > { %s841_s25 = sshll.u32 %s5672_s18, 4  ;;  %s5395_s13 = sshra.s32 %s840_s4, 4  ;;  %s842_s25 = int_to_ptr.vmem [resolvable:$true] %s841_s25  ;;  %s5396_s13 = int_to_ptr.hbm [resolvable:$true] %s5395_s13 }
  0xbe   : > { %s5397_s14 = scalar_lea.hbm %s5396_s13, 32  ;;  %s5402_s29 = scalar_lea.hbm %s7061_s12, 32 }
  0xbf   : > { %p5398_p1 = scmp.ne.s32.totalorder %s5396_s13, %s5397_s14  ;;  %p5403_p9 = scmp.lt.s32.totalorder %s5396_s13, %s7061_s12 }
  0xc0   : > { %p5404_p11 = scmp.lt.s32.totalorder %s5402_s29, %s5397_s14 }
  0xc1   : > { %p5400_p4 = pnand %p5398_p1, %p5900_p7 }
  0xc2   : > { %p5405_p12 = por %p5404_p11, %p5403_p9 }
  0xc3   : > { %p5401_p8 = pneg %p5400_p4 }
  0xc5   : > { %p5406_p13 = pnand %p5405_p12, %p5401_p8 }
  0xc7   : > { %5409 = shalt.err (!%p5406_p13)
}
  0xc8   : > { %4823 = dma.hbm_to_vmem [thread:$0]  (!%p5888_p5), %s840_s4, 512, %s842_s25, [#allocation12], %s7082_s20, %s7082_s20, %s7081_s30  }
  0xc9   : > { %s922_s11 = sshll.u32 %s5833_s24, 4  ;;  %s5673_s10 = smov [#allocation16]   ;;  %s6034_s11 = int_to_ptr.hbm [resolvable:$true] %s922_s11 }
  0xca   : > { %s875_s18 = sshll.u32 %s5673_s10, 4  ;;  %s5425_s13 = sshra.s32 %s6022_s27, 4  ;;  %s876_s18 = int_to_ptr.vmem [resolvable:$true] %s875_s18  ;;  %s5426_s13 = int_to_ptr.hbm [resolvable:$true] %s5425_s13 }
  0xcb   : > { %s5427_s14 = scalar_lea.hbm %s5426_s13, 32  ;;  %s5432_s29 = scalar_lea.hbm %s7064_s6, 32 }
  0xcc   : > { %p5428_p1 = scmp.ne.s32.totalorder %s5426_s13, %s5427_s14  ;;  %p5433_p9 = scmp.lt.s32.totalorder %s5426_s13, %s7064_s6 }
  0xcd   : > { %p5434_p11 = scmp.lt.s32.totalorder %s5432_s29, %s5427_s14 }
  0xce   : > { %p5430_p4 = pnand %p5428_p1, %p5900_p7 }
  0xcf   : > { %p5435_p12 = por %p5434_p11, %p5433_p9 }
  0xd0   : > { %p5431_p8 = pneg %p5430_p4 }
  0xd2   : > { %p5436_p13 = pnand %p5435_p12, %p5431_p8 }
  0xd4   : > { %5439 = shalt.err (!%p5436_p13)
}
  0xd5   : > { %4829 = dma.hbm_to_vmem [thread:$0]  (!%p5888_p5), %s6022_s27, 512, %s876_s18, [#allocation15], %s7082_s20, %s7082_s20, %s7081_s30  }
  0xd6   : > { %s5674_s25 = smov [#allocation19]   ;;  %s5455_s10 = sshra.s32 %s6034_s11, 4  ;;  %s5456_s10 = int_to_ptr.hbm [resolvable:$true] %s5455_s10 }
  0xd7   : > { %s924_s4 = sshll.u32 %s5674_s25, 4  ;;  %s5457_s13 = scalar_lea.hbm %s5456_s10, 2  ;;  %s925_s4 = int_to_ptr.vmem [resolvable:$true] %s924_s4 }
  0xd8   : > { %p5458_p1 = scmp.ne.s32.totalorder %s5456_s10, %s5457_s13  ;;  %s5462_s14 = scalar_lea.hbm %s5833_s24, 2 }
  0xd9   : > { %p5463_p9 = scmp.lt.s32.totalorder %s5456_s10, %s5833_s24  ;;  %p5464_p11 = scmp.lt.s32.totalorder %s5462_s14, %s5457_s13 }
  0xda   : > { %p5460_p4 = pnand %p5458_p1, %p5900_p7 }
  0xdb   : > { %p5465_p12 = por %p5464_p11, %p5463_p9 }
  0xdc   : > { %p5461_p8 = pneg %p5460_p4 }
  0xde   : > { %p5466_p13 = pnand %p5465_p12, %p5461_p8 }
  0xe0   : > { %5469 = shalt.err (!%p5466_p13)
}
  0xe1   : > { %s5675_s29 = smov 16   ;;  %s5676_s27 = smov 1  }
  0xe2   : > { %4835 = dma.hbm_to_vmem [thread:$0]  (!%p5888_p5), %s6034_s11, 32, %s925_s4, [#allocation18], %s5675_s29, %s5675_s29, %s5676_s27  }
  0xe3   : > { %s4453_s19 = sshll.u32 %s5977_s0, 6  ;;  %s4726_s30 = sshll.u32 %s5631_s22, 6 }
  0xe4   : > { %s961_s20 = scalar_lea.hbm %s7062_s9, %s4726_s30  ;;  %s956_s18 = scalar_lea.vmem [#allocation2], %s4453_s19 }
  0xe5   : > { %s964_s25 = sshll.u32 %s956_s18, 4  ;;  %s962_s10 = sshll.u32 %s961_s20, 4  ;;  %s965_s25 = int_to_ptr.vmem [resolvable:$true] %s964_s25  ;;  %s963_s10 = int_to_ptr.hbm [resolvable:$true] %s962_s10 }
  0xe6   : > { %s4459_s13 = sshll.u32 %s5977_s0, 5  ;;  %s953_s14 = scalar_lea.sflag [#allocation3], %s5977_s0 }
  0xe7   : > { %s5485_s6 = sshra.s32 %s963_s10, 4  ;;  %s5492_s7 = scalar_lea.hbm %s7062_s9, 256  ;;  %s5486_s6 = int_to_ptr.hbm [resolvable:$true] %s5485_s6 }
  0xe8   : > { %s5487_s8 = scalar_lea.hbm %s5486_s6, 64  ;;  %p5493_p4 = scmp.lt.s32.totalorder %s5486_s6, %s7062_s9 }
  0xe9   : > { %p5488_p7 = scmp.ne.s32.totalorder %s5486_s6, %s5487_s8  ;;  %p5494_p8 = scmp.lt.s32.totalorder %s5492_s7, %s5487_s8 }
  0xeb   : > { %p5490_p1 = pnand %p5488_p7, %p5339_p6  ;;  %p5495_p9 = por %p5494_p8, %p5493_p4 }
  0xed   : > { %p5491_p5 = pneg %p5490_p1 }
  0xef   : > { %p5496_p11 = pnand %p5495_p9, %p5491_p5 }
  0xf1   : > { %5499 = shalt.err (!%p5496_p11)
}
  0xf2   : > { %s7083_s11 = smov 8   ;;  %s7084_s4 = smov 128  }
  0xf3   : > { %4839 = dma.hbm_to_vmem [thread:$0]  (!%p5987_p2), %s963_s10, 1024, %s965_s25, %s953_s14, %s7084_s4, %s7084_s4, %s7083_s11  }
  0xf4   : > { %s4728_s0 = sshll.u32 %s5631_s22, 5  ;;  %s1000_s27 = scalar_lea.vmem [#allocation7], %s4459_s13 }
  0xf5   : > { %s1005_s29 = scalar_lea.hbm %s7060_s17, %s4728_s0  ;;  %s1008_s19 = sshll.u32 %s1000_s27, 4  ;;  %s1009_s19 = int_to_ptr.vmem [resolvable:$true] %s1008_s19 }
  0xf6   : > { %s1006_s6 = sshll.u32 %s1005_s29, 4  ;;  %s5522_s20 = scalar_lea.hbm %s7060_s17, 128  ;;  %s1007_s6 = int_to_ptr.hbm [resolvable:$true] %s1006_s6 }
  0xf7   : > { %s5515_s8 = sshra.s32 %s1007_s6, 4  ;;  %s5516_s8 = int_to_ptr.hbm [resolvable:$true] %s5515_s8 }
  0xf8   : > { %s5517_s30 = scalar_lea.hbm %s5516_s8, 32  ;;  %p5523_p1 = scmp.lt.s32.totalorder %s5516_s8, %s7060_s17 }
  0xf9   : > { %p5518_p12 = scmp.ne.s32.totalorder %s5516_s8, %s5517_s30  ;;  %p5524_p5 = scmp.lt.s32.totalorder %s5522_s20, %s5517_s30 }
  0xfb   : > { %p5520_p13 = pnand %p5518_p12, %p5339_p6  ;;  %p5525_p4 = por %p5524_p5, %p5523_p1 }
  0xfd   : > { %p5521_p7 = pneg %p5520_p13 }
  0xff   : > { %p5526_p8 = pnand %p5525_p4, %p5521_p7 }
 0x101   : > { %5529 = shalt.err (!%p5526_p8)
}
 0x102   : > { %4845 = dma.hbm_to_vmem [thread:$0]  (!%p5987_p2), %s1007_s6, 512, %s1009_s19, %s5995_s1, %s7084_s4, %s7084_s4, %s7083_s11  }
 0x103   : > { %p7085_p9 = scmp.ne.s32.totalorder %s7071_s26, 0 }
 0x104   : > { %s6086_s18 = sand.u32 (!%p7085_p9), 1, %s5623_s16  }
 0x105   : > { %1020 = sbr.rel (%p7085_p9) target bundleno = 7553 (0x1d81), region = 140  ;;  %s4463_s25 = sshll.u32 (!%p7085_p9), %s6086_s18, 6 }
 0x106   : > { %s1023_s10 = scalar_lea.sflag (!%p7085_p9), [#allocation3], %s6086_s18  ;;  %s6090_s13 = scalar_lea.vmem (!%p7085_p9), [#allocation2], %s4463_s25 }
 0x10a   : > { %5590 = dma.done.wait (%p5970_p10), %s1023_s10, 1024  }
 0x10b   : > { %5592 = vsyncadd (%p5970_p10), %s1023_s10, 4294966272  ;;  %s1032_s26 = sand.u32 1, %s5874_s23   ;;  %s7008_s1 = sshll.u32 %s6086_s18, 4 }
 0x10c   : > { %s1033_s28 = scalar_lea.sflag [#allocation6], %s1032_s26  ;;  %s6100_s14 = scalar_lea.vmem [#allocation5], %s7008_s1 }
 0x10d   : > { %5594 = dma.done.wait (%p5970_p10), %s1033_s28, 768  }
 0x10e   : > { %5596 = vsyncadd (%p5970_p10), %s1033_s28, 4294966528  ;;  %s4465_s7 = sshll.u32 %s6086_s18, 5  ;;  %p7086_p2 = scmp.eq.s32.totalorder %s5874_s23, 0 }
 0x10f   : > { %s6107_s11 = scalar_lea.vmem [#allocation7], %s4465_s7 }
 0x110   : > { %5598 = dma.done.wait (%p7086_p2), [#allocation9], 1024   ;;  %p7087_p6 = pmov %p7086_p2 }
 0x111   : > { %p7088_p11 = pmov %p7086_p2 }
 0x112   : > { %5600 = vsyncadd (%p7087_p6), [#allocation9], 4294966272 }
 0x113   : > { %5602 = dma.done.wait (%p7088_p11), [#allocation12], 1024   ;;  %p7089_p12 = pmov %p7086_p2 }
 0x114   : > { %p7090_p13 = pmov %p7086_p2 }
 0x115   : > { %5604 = vsyncadd (%p7089_p12), [#allocation12], 4294966272 }
 0x116   : > { %5606 = dma.done.wait (%p7090_p13), [#allocation15], 1024   ;;  %p7091_p10 = pmov %p7086_p2 }
 0x117   : > { %p7092_p7 = pmov %p7086_p2 }
 0x118   : > { %5608 = vsyncadd (%p7091_p10), [#allocation15], 4294966272 }
 0x119   : > { %5610 = dma.done.wait (%p7092_p7), [#allocation18], 544   ;;  %p7093_p1 = pmov %p7086_p2 }
 0x11a   : > { %s7094_s5 = sld [smem:[#allocation28_spill]]  ;;  %p1179_p5 = scmp.lt.s32.totalorder %s5874_s23, 3  ;;  %v4731_v0 = vld [vmem:[%s7059_s21 + $0x8] sm:$0xff]  ;;  %v1187_v3 = vld [vmem:[%s6100_s14] sm:$0xff]  ;;  %vm1232_vm0 = vcmask 261120   ;;  %vm1312_vm1 = vcmask 64512   ;;  %v1193_v43 = vlaneseq }
 0x11b   : > { %5612 = vsyncadd (%p7093_p1), [#allocation18], 4294966752  ;;  %s7095_s29 = sld [smem:[#allocation33_spill]]  ;;  %v1188_v4 = vld [vmem:[%s6100_s14 + $0x8] sm:$0xff]  ;;  %1242 = vmatpush.bf16.msra.mxu0 %v4731_v0  ;;  %v4730_v5 = vld [vmem:[%s7059_s21] sm:$0xff]  ;;  %s7023_s19 = smov 88  }
 0x11c   : > { %s1180_s3 = scalar_select %p1179_p5, %s5874_s23, 3  ;;  %v4733_v8 = vld [vmem:[#allocation8 + $0x8] sm:$0xff]  ;;  %v4732_v9 = vld [vmem:[#allocation8] sm:$0xff]  ;;  %v1194_v44 = vshrl.u32 %v1193_v43, 7  ;;  %v1197_v45 = vand.u32 127, %v1193_v43  ;;  %vm1333_vm3 = vcmask 130048  }
 0x11d   : > { %s7096_s27 = sld [smem:[#allocation35_spill]]  ;;  %1280 = vmatpush.bf16.msra.mxu1 %v4733_v8  ;;  %s5678_s6 = smov 96   ;;  %v5679_v49 = vmov -1e+30  }
 0x11e   : > { %s4729_s4 = sshll.u32 %s1180_s3, 4  ;;  %v1198_v46 = vand.u32 1, %v1194_v44  ;;  %v1200_v47 = vand.u32 1, %v1197_v45  ;;  %v1195_v48 = vadd.s32 8, %v1194_v44  ;;  %s7021_s8 = smov 120  }
 0x11f   : > { %1243 = vmatpush.bf16.msra.mxu0 %v4730_v5  ;;  %s7010_s30 = smov 80   ;;  %s7011_s20 = smov 112  }
 0x120   : > { %s1183_s0 = scalar_lea.vmem %s7094_s5, %s4729_s4  ;;  %vm1201_vm2 = vcmp.eq.s32.totalorder %v1198_v46, %v1200_v47  ;;  %v1199_v51 = vand.u32 1, %v1195_v48  ;;  %s7009_s25 = smov 72  }
 0x121   : > { %v6129_v1 = vld [vmem:[%s1183_s0] sm:$0xff]  ;;  %v6131_v2 = vld [vmem:[%s1183_s0 + $0x8] sm:$0xff]  ;;  %1281 = vmatpush.bf16.msra.mxu1 %v4732_v9  ;;  %v6152_v50 = vsel %vm1201_vm2, 0.0, %v5679_v49  ;;  %s7019_s10 = smov 104   ;;  %s7017_s26 = smov 8  }
 0x122   : > { %v1209_v6 = vadd.f32 %v1187_v3, %v6129_v1  ;;  %v1210_v7 = vadd.f32 %v1188_v4, %v6131_v2  ;;  %v1250_v11 = vpack.c.bf16 %v6131_v2, %v6129_v1  ;;  %v5017_v12 = vld [vmem:[%s7095_s29] ss:$0 sm:$0xff]  ;;  %vm1202_vm4 = vcmp.eq.s32.totalorder %v1199_v51, %v1200_v47  ;;  %s7015_s28 = smov 16   ;;  %s7013_s7 = smov 24  }
 0x123   : > { %v5018_v14 = vld [vmem:[%s7096_s27] ss:$0 sm:$0xff]  ;;  %v6156_v55 = vsel %vm1202_vm4, 0.0, %v5679_v49  ;;  %s7099_s3 = sld [smem:[#allocation37_spill]]  ;;  %s7115_s5 = smov 120  }
 0x124   : > { %v1211_v10 = vpack.c.bf16 %v1210_v7, %v1209_v6  ;;  %4494 = vmatmul.msk.bf16.vlgmr.msra.gmra.mxu1 %vm1232_vm0, %v1250_v11  ;;  %s7100_s4 = sld [smem:[#allocation43_spill]]  ;;  %s7116_s9 = smov 80  }
 0x125   : > { %s7101_s0 = sld [smem:[#allocation38_spill]]  ;;  %s7117_s12 = smov 104  }
 0x126   : > { %4485 = vmatmul.msk.bf16.vlgmr.msra.gmra.mxu0 %vm1232_vm0, %v1211_v10  ;;  %s7102_s1 = sld [smem:[#allocation39_spill]]  ;;  %s7118_s17 = smov 72  }
 0x1a1   : > { %v1283_v15 = vpop.f32.mrf.mxu1 }
 0x1a2   : > { %v1284_v17 = vadd.f32 %v5018_v14, %v1283_v15 }
 0x1a3   : > { %v1245_v13 = vpop.f32.mrf.mxu0 }
 0x1a4   : > { %v1246_v16 = vadd.f32 %v5017_v12, %v1245_v13  ;;  %v1298_v22 = vpack.c.bf16 %v1284_v17, %v1284_v17 }
 0x1a6   : > { %v1292_v18 = vmul.f32 0.35355338, %v1246_v16  ;;  %v1296_v19 = vpack.c.bf16 %v1246_v16, %v1246_v16  ;;  %v1385_v31 = vunpack.c.l.b16 %v1298_v22 }
 0x1a8   : > { %v1294_v24 = vpack.c.bf16 %v1292_v18, %v1292_v18  ;;  %v1307_v28 = vunpack.c.l.b16 %v1296_v19 }
 0x1a9   : > { %v1285_v23 = vpop.f32.mrf.mxu1 }
 0x1aa   : > { %v1286_v27 = vadd.f32 %v5018_v14, %v1285_v23  ;;  %v1302_v33 = vunpack.c.l.b16 %v1294_v24 }
 0x1ab   : > { %v1247_v20 = vpop.f32.mrf.mxu0 }
 0x1ac   : > { %v1248_v21 = vadd.f32 %v5017_v12, %v1247_v20  ;;  %v1299_v32 = vpack.c.bf16 %v1286_v27, %v1286_v27 }
 0x1ae   : > { %v1293_v25 = vmul.f32 0.35355338, %v1248_v21  ;;  %v1297_v26 = vpack.c.bf16 %v1248_v21, %v1248_v21  ;;  %v1386_v36 = vunpack.c.l.b16 %v1299_v32 }
 0x1b0   : > { %v1295_v29 = vpack.c.bf16 %v1293_v25, %v1293_v25  ;;  %v1308_v30 = vunpack.c.l.b16 %v1297_v26  ;;  %v6146_v38 = vpack.c.b16 %v1386_v36, %v1385_v31 }
 0x1b2   : > { %v1303_v34 = vunpack.c.l.b16 %v1295_v29  ;;  %v1309_v35 = vpack.c.b16 %v1308_v30, %v1307_v28  ;;  %1399 = vmatpush.bf16.msra.mxu3 %v6146_v38 }
 0x1b4   : > { %v1304_v37 = vpack.c.b16 %v1303_v34, %v1302_v33  ;;  %1408 = vrot.lane.b32.xlu2 %v1309_v35, %s7023_s19  ;;  %1310 = vrot.lane.b32.xlu0 %v1309_v35, %s5678_s6  ;;  %s7113_s19 = sld [smem:[#allocation54_spill]] }
 0x20e   : > { %v1409_v39 = vpop.permute.xlu2 %1408 }
 0x20f   : > { %v1414_v40 = vsel %vm1312_vm1, %v1409_v39, 0 }
 0x210   : > { %1423 = vmatpush.bf16.xpose.msrb.mxu3 %v1414_v40 }
 0x226   : > { %v1311_v41 = vpop.permute.xlu0 %1310 }
 0x227   : > { %v1317_v42 = vsel %vm1312_vm1, %v1311_v41, 0 }
 0x228   : > { %1326 = vmatpush.bf16.xpose.msra.mxu2 %v1317_v42 }
 0x22f   : > { %4495 = vmatmul.msk.bf16.vlgmr.msra.gmra.mxu2 %vm1312_vm1, %v1304_v37 }
 0x2b2   : > { %v1328_v52 = vpop.f32.mrf.mxu2 }
 0x2b3   : > { %v1329_v53 = vadd.f32 %v1328_v52, %v6152_v50 }
 0x2b5   : > { %v1334_v54 = vsel %vm1333_vm3, %v1329_v53, -inf }
 0x2b6   : > { %1335 = vmax.xlane.f32.xlu0 %v1334_v54 }
 0x2ba   : > { %v1330_v56 = vpop.f32.mrf.mxu2 }
 0x2bb   : > { %v1331_v57 = vadd.f32 %v1330_v56, %v6156_v55 }
 0x2bd   : > { %v1337_v58 = vsel %vm1333_vm3, %v1331_v57, -inf }
 0x2be   : > { %1338 = vmax.xlane.f32.xlu1 %v1337_v58 }
 0x329   : > { %v1336_v59 = vpop.xlane.xlu0 %1335 }
 0x32a   : > { %v1340_v60 = vsub.f32 %v1329_v53, %v1336_v59 }
 0x32c   : > { %v1342_v61 = vmul.f32 1.442695, %v1340_v60 }
 0x32e   : > { %5049 = vpow2.f32 %v1342_v61 }
 0x331   : > { %v1339_v62 = vpop.xlane.xlu1 %1338 }
 0x332   : > { %v1341_v63 = vsub.f32 %v1331_v57, %v1339_v62 }
 0x334   : > { %v5050_v0 = vpop.eup %5049  ;;  %v1344_v3 = vmul.f32 1.442695, %v1341_v63 }
 0x335   : > { %v1346_v4 = vsel %vm1333_vm3, %v5050_v0, 0.0 }
 0x336   : > { %5051 = vpow2.f32 %v1344_v3  ;;  %1347 = vadd.xlane.f32.xlu1 %v1346_v4 }
 0x33c   : > { %v5052_v5 = vpop.eup %5051 }
 0x33d   : > { %v1349_v6 = vsel %vm1333_vm3, %v5052_v5, 0.0 }
 0x33e   : > { %1350 = vadd.xlane.f32.xlu2 %v1349_v6 }
 0x34f   : > { %1406 = vrot.lane.b32.xlu1 %v1304_v37, %s7021_s8 }
 0x356   : > { %1501 = vrot.lane.b32.xlu2 %v1309_v35, %s7010_s30  ;;  %s7104_s30 = sld [smem:[#allocation45_spill]] }
 0x357   : > { %1499 = vrot.lane.b32.xlu1 %v1304_v37, %s7011_s20 }
 0x35e   : > { %1594 = vrot.lane.b32.xlu2 %v1309_v35, %s7009_s25  ;;  %s7103_s25 = sld [smem:[#allocation41_spill]] }
 0x366   : > { %1592 = vrot.lane.b32.xlu2 %v1304_v37, %s7019_s10 }
 0x3a9   : > { %v1348_v7 = vpop.xlane.xlu1 %1347 }
 0x3aa   : > { %5053 = vrcp.f32 %v1348_v7  ;;  %v1363_v17 = vand.u32 2147483648, %v1348_v7  ;;  %vm1357_vm6 = vweird.f32 %v1348_v7  ;;  %v1361_v19 = vand.u32 2147483647, %v1348_v7 }
 0x3ac   : > { %v1364_v25 = vor.u32 1.1754944e-38, %v1363_v17  ;;  %vm1362_vm9 = vcmp.eq.f32.partialorder %v1361_v19, 8.507059e+37 }
 0x3b0   : > { %v5054_v8 = vpop.eup %5053 }
 0x3b1   : > { %v1353_v9 = vmul.f32 %v5054_v8, %v1348_v7  ;;  %v1351_v10 = vpop.xlane.xlu2 %1350  ;;  %vm1358_vm5 = vweird.f32 %v5054_v8 }
 0x3b2   : > { %5055 = vrcp.f32 %v1351_v10  ;;  %vm1359_vm7 = vmor %vm1357_vm6, %vm1358_vm5  ;;  %v1377_v21 = vand.u32 2147483648, %v1351_v10  ;;  %v1375_v23 = vand.u32 2147483647, %v1351_v10  ;;  %vm1371_vm10 = vweird.f32 %v1351_v10 }
 0x3b3   : > { %v1354_v11 = vsub.f32 1.0, %v1353_v9 }
 0x3b4   : > { %v1378_v27 = vor.u32 1.1754944e-38, %v1377_v21  ;;  %vm1376_vm12 = vcmp.eq.f32.partialorder %v1375_v23, 8.507059e+37 }
 0x3b5   : > { %v1355_v12 = vmul.f32 %v5054_v8, %v1354_v11 }
 0x3b7   : > { %v1356_v14 = vadd.f32 %v5054_v8, %v1355_v12 }
 0x3b8   : > { %v5056_v13 = vpop.eup %5055 }
 0x3b9   : > { %v1367_v15 = vmul.f32 %v5056_v13, %v1351_v10  ;;  %v1502_v16 = vpop.permute.xlu2 %1501  ;;  %vm1372_vm8 = vweird.f32 %v5056_v13  ;;  %v1360_v24 = vsel %vm1359_vm7, %v5054_v8, %v1356_v14 }
 0x3ba   : > { %v1507_v18 = vsel %vm1312_vm1, %v1502_v16, 0  ;;  %vm1373_vm11 = vmor %vm1371_vm10, %vm1372_vm8  ;;  %v1365_v28 = vsel %vm1362_vm9, %v1364_v25, %v1360_v24 }
 0x3bb   : > { %v1368_v20 = vsub.f32 1.0, %v1367_v15  ;;  %1516 = vmatpush.bf16.xpose.msrb.mxu1 %v1507_v18  ;;  %v1380_v32 = vmul.f32 %v5050_v0, %v1365_v28 }
 0x3bd   : > { %v1369_v22 = vmul.f32 %v5056_v13, %v1368_v20 }
 0x3bf   : > { %v1370_v26 = vadd.f32 %v5056_v13, %v1369_v22 }
 0x3c1   : > { %v1407_v29 = vpop.permute.xlu1 %1406  ;;  %v1374_v30 = vsel %vm1373_vm11, %v5056_v13, %v1370_v26  ;;  %v1595_v34 = vpop.permute.xlu2 %1594 }
 0x3c2   : > { %v1379_v31 = vsel %vm1376_vm12, %v1378_v27, %v1374_v30  ;;  %v1600_v36 = vsel %vm1312_vm1, %v1595_v34, 0 }
 0x3c3   : > { %v1381_v33 = vmul.f32 %v5052_v5, %v1379_v31 }
 0x3c5   : > { %v1382_v35 = vpack.c.bf16 %v1381_v33, %v1380_v32 }
 0x3c7   : > { %4496 = vmatmul.msk.bf16.vlgmr.msra.gmra.mxu3 %vm1333_vm3, %v1382_v35 }
 0x3c8   : > { %1609 = vmatpush.bf16.xpose.msra.mxu3 %v1600_v36 }
 0x3c9   : > { %v1500_v37 = vpop.permute.xlu1 %1499  ;;  %v1593_v39 = vpop.permute.xlu2 %1592 }
 0x3ca   : > { %4499 = vmatmul.msk.bf16.vlgmr.msrb.gmra.mxu1 %vm1312_vm1, %v1500_v37 }
 0x3d7   : > { %4497 = vmatmul.msk.bf16.vlgmr.msrb.gmra.mxu3 %vm1312_vm1, %v1407_v29 }
 0x3e7   : > { %4501 = vmatmul.msk.bf16.vlgmr.msra.gmra.mxu3 %vm1312_vm1, %v1593_v39 }
 0x447   : > { %v1518_v40 = vpop.f32.mrf.mxu1 }
 0x448   : > { %v1519_v41 = vadd.f32 %v1518_v40, %v6152_v50 }
 0x44a   : > { %v6174_v42 = vpop.f32.mrf.mxu3  ;;  %v1523_v43 = vsel %vm1333_vm3, %v1519_v41, -inf }
 0x44b   : > { %1524 = vmax.xlane.f32.xlu2 %v1523_v43 }
 0x44f   : > { %v1520_v44 = vpop.f32.mrf.mxu1 }
 0x450   : > { %v1521_v45 = vadd.f32 %v1520_v44, %v6156_v55 }
 0x452   : > { %v6178_v46 = vpop.f32.mrf.mxu3  ;;  %v1526_v47 = vsel %vm1333_vm3, %v1521_v45, -inf }
 0x453   : > { %1527 = vmax.xlane.f32.xlu0 %v1526_v47 }
 0x45a   : > { %v1425_v48 = vpop.f32.mrf.mxu3 }
 0x45b   : > { %v1426_v49 = vadd.f32 %v1425_v48, %v6152_v50 }
 0x45d   : > { %v1430_v51 = vsel %vm1333_vm3, %v1426_v49, -inf }
 0x45e   : > { %1431 = vmax.xlane.f32.xlu1 %v1430_v51 }
 0x462   : > { %v1427_v52 = vpop.f32.mrf.mxu3 }
 0x463   : > { %v1428_v53 = vadd.f32 %v1427_v52, %v6156_v55 }
 0x465   : > { %v1433_v54 = vsel %vm1333_vm3, %v1428_v53, -inf }
 0x466   : > { %1434 = vmax.xlane.f32.xlu0 %v1433_v54 }
 0x46a   : > { %v1611_v56 = vpop.f32.mrf.mxu3 }
 0x46b   : > { %v1612_v57 = vadd.f32 %v1611_v56, %v6152_v50 }
 0x46d   : > { %v1616_v58 = vsel %vm1333_vm3, %v1612_v57, -inf }
 0x46e   : > { %1617 = vmax.xlane.f32.xlu0 %v1616_v58 }
 0x472   : > { %v1613_v59 = vpop.f32.mrf.mxu3 }
 0x473   : > { %v1614_v60 = vadd.f32 %v1613_v59, %v6156_v55 }
 0x475   : > { %v1619_v61 = vsel %vm1333_vm3, %v1614_v60, -inf }
 0x476   : > { %1620 = vmax.xlane.f32.xlu0 %v1619_v61 }
 0x4be   : > { %v1525_v62 = vpop.xlane.xlu2 %1524 }
 0x4bf   : > { %v1529_v63 = vsub.f32 %v1519_v41, %v1525_v62 }
 0x4c1   : > { %v1531_v0 = vmul.f32 1.442695, %v1529_v63 }
 0x4c3   : > { %5057 = vpow2.f32 %v1531_v0 }
 0x4c6   : > { %v1528_v3 = vpop.xlane.xlu0 %1527 }
 0x4c7   : > { %v1530_v4 = vsub.f32 %v1521_v45, %v1528_v3 }
 0x4c9   : > { %v6189_v5 = vpop.eup %5057  ;;  %v1533_v6 = vmul.f32 1.442695, %v1530_v4 }
 0x4ca   : > { %v1535_v7 = vsel %vm1333_vm3, %v6189_v5, 0.0 }
 0x4cb   : > { %5059 = vpow2.f32 %v1533_v6  ;;  %1536 = vadd.xlane.f32.xlu1 %v1535_v7 }
 0x4d1   : > { %v6193_v8 = vpop.eup %5059  ;;  %v1432_v9 = vpop.xlane.xlu1 %1431 }
 0x4d2   : > { %v1436_v10 = vsub.f32 %v1426_v49, %v1432_v9  ;;  %v1538_v11 = vsel %vm1333_vm3, %v6193_v8, 0.0 }
 0x4d3   : > { %1539 = vadd.xlane.f32.xlu2 %v1538_v11 }
 0x4d4   : > { %v1438_v12 = vmul.f32 1.442695, %v1436_v10 }
 0x4d6   : > { %5061 = vpow2.f32 %v1438_v12 }
 0x4d9   : > { %v1435_v13 = vpop.xlane.xlu0 %1434 }
 0x4da   : > { %v1437_v14 = vsub.f32 %v1428_v53, %v1435_v13 }
 0x4dc   : > { %v6197_v15 = vpop.eup %5061  ;;  %v1440_v16 = vmul.f32 1.442695, %v1437_v14 }
 0x4dd   : > { %v1442_v17 = vsel %vm1333_vm3, %v6197_v15, 0.0 }
 0x4de   : > { %5063 = vpow2.f32 %v1440_v16  ;;  %1443 = vadd.xlane.f32.xlu0 %v1442_v17 }
 0x4e1   : > { %v1618_v18 = vpop.xlane.xlu0 %1617 }
 0x4e2   : > { %v1622_v19 = vsub.f32 %v1612_v57, %v1618_v18 }
 0x4e4   : > { %v6201_v20 = vpop.eup %5063  ;;  %v1624_v21 = vmul.f32 1.442695, %v1622_v19 }
 0x4e5   : > { %v1445_v22 = vsel %vm1333_vm3, %v6201_v20, 0.0 }
 0x4e6   : > { %5065 = vpow2.f32 %v1624_v21  ;;  %1446 = vadd.xlane.f32.xlu0 %v1445_v22 }
 0x4e9   : > { %v1621_v23 = vpop.xlane.xlu0 %1620 }
 0x4ea   : > { %v1623_v24 = vsub.f32 %v1614_v60, %v1621_v23 }
 0x4eb   : > { %1479 = vrot.lane.b32.xlu2 %v6146_v38, %s7021_s8 }
 0x4ec   : > { %v6207_v25 = vpop.eup %5065  ;;  %v1626_v26 = vmul.f32 1.442695, %v1623_v24 }
 0x4ed   : > { %v1628_v27 = vsel %vm1333_vm3, %v6207_v25, 0.0 }
 0x4ee   : > { %5067 = vpow2.f32 %v1626_v26  ;;  %1629 = vadd.xlane.f32.xlu0 %v1628_v27 }
 0x4f4   : > { %v6211_v28 = vpop.eup %5067 }
 0x4f5   : > { %v1631_v29 = vsel %vm1333_vm3, %v6211_v28, 0.0 }
 0x4f6   : > { %1632 = vadd.xlane.f32.xlu1 %v1631_v29 }
 0x502   : > { %1572 = vrot.lane.b32.xlu0 %v6146_v38, %s7011_s20 }
 0x50f   : > { %1665 = vrot.lane.b32.xlu1 %v6146_v38, %s7019_s10 }
 0x53e   : > { %v6221_v33 = vpop.xlane.xlu1 %1536 }
 0x53f   : > { %vm1546_vm11 = vweird.f32 %v6221_v33  ;;  %v1552_v14 = vand.u32 2147483648, %v6221_v33  ;;  %v1550_v18 = vand.u32 2147483647, %v6221_v33 }
 0x541   : > { %v1553_v27 = vor.u32 1.1754944e-38, %v1552_v14 }
 0x546   : > { %v6219_v30 = vpop.xlane.xlu2 %1539 }
 0x547   : > { %vm1560_vm6 = vweird.f32 %v6219_v30  ;;  %v1566_v6 = vand.u32 2147483648, %v6219_v30  ;;  %v1564_v13 = vand.u32 2147483647, %v6219_v30 }
 0x549   : > { %v1567_v23 = vor.u32 1.1754944e-38, %v1566_v6 }
 0x54e   : > { %v1480_v31 = vpop.permute.xlu2 %1479 }
 0x54f   : > { %1492 = vmatpush.bf16.msrb.mxu0 %v1480_v31 }
 0x551   : > { %v1444_v32 = vpop.xlane.xlu0 %1443 }
 0x552   : > { %5069 = vrcp.f32 %v1444_v32  ;;  %v1459_v52 = vand.u32 2147483648, %v1444_v32  ;;  %vm1453_vm14 = vweird.f32 %v1444_v32  ;;  %v1457_v56 = vand.u32 2147483647, %v1444_v32 }
 0x553   : > { %5071 = vrcp.f32 %v6219_v30 }
 0x554   : > { %5073 = vrcp.f32 %v6221_v33  ;;  %v1460_v63 = vor.u32 1.1754944e-38, %v1459_v52  ;;  %vm1458_vm8 = vcmp.eq.f32.partialorder %v1457_v56, 8.507059e+37 }
 0x558   : > { %v5070_v34 = vpop.eup %5069 }
 0x559   : > { %v6225_v35 = vpop.eup %5071  ;;  %v1449_v36 = vmul.f32 %v5070_v34, %v1444_v32  ;;  %v1447_v37 = vpop.xlane.xlu0 %1446  ;;  %vm1454_vm13 = vweird.f32 %v5070_v34 }
 0x55a   : > { %5075 = vrcp.f32 %v1447_v37  ;;  %v6227_v39 = vpop.eup %5073  ;;  %v1556_v40 = vmul.f32 %v6225_v35, %v6219_v30  ;;  %vm6237_vm15 = vmor %vm1453_vm14, %vm1454_vm13  ;;  %v1473_v59 = vand.u32 2147483648, %v1447_v37  ;;  %v1471_v62 = vand.u32 2147483647, %v1447_v37 }
 0x55b   : > { %v1450_v38 = vsub.f32 1.0, %v1449_v36  ;;  %v1542_v41 = vmul.f32 %v6227_v39, %v6221_v33  ;;  %vm1547_vm4 = vweird.f32 %v6227_v39  ;;  %vm1467_vm5 = vweird.f32 %v1447_v37 }
 0x55c   : > { %v1557_v45 = vsub.f32 1.0, %v1556_v40  ;;  %vm1561_vm7 = vweird.f32 %v6225_v35  ;;  %v1474_v9 = vor.u32 1.1754944e-38, %v1473_v59  ;;  %vm1472_vm10 = vcmp.eq.f32.partialorder %v1471_v62, 8.507059e+37  ;;  %vm1548_vm13 = vmor %vm1546_vm11, %vm1547_vm4 }
 0x55d   : > { %v1451_v43 = vmul.f32 %v5070_v34, %v1450_v38  ;;  %v1543_v49 = vsub.f32 1.0, %v1542_v41  ;;  %vm1562_vm12 = vmor %vm1560_vm6, %vm1561_vm7  ;;  %vm1565_vm14 = vcmp.eq.f32.partialorder %v1564_v13, 8.507059e+37  ;;  %vm1713_vm11 = vcmask 195584  }
 0x55e   : > { %v1558_v54 = vmul.f32 %v6225_v35, %v1557_v45 }
 0x55f   : > { %v1452_v51 = vadd.f32 %v5070_v34, %v1451_v43  ;;  %v1544_v60 = vmul.f32 %v6227_v39, %v1543_v49 }
 0x560   : > { %v5076_v44 = vpop.eup %5075  ;;  %v1559_v4 = vadd.f32 %v6225_v35, %v1558_v54 }
 0x561   : > { %v1463_v47 = vmul.f32 %v5076_v44, %v1447_v37  ;;  %v6233_v48 = vpop.xlane.xlu0 %1629  ;;  %vm1468_vm2 = vweird.f32 %v5076_v44  ;;  %v1456_v61 = vsel %vm6237_vm15, %v5070_v34, %v1452_v51  ;;  %v1545_v12 = vadd.f32 %v6227_v39, %v1544_v60 }
 0x562   : > { %5077 = vrcp.f32 %v6233_v48  ;;  %vm1469_vm9 = vmor %vm1467_vm5, %vm1468_vm2  ;;  %v1461_v11 = vsel %vm1458_vm8, %v1460_v63, %v1456_v61  ;;  %v1563_v19 = vsel %vm1562_vm12, %v6225_v35, %v1559_v4  ;;  %vm1551_vm15 = vcmp.eq.f32.partialorder %v1550_v18, 8.507059e+37 }
 0x563   : > { %v1464_v53 = vsub.f32 1.0, %v1463_v47  ;;  %v1476_v21 = vmul.f32 %v6197_v15, %v1461_v11  ;;  %v1549_v24 = vsel %vm1548_vm13, %v6227_v39, %v1545_v12  ;;  %v1568_v30 = vsel %vm1565_vm14, %v1567_v23, %v1563_v19 }
 0x564   : > { %v1554_v33 = vsel %vm1551_vm15, %v1553_v27, %v1549_v24  ;;  %v1570_v15 = vmul.f32 %v6193_v8, %v1568_v30  ;;  %v1645_v8 = vand.u32 2147483648, %v6233_v48  ;;  %vm1639_vm7 = vweird.f32 %v6233_v48 }
 0x565   : > { %v1465_v58 = vmul.f32 %v5076_v44, %v1464_v53  ;;  %v1569_v36 = vmul.f32 %v6189_v5, %v1554_v33  ;;  %v1643_v5 = vand.u32 2147483647, %v6233_v48  ;;  %v5688_v33 = vmov 32.0  }
 0x566   : > { %v1646_v49 = vor.u32 1.1754944e-38, %v1645_v8 }
 0x567   : > { %v1466_v0 = vadd.f32 %v5076_v44, %v1465_v58  ;;  %v1571_v38 = vpack.c.bf16 %v1570_v15, %v1569_v36  ;;  %v1190_v36 = vld [vmem:[%s6107_s11 + $0x8] sm:$0xff] }
 0x568   : > { %v6245_v3 = vpop.eup %5077 }
 0x569   : > { %v1470_v7 = vsel %vm1469_vm9, %v5076_v44, %v1466_v0  ;;  %v1633_v10 = vpop.xlane.xlu1 %1632  ;;  %v1635_v16 = vmul.f32 %v6245_v3, %v6233_v48  ;;  %vm1640_vm4 = vweird.f32 %v6245_v3  ;;  %v4735_v0 = vld [vmem:[#allocation10 + $0x8] sm:$0xff] }
 0x56a   : > { %5079 = vrcp.f32 %v1633_v10  ;;  %v1475_v17 = vsel %vm1472_vm10, %v1474_v9, %v1470_v7  ;;  %v1659_v39 = vand.u32 2147483648, %v1633_v10  ;;  %vm1653_vm5 = vweird.f32 %v1633_v10  ;;  %vm1641_vm8 = vmor %vm1639_vm7, %vm1640_vm4  ;;  %1742 = vmatpush.bf16.msra.mxu1 %v4735_v0  ;;  %v4737_v0 = vld [vmem:[#allocation11 + $0x8] sm:$0xff] }
 0x56b   : > { %v1477_v22 = vmul.f32 %v6201_v20, %v1475_v17  ;;  %v1636_v29 = vsub.f32 1.0, %v1635_v16  ;;  %v1657_v43 = vand.u32 2147483647, %v1633_v10  ;;  %vm1644_vm10 = vcmp.eq.f32.partialorder %v1643_v5, 8.507059e+37  ;;  %v1191_v5 = vld [vmem:[%s6107_s11 + $0x10] sm:$0xff] }
 0x56c   : > { %v1660_v45 = vor.u32 1.1754944e-38, %v1659_v39  ;;  %5081 = vrcp.f32 %v5688_v33  ;;  %v5020_v33 = vld [vmem:[%s7101_s0] ss:$0 sm:$0xff] }
 0x56d   : > { %v1478_v26 = vpack.c.bf16 %v1477_v22, %v1476_v21  ;;  %v1637_v20 = vmul.f32 %v6245_v3, %v1636_v29  ;;  %vm1658_vm9 = vcmp.eq.f32.partialorder %v1657_v43, 8.507059e+37 }
 0x56f   : > { %4498 = vmatmul.msk.bf16.vlgmr.msrb.gmra.mxu0 %vm1333_vm3, %v1478_v26  ;;  %v1638_v40 = vadd.f32 %v6245_v3, %v1637_v20 }
 0x570   : > { %v5080_v31 = vpop.eup %5079 }
 0x571   : > { %v1649_v32 = vmul.f32 %v5080_v31, %v1633_v10  ;;  %vm1654_vm2 = vweird.f32 %v5080_v31  ;;  %v1642_v47 = vsel %vm1641_vm8, %v6245_v3, %v1638_v40  ;;  %v4734_v3 = vld [vmem:[#allocation10] sm:$0xff] }
 0x572   : > { %vm1655_vm6 = vmor %vm1653_vm5, %vm1654_vm2  ;;  %v1647_v52 = vsel %vm1644_vm10, %v1646_v49, %v1642_v47  ;;  %1743 = vmatpush.bf16.msra.mxu1 %v4734_v3  ;;  %v5082_v15 = vpop.eup %5081  ;;  %v6313_v47 = vld [vmem:[%s6090_s13 + $0x10] sm:$0xff]  ;;  %v6316_v49 = vld [vmem:[%s6090_s13 + $0x18] sm:$0xff] }
 0x573   : > { %v1650_v34 = vsub.f32 1.0, %v1649_v32  ;;  %v1662_v54 = vmul.f32 %v6207_v25, %v1647_v52  ;;  %v1761_v20 = vmul.f32 32.0, %v5082_v15  ;;  %vm1765_vm12 = vweird.f32 %v5082_v15 }
 0x574   : > { %v1573_v35 = vpop.permute.xlu0 %1572 }
 0x575   : > { %v1651_v37 = vmul.f32 %v5080_v31, %v1650_v34  ;;  %1585 = vmatpush.bf16.msrb.mxu2 %v1573_v35  ;;  %v4739_v34 = vld [vmem:[#allocation13 + $0x8] sm:$0xff]  ;;  %v1189_v35 = vld [vmem:[%s6107_s11] sm:$0xff]  ;;  %v1762_v39 = vsub.f32 1.0, %v1761_v20 }
 0x576   : > { %1893 = vmatpush.bf16.msrb.mxu3 %v4739_v34 }
 0x577   : > { %v1652_v41 = vadd.f32 %v5080_v31, %v1651_v37  ;;  %v6303_v37 = vld [vmem:[%s6090_s13 + $0x8] sm:$0xff]  ;;  %v1763_v43 = vmul.f32 %v5082_v15, %v1762_v39  ;;  %v5021_v39 = vld [vmem:[%s7102_s1] ss:$0 sm:$0xff] }
 0x578   : > { %4500 = vmatmul.msk.bf16.vlgmr.msrb.gmra.mxu2 %vm1333_vm3, %v1571_v38  ;;  %v1856_v40 = vadd.f32 %v6303_v37, %v1190_v36 }
 0x579   : > { %v1656_v44 = vsel %vm1655_vm6, %v5080_v31, %v1652_v41  ;;  %v1764_v8 = vadd.f32 %v5082_v15, %v1763_v43  ;;  %1847 = vmatpush.bf16.msra.mxu2 %v4737_v0 }
 0x57a   : > { %v1661_v51 = vsel %vm1658_vm9, %v1660_v45, %v1656_v44  ;;  %v1192_v45 = vld [vmem:[%s6107_s11 + $0x18] sm:$0xff] }
 0x57b   : > { %v1663_v53 = vmul.f32 %v6211_v28, %v1661_v51  ;;  %v6309_v44 = vsel %vm1765_vm12, %v5082_v15, %v1764_v8 }
 0x57d   : > { %v1664_v57 = vpack.c.bf16 %v1663_v53, %v1662_v54  ;;  %v1857_v53 = vadd.f32 %v6313_v47, %v1191_v5  ;;  %v1858_v54 = vadd.f32 %v6316_v49, %v1192_v45 }
 0x581   : > { %v1666_v56 = vpop.permute.xlu1 %1665 }
 0x582   : > { %1678 = vmatpush.bf16.msra.mxu0 %v1666_v56 }
 0x585   : > { %4502 = vmatmul.msk.bf16.vlgmr.msra.gmra.mxu0 %vm1333_vm3, %v1664_v57 }
 0x5ec   : > { %v1494_v48 = vpop.f32.mrf.mxu0 }
 0x5f4   : > { %v1496_v58 = vpop.f32.mrf.mxu0 }
 0x5f5   : > { %v4957_v59 = vpack.i.bf16 %v1496_v58, %v1494_v48  ;;  %v1860_v48 = vpack.c.bf16 %v1858_v54, %v1857_v53  ;;  %v5207_v54 = vld [vmem:[%s6100_s14] sm:$0xff] }
 0x5f7   : > { %4958 = vrot.lane.b32.xlu0 %v4957_v59, %s7017_s26 }
 0x5fb   : > { %v1587_v60 = vpop.f32.mrf.mxu2 }
 0x602   : > { %v1680_v61 = vpop.f32.mrf.mxu0 }
 0x603   : > { %v1589_v62 = vpop.f32.mrf.mxu2 }
 0x604   : > { %v4962_v63 = vpack.i.bf16 %v1589_v62, %v1587_v60 }
 0x606   : > { %4963 = vrot.lane.b32.xlu2 %v4962_v63, %s7015_s28 }
 0x60a   : > { %v1682_v28 = vpop.f32.mrf.mxu0 }
 0x60b   : > { %v4967_v25 = vpack.i.bf16 %v1682_v28, %v1680_v61 }
 0x60d   : > { %4968 = vrot.lane.b32.xlu1 %v4967_v25, %s7013_s7 }
 0x660   : > { %v4964_v9 = vpop.permute.xlu2 %4963 }
 0x661   : > { %v4966_v12 = vunpack.i.h.bf16 %v4964_v9  ;;  %v4965_v13 = vunpack.i.l.bf16 %v4964_v9  ;;  %v5022_v9 = vld [vmem:[%s7100_s4] ss:$0 sm:$0xff] }
 0x669   : > { %v4959_v4 = vpop.permute.xlu0 %4958 }
 0x66a   : > { %v4961_v6 = vunpack.i.h.bf16 %v4959_v4  ;;  %v4960_v7 = vunpack.i.l.bf16 %v4959_v4  ;;  %v4736_v4 = vld [vmem:[#allocation11] sm:$0xff] }
 0x66b   : > { %1848 = vmatpush.bf16.msra.mxu2 %v4736_v4  ;;  %v5023_v4 = vld [vmem:[%s7103_s25] ss:$0 sm:$0xff] }
 0x66c   : > { %v1710_v10 = vsel %vm1312_vm1, %v6178_v46, %v4961_v6  ;;  %v1709_v11 = vsel %vm1312_vm1, %v6174_v42, %v4960_v7  ;;  %v5019_v46 = vld [vmem:[%s7099_s3] ss:$0 sm:$0xff] }
 0x66d   : > { %v1711_v18 = vsel %vm1333_vm3, %v1709_v11, %v4965_v13  ;;  %v1712_v19 = vsel %vm1333_vm3, %v1710_v10, %v4966_v12 }
 0x67f   : > { %v4969_v14 = vpop.permute.xlu1 %4968 }
 0x680   : > { %v4971_v16 = vunpack.i.h.bf16 %v4969_v14  ;;  %v4970_v17 = vunpack.i.l.bf16 %v4969_v14 }
 0x682   : > { %v1715_v21 = vsel %vm1713_vm11, %v1712_v19, %v4971_v16  ;;  %v1714_v22 = vsel %vm1713_vm11, %v1711_v18, %v4970_v17 }
 0x683   : > { %v1716_v23 = vpack.c.bf16 %v1715_v21, %v1714_v22 }
 0x685   : > { %4511 = vmatmul.msk.bf16.vlgmr.msra.gmra.mxu1 %vm1232_vm0, %v1716_v23 }
 0x702   : > { %v1745_v42 = vpop.f32.mrf.mxu1 }
 0x703   : > { %v1746_v24 = vadd.f32 %v5019_v46, %v1745_v42 }
 0x705   : > { %v1750_v26 = vadd.f32 %v1746_v24, %v6129_v1  ;;  %v6300_v1 = vld [vmem:[%s6090_s13] sm:$0xff] }
 0x706   : > { %v1855_v38 = vadd.f32 %v6300_v1, %v1189_v35 }
 0x707   : > { %v1754_v27 = vsel %vm1232_vm0, %v1750_v26, 0.0 }
 0x708   : > { %1755 = vadd.xlane.f32.xlu0 %v1754_v27  ;;  %v1859_v41 = vpack.c.bf16 %v1856_v40, %v1855_v38 }
 0x70a   : > { %v1747_v29 = vpop.f32.mrf.mxu1 }
 0x70b   : > { %v1748_v30 = vadd.f32 %v5019_v46, %v1747_v29 }
 0x70d   : > { %v1751_v31 = vadd.f32 %v1748_v30, %v6131_v2  ;;  %v4738_v2 = vld [vmem:[#allocation13] sm:$0xff] }
 0x70e   : > { %1894 = vmatpush.bf16.msrb.mxu3 %v4738_v2 }
 0x70f   : > { %v1757_v32 = vsel %vm1232_vm0, %v1751_v31, 0.0 }
 0x710   : > { %1758 = vadd.xlane.f32.xlu2 %v1757_v32 }
 0x711   : > { %4529 = vmatmul.msk.bf16.vlgmr.msrb.gmra.mxu3 %vm1232_vm0, %v1859_v41 }
 0x721   : > { %4530 = vmatmul.msk.bf16.gmra.mxu3 %vm1232_vm0, %v1860_v48 }
 0x77b   : > { %v1756_v51 = vpop.xlane.xlu0 %1755 }
 0x77c   : > { %v1767_v52 = vmul.f32 %v6309_v44, %v1756_v51 }
 0x77e   : > { %v1769_v56 = vsub.f32 %v1750_v26, %v1767_v52 }
 0x780   : > { %v1771_v57 = vmul.f32 %v1769_v56, %v1769_v56 }
 0x782   : > { %v1773_v58 = vsel %vm1232_vm0, %v1771_v57, 0.0  ;;  %v5208_v57 = vld [vmem:[%s6100_s14 + $0x8] sm:$0xff] }
 0x783   : > { %v1759_v59 = vpop.xlane.xlu2 %1758  ;;  %1774 = vadd.xlane.f32.xlu1 %v1773_v58 }
 0x784   : > { %v1768_v60 = vmul.f32 %v6309_v44, %v1759_v59 }
 0x786   : > { %v1770_v61 = vsub.f32 %v1751_v31, %v1768_v60 }
 0x788   : > { %v1772_v62 = vmul.f32 %v1770_v61, %v1770_v61 }
 0x78a   : > { %v1776_v63 = vsel %vm1232_vm0, %v1772_v62, 0.0 }
 0x78b   : > { %1777 = vadd.xlane.f32.xlu0 %v1776_v63 }
 0x794   : > { %v1896_v10 = vpop.f32.mrf.mxu3 }
 0x795   : > { %v1897_v14 = vadd.f32 %v5022_v9, %v1896_v10 }
 0x797   : > { %v1961_v18 = vpack.c.bf16 %v1897_v14, %v1897_v14 }
 0x799   : > { %v1978_v24 = vunpack.c.l.b16 %v1961_v18 }
 0x79c   : > { %v1898_v19 = vpop.f32.mrf.mxu3 }
 0x79d   : > { %v1899_v22 = vadd.f32 %v5022_v9, %v1898_v19 }
 0x79f   : > { %v1962_v26 = vpack.c.bf16 %v1899_v22, %v1899_v22 }
 0x7a1   : > { %v1979_v30 = vunpack.c.l.b16 %v1962_v26 }
 0x7a3   : > { %v6328_v32 = vpack.c.b16 %v1979_v30, %v1978_v24  ;;  %v1906_v30 = vpack.c.bf16 %v6303_v37, %v6300_v1 }
 0x7a4   : > { %v1901_v20 = vpop.f32.mrf.mxu3 }
 0x7a5   : > { %2087 = vrot.lane.b32.xlu1 %v6328_v32, %s7021_s8  ;;  %v1902_v36 = vadd.f32 %v5022_v9, %v1901_v20  ;;  %v1988_v62 = vsel %vm1312_vm1, %v6328_v32, 0  ;;  %v1907_v20 = vpack.c.bf16 %v6316_v49, %v6313_v47 }
 0x7a7   : > { %v1963_v41 = vpack.c.bf16 %v1902_v36, %v1902_v36 }
 0x7a9   : > { %v1980_v52 = vunpack.c.l.b16 %v1963_v41 }
 0x7ac   : > { %v1903_v5 = vpop.f32.mrf.mxu3 }
 0x7ad   : > { %v1904_v45 = vadd.f32 %v5022_v9, %v1903_v5  ;;  %2188 = vrot.lane.b32.xlu1 %v6328_v32, %s7011_s20 }
 0x7af   : > { %v1964_v53 = vpack.c.bf16 %v1904_v45, %v1904_v45 }
 0x7b1   : > { %v1981_v58 = vunpack.c.l.b16 %v1964_v53 }
 0x7b3   : > { %v1983_v60 = vpack.c.b16 %v1981_v58, %v1980_v52 }
 0x7b5   : > { %2190 = vrot.lane.b32.xlu0 %v1983_v60, %s7011_s20  ;;  %2089 = vrot.lane.b32.xlu2 %v1983_v60, %s7021_s8 }
 0x7bd   : > { %2291 = vrot.lane.b32.xlu0 %v1983_v60, %s7019_s10 }
 0x7f6   : > { %v1775_v28 = vpop.xlane.xlu1 %1774 }
 0x7f7   : > { %v1779_v25 = vmul.f32 %v1775_v28, %v6309_v44 }
 0x7f9   : > { %v1781_v3 = vadd.f32 1e-05, %v1779_v25 }
 0x7fb   : > { %5083 = vrsqrt.f32 %v1781_v3  ;;  %vm1789_vm14 = vweird.f32 %v1781_v3 }
 0x7fe   : > { %v1778_v6 = vpop.xlane.xlu0 %1777 }
 0x7ff   : > { %v1780_v7 = vmul.f32 %v1778_v6, %v6309_v44 }
 0x801   : > { %v5084_v11 = vpop.eup %5083  ;;  %v1782_v12 = vadd.f32 1e-05, %v1780_v7 }
 0x802   : > { %v1784_v13 = vmul.f32 %v5084_v11, %v1781_v3  ;;  %vm1790_vm13 = vweird.f32 %v5084_v11 }
 0x803   : > { %5085 = vrsqrt.f32 %v1782_v12  ;;  %vm1791_vm15 = vmor %vm1789_vm14, %vm1790_vm13  ;;  %vm1799_vm4 = vweird.f32 %v1782_v12 }
 0x804   : > { %v1785_v16 = vmul.f32 %v5084_v11, %v1784_v13 }
 0x806   : > { %v1786_v17 = vmul.f32 0.5, %v1785_v16 }
 0x808   : > { %v1787_v21 = vsub.f32 1.5, %v1786_v17 }
 0x809   : > { %v5086_v23 = vpop.eup %5085 }
 0x80a   : > { %v1788_v46 = vmul.f32 %v5084_v11, %v1787_v21  ;;  %v1794_v42 = vmul.f32 %v5086_v23, %v1782_v12  ;;  %vm1800_vm2 = vweird.f32 %v5086_v23 }
 0x80b   : > { %vm1801_vm5 = vmor %vm1799_vm4, %vm1800_vm2 }
 0x80c   : > { %v1792_v27 = vsel %vm1791_vm15, %v5084_v11, %v1788_v46  ;;  %v1795_v29 = vmul.f32 %v5086_v23, %v1794_v42 }
 0x80d   : > { %v1803_v15 = vmul.f32 %v1792_v27, %v1769_v56  ;;  %v4741_v27 = vld [vmem:[#allocation14 + $0x8] sm:$0xff] }
 0x80e   : > { %v1796_v31 = vmul.f32 0.5, %v1795_v29  ;;  %1940 = vmatpush.bf16.msrb.mxu0 %v4741_v27  ;;  %v4740_v29 = vld [vmem:[#allocation14] sm:$0xff] }
 0x80f   : > { %v1808_v2 = vmul.f32 %v5020_v33, %v1803_v15  ;;  %v2090_v63 = vpop.permute.xlu2 %2089 }
 0x810   : > { %v1797_v34 = vsub.f32 1.5, %v1796_v31  ;;  %v2098_v25 = vsel %vm1312_vm1, %v2090_v63, 0 }
 0x811   : > { %v6334_v43 = vadd.f32 %v5021_v39, %v1808_v2 }
 0x812   : > { %v1798_v35 = vmul.f32 %v5086_v23, %v1797_v34  ;;  %1941 = vmatpush.bf16.msrb.mxu0 %v4740_v29 }
 0x813   : > { %v1815_v56 = vadd.f32 %v5207_v54, %v6334_v43 }
 0x814   : > { %v1802_v38 = vsel %vm1801_vm5, %v5086_v23, %v1798_v35 }
 0x815   : > { %v1804_v40 = vmul.f32 %v1802_v38, %v1770_v61  ;;  %v1991_v61 = vsel %vm1312_vm1, %v1983_v60, 0  ;;  %4539 = vmatmul.msk.bf16.vlgmr.msrb.gmra.mxu0 %vm1232_vm0, %v1906_v30 }
 0x816   : > { %1999 = vmatpush.bf16.xpose.msrb.mxu1 %v1991_v61 }
 0x817   : > { %v1809_v8 = vmul.f32 %v5020_v33, %v1804_v40  ;;  %v2088_v28 = vpop.permute.xlu1 %2087 }
 0x818   : > { %v2095_v9 = vsel %vm1312_vm1, %v2088_v28, 0 }
 0x819   : > { %v6338_v51 = vadd.f32 %v5021_v39, %v1809_v8 }
 0x81b   : > { %v1816_v48 = vadd.f32 %v5208_v57, %v6338_v51 }
 0x81d   : > { %v1817_v59 = vpack.c.bf16 %v1816_v48, %v1815_v56 }
 0x81e   : > { %2000 = vmatpush.bf16.xpose.msrb.mxu1 %v1988_v62 }
 0x81f   : > { %4520 = vmatmul.msk.bf16.vlgmr.msra.gmra.mxu2 %vm1232_vm0, %v1817_v59  ;;  %v2189_v10 = vpop.permute.xlu1 %2188 }
 0x820   : > { %v2196_v11 = vsel %vm1312_vm1, %v2189_v10, 0 }
 0x825   : > { %4540 = vmatmul.msk.bf16.gmra.mxu0 %vm1232_vm0, %v1907_v20 }
 0x826   : > { %2106 = vmatpush.bf16.xpose.msra.mxu1 %v2098_v25 }
 0x827   : > { %v2191_v0 = vpop.permute.xlu0 %2190 }
 0x828   : > { %v2199_v3 = vsel %vm1312_vm1, %v2191_v0, 0  ;;  %v5024_v0 = vld [vmem:[%s7104_s30] ss:$0 sm:$0xff] }
 0x829   : > { %2207 = vmatpush.bf16.xpose.msra.mxu3 %v2199_v3 }
 0x82e   : > { %2107 = vmatpush.bf16.xpose.msra.mxu1 %v2095_v9 }
 0x82f   : > { %v2292_v23 = vpop.permute.xlu0 %2291 }
 0x830   : > { %v2300_v46 = vsel %vm1312_vm1, %v2292_v23, 0 }
 0x831   : > { %2208 = vmatpush.bf16.xpose.msra.mxu3 %v2196_v11 }
 0x892   : > { %v1943_v40 = vpop.f32.mrf.mxu0 }
 0x893   : > { %v1944_v9 = vadd.f32 %v5024_v0, %v1943_v40 }
 0x89a   : > { %v1945_v56 = vpop.f32.mrf.mxu0 }
 0x89b   : > { %v1946_v10 = vadd.f32 %v5024_v0, %v1945_v56 }
 0x8a2   : > { %v1850_v6 = vpop.f32.mrf.mxu2  ;;  %v1948_v28 = vpop.f32.mrf.mxu0 }
 0x8a3   : > { %v1851_v7 = vadd.f32 %v5023_v4, %v1850_v6  ;;  %v1949_v3 = vadd.f32 %v5024_v0, %v1948_v28 }
 0x8a5   : > { %v1957_v12 = vmul.f32 0.35355338, %v1851_v7  ;;  %v1967_v11 = vpack.c.bf16 %v1949_v3, %v1949_v3 }
 0x8a7   : > { %v1959_v16 = vpack.c.bf16 %v1957_v12, %v1957_v12 }
 0x8a9   : > { %v1971_v19 = vunpack.c.l.b16 %v1959_v16 }
 0x8aa   : > { %v1852_v13 = vpop.f32.mrf.mxu2 }
 0x8ab   : > { %v1853_v14 = vadd.f32 %v5023_v4, %v1852_v13 }
 0x8ad   : > { %v1958_v17 = vmul.f32 0.35355338, %v1853_v14  ;;  %v1950_v14 = vpop.f32.mrf.mxu0 }
 0x8af   : > { %v1960_v18 = vpack.c.bf16 %v1958_v17, %v1958_v17  ;;  %v1951_v17 = vadd.f32 %v5024_v0, %v1950_v14 }
 0x8b1   : > { %v1972_v21 = vunpack.c.l.b16 %v1960_v18  ;;  %v1965_v18 = vpack.c.bf16 %v1944_v9, %v1944_v9 }
 0x8b3   : > { %v1973_v22 = vpack.c.b16 %v1972_v21, %v1971_v19  ;;  %v1966_v19 = vpack.c.bf16 %v1946_v10, %v1946_v10  ;;  %v2062_v21 = vunpack.c.l.b16 %v1967_v11 }
 0x8b5   : > { %2287 = vrot.lane.b32.xlu1 %v1973_v22, %s7019_s10  ;;  %2186 = vrot.lane.b32.xlu0 %v1973_v22, %s7011_s20 }
 0x8b6   : > { %2085 = vrot.lane.b32.xlu2 %v1973_v22, %s7021_s8  ;;  %4541 = vmatmul.msk.bf16.vlgmr.msrb.gmra.mxu1 %vm1312_vm1, %v1973_v22  ;;  %v1968_v22 = vpack.c.bf16 %v1951_v17, %v1951_v17 }
 0x8b7   : > { %2308 = vmatpush.bf16.xpose.msrb.mxu1 %v2300_v46  ;;  %v2060_v46 = vunpack.c.l.b16 %v1965_v18 }
 0x8b8   : > { %v2063_v23 = vunpack.c.l.b16 %v1968_v22 }
 0x8be   : > { %2289 = vrot.lane.b32.xlu2 %v6328_v32, %s7019_s10 }
 0x910   : > { %v2086_v42 = vpop.permute.xlu2 %2085 }
 0x911   : > { %4543 = vmatmul.msk.bf16.vlgmr.msra.gmra.mxu1 %vm1312_vm1, %v2086_v42  ;;  %v2061_v42 = vunpack.c.l.b16 %v1966_v19 }
 0x918   : > { %v2290_v24 = vpop.permute.xlu2 %2289 }
 0x919   : > { %v2297_v26 = vsel %vm1312_vm1, %v2290_v24, 0  ;;  %v6413_v24 = vpack.c.b16 %v2063_v23, %v2062_v21 }
 0x91a   : > { %2309 = vmatpush.bf16.xpose.msrb.mxu1 %v2297_v26  ;;  %v6416_v26 = vpack.c.b16 %v2061_v42, %v2060_v46 }
 0x91b   : > { %2077 = vmatpush.bf16.msrb.mxu2 %v6413_v24 }
 0x91f   : > { %2078 = vmatpush.bf16.msrb.mxu2 %v6416_v26 }
 0x927   : > { %v2288_v31 = vpop.permute.xlu1 %2287  ;;  %v2187_v32 = vpop.permute.xlu0 %2186 }
 0x928   : > { %4545 = vmatmul.msk.bf16.vlgmr.msra.gmra.mxu3 %vm1312_vm1, %v2187_v32  ;;  %4547 = vmatmul.msk.bf16.vlgmr.msrb.gmra.mxu1 %vm1312_vm1, %v2288_v31 }
 0x933   : > { %v2002_v33 = vpop.f32.mrf.mxu1 }
 0x934   : > { %v2003_v15 = vadd.f32 %v2002_v33, %v6152_v50 }
 0x936   : > { %v2007_v34 = vsel %vm1232_vm0, %v2003_v15, -inf }
 0x937   : > { %2008 = vmax.xlane.f32.xlu2 %v2007_v34 }
 0x93b   : > { %v2004_v1 = vpop.f32.mrf.mxu1 }
 0x93c   : > { %v2005_v37 = vadd.f32 %v2004_v1, %v6156_v55 }
 0x93e   : > { %v2010_v35 = vsel %vm1232_vm0, %v2005_v37, -inf }
 0x93f   : > { %2011 = vmax.xlane.f32.xlu0 %v2010_v35 }
 0x98e   : > { %v2109_v36 = vpop.f32.mrf.mxu1 }
 0x98f   : > { %v6378_v39 = vadd.f32 %v2109_v36, %v6152_v50 }
 0x991   : > { %v2114_v2 = vsel %vm1232_vm0, %v6378_v39, -inf }
 0x992   : > { %2115 = vmax.xlane.f32.xlu1 %v2114_v2 }
 0x996   : > { %v2111_v47 = vpop.f32.mrf.mxu1 }
 0x997   : > { %v6383_v49 = vadd.f32 %v2111_v47, %v6156_v55 }
 0x999   : > { %v2117_v38 = vsel %vm1232_vm0, %v6383_v49, -inf }
 0x99a   : > { %2118 = vmax.xlane.f32.xlu2 %v2117_v38 }
 0x9a5   : > { %v2311_v52 = vpop.f32.mrf.mxu1 }
 0x9a6   : > { %v6403_v6 = vadd.f32 %v2311_v52, %v6152_v50 }
 0x9a8   : > { %v2316_v16 = vsel %vm1232_vm0, %v6403_v6, -inf }
 0x9aa   : > { %v2009_v41 = vpop.xlane.xlu2 %2008 }
 0x9ab   : > { %v2013_v8 = vsub.f32 %v2003_v15, %v2009_v41  ;;  %v2210_v5 = vpop.f32.mrf.mxu3 }
 0x9ac   : > { %v2211_v45 = vadd.f32 %v2210_v5, %v6152_v50 }
 0x9ad   : > { %v2015_v53 = vmul.f32 1.442695, %v2013_v8  ;;  %v2313_v25 = vpop.f32.mrf.mxu1 }
 0x9ae   : > { %v2215_v54 = vsel %vm1232_vm0, %v2211_v45, -inf  ;;  %v6400_v4 = vadd.f32 %v2313_v25, %v6156_v55 }
 0x9af   : > { %5087 = vpow2.f32 %v2015_v53  ;;  %2216 = vmax.xlane.f32.xlu2 %v2215_v54 }
 0x9b0   : > { %v2319_v12 = vsel %vm1232_vm0, %v6400_v4, -inf }
 0x9b2   : > { %v2012_v57 = vpop.xlane.xlu0 %2011 }
 0x9b3   : > { %v2014_v48 = vsub.f32 %v2005_v37, %v2012_v57  ;;  %v2212_v58 = vpop.f32.mrf.mxu3 }
 0x9b4   : > { %v6390_v59 = vadd.f32 %v2212_v58, %v6156_v55 }
 0x9b5   : > { %v6392_v60 = vpop.eup %5087  ;;  %v2017_v61 = vmul.f32 1.442695, %v2014_v48 }
 0x9b6   : > { %v2019_v62 = vsel %vm1232_vm0, %v6392_v60, 0.0  ;;  %v2218_v63 = vsel %vm1232_vm0, %v6390_v59, -inf }
 0x9b7   : > { %5089 = vpow2.f32 %v2017_v61  ;;  %2020 = vadd.xlane.f32.xlu1 %v2019_v62  ;;  %2219 = vmax.xlane.f32.xlu0 %v2218_v63 }
 0x9bd   : > { %v6405_v7 = vpop.eup %5089 }
 0x9be   : > { %v2022_v13 = vsel %vm1232_vm0, %v6405_v7, 0.0 }
 0x9bf   : > { %2320 = vmax.xlane.f32.xlu1 %v2319_v12  ;;  %2023 = vadd.xlane.f32.xlu2 %v2022_v13 }
 0x9c0   : > { %2317 = vmax.xlane.f32.xlu0 %v2316_v16 }
 0x9d4   : > { %2163 = vrot.lane.b32.xlu0 %v6416_v26, %s7021_s8 }
 0x9d7   : > { %2165 = vrot.lane.b32.xlu2 %v6413_v24, %s7021_s8  ;;  %s7112_s8 = sld [smem:[#allocation53_spill]] }
 0x9df   : > { %2367 = vrot.lane.b32.xlu2 %v6413_v24, %s7019_s10 }
 0x9e7   : > { %2264 = vrot.lane.b32.xlu2 %v6416_v26, %s7011_s20 }
 0xa05   : > { %v2116_v27 = vpop.xlane.xlu1 %2115 }
 0xa06   : > { %v2120_v29 = vsub.f32 %v6378_v39, %v2116_v27 }
 0xa08   : > { %v2122_v30 = vmul.f32 1.442695, %v2120_v29 }
 0xa0a   : > { %5091 = vpow2.f32 %v2122_v30 }
 0xa0d   : > { %v2119_v33 = vpop.xlane.xlu2 %2118 }
 0xa0e   : > { %v2121_v34 = vsub.f32 %v6383_v49, %v2119_v33 }
 0xa10   : > { %v6428_v31 = vpop.eup %5091  ;;  %v2124_v37 = vmul.f32 1.442695, %v2121_v34 }
 0xa11   : > { %v2126_v32 = vsel %vm1232_vm0, %v6428_v31, 0.0 }
 0xa12   : > { %2127 = vadd.xlane.f32.xlu0 %v2126_v32 }
 0xa22   : > { %v2217_v15 = vpop.xlane.xlu2 %2216 }
 0xa23   : > { %v2221_v20 = vsub.f32 %v2211_v45, %v2217_v15 }
 0xa25   : > { %v2223_v1 = vmul.f32 1.442695, %v2221_v20 }
 0xa27   : > { %5093 = vpow2.f32 %v2223_v1 }
 0xa2a   : > { %v2021_v35 = vpop.xlane.xlu1 %2020  ;;  %v2220_v36 = vpop.xlane.xlu0 %2219 }
 0xa2b   : > { %5095 = vrcp.f32 %v2021_v35  ;;  %v2222_v2 = vsub.f32 %v6390_v59, %v2220_v36  ;;  %v2036_v25 = vand.u32 2147483648, %v2021_v35  ;;  %vm2030_vm7 = vweird.f32 %v2021_v35 }
 0xa2c   : > { %5097 = vpow2.f32 %v2124_v37  ;;  %v2034_v0 = vand.u32 2147483647, %v2021_v35 }
 0xa2d   : > { %v6433_v39 = vpop.eup %5093  ;;  %v2225_v40 = vmul.f32 1.442695, %v2222_v2  ;;  %v2037_v14 = vor.u32 1.1754944e-38, %v2036_v25 }
 0xa2e   : > { %v2227_v47 = vsel %vm1232_vm0, %v6433_v39, 0.0  ;;  %vm2035_vm10 = vcmp.eq.f32.partialorder %v2034_v0, 8.507059e+37 }
 0xa2f   : > { %2228 = vadd.xlane.f32.xlu1 %v2227_v47 }
 0xa31   : > { %v5096_v38 = vpop.eup %5095 }
 0xa32   : > { %v2026_v41 = vmul.f32 %v5096_v38, %v2021_v35  ;;  %v2321_v8 = vpop.xlane.xlu1 %2320  ;;  %v2024_v49 = vpop.xlane.xlu2 %2023  ;;  %vm2031_vm6 = vweird.f32 %v5096_v38 }
 0xa33   : > { %v6438_v5 = vpop.eup %5097  ;;  %5099 = vrcp.f32 %v2024_v49  ;;  %v2318_v45 = vpop.xlane.xlu0 %2317  ;;  %v2323_v54 = vsub.f32 %v6400_v4, %v2321_v8  ;;  %vm6446_vm8 = vmor %vm2030_vm7, %vm2031_vm6  ;;  %v2050_v9 = vand.u32 2147483648, %v2024_v49  ;;  %vm2044_vm12 = vweird.f32 %v2024_v49 }
 0xa34   : > { %v2027_v52 = vsub.f32 1.0, %v2026_v41  ;;  %v2322_v53 = vsub.f32 %v6403_v6, %v2318_v45  ;;  %5101 = vpow2.f32 %v2225_v40  ;;  %v2129_v48 = vsel %vm1232_vm0, %v6438_v5, 0.0 }
 0xa35   : > { %v2326_v59 = vmul.f32 1.442695, %v2323_v54  ;;  %v2048_v6 = vand.u32 2147483647, %v2024_v49  ;;  %v2051_v19 = vor.u32 1.1754944e-38, %v2050_v9 }
 0xa36   : > { %v2028_v56 = vmul.f32 %v5096_v38, %v2027_v52  ;;  %v2324_v57 = vmul.f32 1.442695, %v2322_v53 }
 0xa37   : > { %2130 = vadd.xlane.f32.xlu1 %v2129_v48  ;;  %vm2049_vm14 = vcmp.eq.f32.partialorder %v2048_v6, 8.507059e+37 }
 0xa38   : > { %5103 = vpow2.f32 %v2324_v57  ;;  %v2029_v61 = vadd.f32 %v5096_v38, %v2028_v56 }
 0xa39   : > { %v5100_v58 = vpop.eup %5099  ;;  %5105 = vpow2.f32 %v2326_v59 }
 0xa3a   : > { %v2040_v62 = vmul.f32 %v5100_v58, %v2024_v49  ;;  %v2166_v63 = vpop.permute.xlu2 %2165  ;;  %v6444_v28 = vpop.eup %5101  ;;  %v2033_v11 = vsel %vm6446_vm8, %v5096_v38, %v2029_v61  ;;  %vm2045_vm9 = vweird.f32 %v5100_v58 }
 0xa3b   : > { %2178 = vmatpush.bf16.msra.mxu2 %v2166_v63  ;;  %v2230_v13 = vsel %vm1232_vm0, %v6444_v28, 0.0  ;;  %v2038_v18 = vsel %vm2035_vm10, %v2037_v14, %v2033_v11  ;;  %vm2046_vm13 = vmor %vm2044_vm12, %vm2045_vm9 }
 0xa3c   : > { %v2041_v3 = vsub.f32 1.0, %v2040_v62  ;;  %v2053_v46 = vmul.f32 %v6392_v60, %v2038_v18 }
 0xa3e   : > { %v6450_v10 = vpop.eup %5103  ;;  %v2042_v12 = vmul.f32 %v5100_v58, %v2041_v3 }
 0xa3f   : > { %2231 = vadd.xlane.f32.xlu1 %v2230_v13  ;;  %v2328_v16 = vsel %vm1232_vm0, %v6450_v10, 0.0  ;;  %v6458_v22 = vpop.eup %5105 }
 0xa40   : > { %v2043_v17 = vadd.f32 %v5100_v58, %v2042_v12  ;;  %2329 = vadd.xlane.f32.xlu0 %v2328_v16  ;;  %v2331_v27 = vsel %vm1232_vm0, %v6458_v22, 0.0 }
 0xa42   : > { %v2047_v21 = vsel %vm2046_vm13, %v5100_v58, %v2043_v17  ;;  %v2368_v32 = vpop.permute.xlu2 %2367 }
 0xa43   : > { %v2052_v23 = vsel %vm2049_vm14, %v2051_v19, %v2047_v21 }
 0xa44   : > { %v2054_v42 = vmul.f32 %v6405_v7, %v2052_v23 }
 0xa46   : > { %v2055_v29 = vpack.c.bf16 %v2054_v42, %v2053_v46  ;;  %v2164_v30 = vpop.permute.xlu0 %2163 }
 0xa47   : > { %2332 = vadd.xlane.f32.xlu1 %v2331_v27  ;;  %2179 = vmatpush.bf16.msra.mxu2 %v2164_v30 }
 0xa48   : > { %4542 = vmatmul.msk.bf16.vlgmr.msrb.gmra.mxu2 %vm1232_vm0, %v2055_v29 }
 0xa4b   : > { %2380 = vmatpush.bf16.msrb.mxu2 %v2368_v32 }
 0xa54   : > { %2266 = vrot.lane.b32.xlu0 %v6413_v24, %s7011_s20  ;;  %s7107_s20 = sld [smem:[#allocation47_spill]] }
 0xa60   : > { %2365 = vrot.lane.b32.xlu1 %v6416_v26, %s7019_s10  ;;  %s7111_s10 = sld [smem:[#allocation51_spill]] }
 0xa85   : > { %v2128_v60 = vpop.xlane.xlu0 %2127 }
 0xa86   : > { %5107 = vrcp.f32 %v2128_v60  ;;  %v2143_v26 = vand.u32 2147483648, %v2128_v60  ;;  %vm2137_vm2 = vweird.f32 %v2128_v60  ;;  %v2141_v40 = vand.u32 2147483647, %v2128_v60 }
 0xa88   : > { %v2144_v53 = vor.u32 1.1754944e-38, %v2143_v26  ;;  %vm2142_vm6 = vcmp.eq.f32.partialorder %v2141_v40, 8.507059e+37 }
 0xa8c   : > { %v5108_v33 = vpop.eup %5107 }
 0xa8d   : > { %v2133_v15 = vmul.f32 %v5108_v33, %v2128_v60  ;;  %vm2138_vm15 = vweird.f32 %v5108_v33 }
 0xa8e   : > { %vm2139_vm4 = vmor %vm2137_vm2, %vm2138_vm15 }
 0xa8f   : > { %v2134_v20 = vsub.f32 1.0, %v2133_v15 }
 0xa91   : > { %v2135_v1 = vmul.f32 %v5108_v33, %v2134_v20 }
 0xa93   : > { %v2136_v36 = vadd.f32 %v5108_v33, %v2135_v1 }
 0xa95   : > { %v2140_v49 = vsel %vm2139_vm4, %v5108_v33, %v2136_v36  ;;  %v2265_v36 = vpop.permute.xlu2 %2264 }
 0xa96   : > { %v2145_v48 = vsel %vm2142_vm6, %v2144_v53, %v2140_v49 }
 0xa97   : > { %v2160_v3 = vmul.f32 %v6428_v31, %v2145_v48 }
 0xaa2   : > { %v6469_v7 = vpop.xlane.xlu1 %2228 }
 0xaa3   : > { %5109 = vrcp.f32 %v6469_v7  ;;  %vm2238_vm15 = vweird.f32 %v6469_v7  ;;  %v2242_v19 = vand.u32 2147483647, %v6469_v7 }
 0xaa9   : > { %v6472_v37 = vpop.eup %5109 }
 0xaaa   : > { %v2131_v34 = vpop.xlane.xlu1 %2130  ;;  %v2234_v47 = vmul.f32 %v6472_v37, %v6469_v7  ;;  %vm2239_vm12 = vweird.f32 %v6472_v37 }
 0xaab   : > { %5111 = vrcp.f32 %v2131_v34  ;;  %v2157_v8 = vand.u32 2147483648, %v2131_v34  ;;  %v2155_v52 = vand.u32 2147483647, %v2131_v34  ;;  %vm2151_vm7 = vweird.f32 %v2131_v34  ;;  %vm2240_vm2 = vmor %vm2238_vm15, %vm2239_vm12 }
 0xaac   : > { %v2235_v54 = vsub.f32 1.0, %v2234_v47 }
 0xaad   : > { %v2158_v58 = vor.u32 1.1754944e-38, %v2157_v8  ;;  %vm2156_vm9 = vcmp.eq.f32.partialorder %v2155_v52, 8.507059e+37 }
 0xaae   : > { %v2236_v25 = vmul.f32 %v6472_v37, %v2235_v54 }
 0xab0   : > { %v2237_v13 = vadd.f32 %v6472_v37, %v2236_v25  ;;  %v4742_v25 = vld [vmem:[#allocation16] sm:$0xff] }
 0xab1   : > { %v5112_v35 = vpop.eup %5111 }
 0xab2   : > { %v2147_v24 = vmul.f32 %v5112_v35, %v2131_v34  ;;  %v2232_v2 = vpop.xlane.xlu1 %2231  ;;  %vm2152_vm5 = vweird.f32 %v5112_v35  ;;  %v2241_v42 = vsel %vm2240_vm2, %v6472_v37, %v2237_v13 }
 0xab3   : > { %5113 = vrcp.f32 %v2232_v2  ;;  %v6476_v38 = vpop.xlane.xlu0 %2329  ;;  %vm2153_vm8 = vmor %vm2151_vm7, %vm2152_vm5  ;;  %v2258_v14 = vand.u32 2147483648, %v2232_v2  ;;  %vm2252_vm13 = vweird.f32 %v2232_v2  ;;  %v2256_v17 = vand.u32 2147483647, %v2232_v2 }
 0xab4   : > { %v2148_v41 = vsub.f32 1.0, %v2147_v24  ;;  %5115 = vrcp.f32 %v6476_v38  ;;  %vm2243_vm5 = vcmp.eq.f32.partialorder %v2242_v19, 8.507059e+37 }
 0xab5   : > { %v2259_v46 = vor.u32 1.1754944e-38, %v2258_v14  ;;  %vm2257_vm4 = vcmp.eq.f32.partialorder %v2256_v17, 8.507059e+37 }
 0xab6   : > { %v2149_v45 = vmul.f32 %v5112_v35, %v2148_v41 }
 0xab8   : > { %v2150_v56 = vadd.f32 %v5112_v35, %v2149_v45 }
 0xab9   : > { %v5114_v57 = vpop.eup %5113 }
 0xaba   : > { %v6479_v59 = vpop.eup %5115  ;;  %v2154_v61 = vsel %vm2153_vm8, %v5112_v35, %v2150_v56  ;;  %v2248_v62 = vmul.f32 %v5114_v57, %v2232_v2  ;;  %v2333_v63 = vpop.xlane.xlu1 %2332  ;;  %vm2253_vm10 = vweird.f32 %v5114_v57  ;;  %v2345_v35 = vand.u32 2147483648, %v6476_v38 }
 0xabb   : > { %v2159_v0 = vsel %vm2156_vm9, %v2158_v58, %v2154_v61  ;;  %5117 = vrcp.f32 %v2333_v63  ;;  %v2335_v9 = vmul.f32 %v6479_v59, %v6476_v38  ;;  %vm2254_vm14 = vmor %vm2252_vm13, %vm2253_vm10  ;;  %vm2340_vm7 = vweird.f32 %v6479_v59 }
 0xabc   : > { %v2161_v4 = vmul.f32 %v6438_v5, %v2159_v0  ;;  %v2249_v6 = vsub.f32 1.0, %v2248_v62  ;;  %v2244_v5 = vand.u32 2147483648, %v6469_v7  ;;  %vm2353_vm8 = vweird.f32 %v2333_v63 }
 0xabd   : > { %v2336_v18 = vsub.f32 1.0, %v2335_v9  ;;  %v2359_v7 = vand.u32 2147483648, %v2333_v63  ;;  %v2357_v37 = vand.u32 2147483647, %v2333_v63  ;;  %vm2339_vm10 = vweird.f32 %v6476_v38 }
 0xabe   : > { %v2250_v11 = vmul.f32 %v5114_v57, %v2249_v6  ;;  %v2162_v12 = vpack.c.bf16 %v2161_v4, %v2160_v3  ;;  %v2245_v30 = vor.u32 1.1754944e-38, %v2244_v5  ;;  %v2343_v2 = vand.u32 2147483647, %v6476_v38  ;;  %vm2341_vm12 = vmor %vm2339_vm10, %vm2340_vm7 }
 0xabf   : > { %v2337_v27 = vmul.f32 %v6479_v59, %v2336_v18  ;;  %v2360_v47 = vor.u32 1.1754944e-38, %v2359_v7  ;;  %vm2358_vm13 = vcmp.eq.f32.partialorder %v2357_v37, 8.507059e+37  ;;  %v2346_v41 = vor.u32 1.1754944e-38, %v2345_v35 }
 0xac0   : > { %v2251_v16 = vadd.f32 %v5114_v57, %v2250_v11  ;;  %4544 = vmatmul.msk.bf16.vlgmr.msra.gmra.mxu2 %vm1232_vm0, %v2162_v12  ;;  %v2246_v15 = vsel %vm2243_vm5, %v2245_v30, %v2241_v42 }
 0xac1   : > { %v5118_v31 = vpop.eup %5117  ;;  %v2338_v34 = vadd.f32 %v6479_v59, %v2337_v27  ;;  %v2261_v24 = vmul.f32 %v6433_v39, %v2246_v15 }
 0xac2   : > { %v2255_v21 = vsel %vm2254_vm14, %v5114_v57, %v2251_v16  ;;  %v2349_v23 = vmul.f32 %v5118_v31, %v2333_v63  ;;  %vm2354_vm6 = vweird.f32 %v5118_v31  ;;  %vm2344_vm14 = vcmp.eq.f32.partialorder %v2343_v2, 8.507059e+37  ;;  %v4743_v63 = vld [vmem:[#allocation16 + $0x8] sm:$0xff] }
 0xac3   : > { %v2260_v32 = vsel %vm2257_vm4, %v2259_v46, %v2255_v21  ;;  %vm2355_vm9 = vmor %vm2353_vm8, %vm2354_vm6  ;;  %2444 = vmatpush.bf16.msrb.mxu3 %v4743_v63  ;;  %v4745_v2 = vld [vmem:[#allocation17 + $0x8] sm:$0xff]  ;;  %vm2587_vm8 = vcmask 523264  }
 0xac4   : > { %v2350_v29 = vsub.f32 1.0, %v2349_v23  ;;  %v2262_v20 = vmul.f32 %v6444_v28, %v2260_v32  ;;  %v2342_v28 = vsel %vm2341_vm12, %v6479_v59, %v2338_v34  ;;  %v5025_v23 = vld [vmem:[%s7107_s20] ss:$0 sm:$0xff] }
 0xac5   : > { %v2347_v39 = vsel %vm2344_vm14, %v2346_v41, %v2342_v28  ;;  %v4744_v28 = vld [vmem:[#allocation17] sm:$0xff] }
 0xac6   : > { %v2351_v60 = vmul.f32 %v5118_v31, %v2350_v29  ;;  %v2267_v33 = vpop.permute.xlu0 %2266  ;;  %v2263_v40 = vpack.c.bf16 %v2262_v20, %v2261_v24  ;;  %v2362_v38 = vmul.f32 %v6450_v10, %v2347_v39 }
 0xac7   : > { %2279 = vmatpush.bf16.msra.mxu0 %v2267_v33  ;;  %2445 = vmatpush.bf16.msrb.mxu3 %v4742_v25 }
 0xac8   : > { %v2352_v1 = vadd.f32 %v5118_v31, %v2351_v60 }
 0xaca   : > { %v2356_v26 = vsel %vm2355_vm9, %v5118_v31, %v2352_v1 }
 0xacb   : > { %2280 = vmatpush.bf16.msra.mxu0 %v2265_v36  ;;  %v2361_v8 = vsel %vm2358_vm13, %v2360_v47, %v2356_v26  ;;  %v2080_v53 = vpop.f32.mrf.mxu2 }
 0xacc   : > { %v2363_v49 = vmul.f32 %v6458_v22, %v2361_v8 }
 0xace   : > { %4546 = vmatmul.msk.bf16.vlgmr.msra.gmra.mxu0 %vm1232_vm0, %v2263_v40  ;;  %v2364_v52 = vpack.c.bf16 %v2363_v49, %v2362_v38 }
 0xacf   : > { %2540 = vmatpush.bf16.msrb.mxu0 %v4745_v2 }
 0xad2   : > { %v2366_v45 = vpop.permute.xlu1 %2365 }
 0xad3   : > { %2381 = vmatpush.bf16.msrb.mxu2 %v2366_v45  ;;  %v2082_v54 = vpop.f32.mrf.mxu2  ;;  %2541 = vmatpush.bf16.msrb.mxu0 %v4744_v28  ;;  %v4751_v28 = vld [vmem:[%s7059_s21 + $0x18] sm:$0xff] }
 0xad6   : > { %4548 = vmatmul.msk.bf16.vlgmr.msrb.gmra.mxu2 %vm1232_vm0, %v2364_v52 }
 0xad7   : > { %2702 = vmatpush.bf16.msra.mxu2 %v4751_v28 }
 0xb43   : > { %v2181_v56 = vpop.f32.mrf.mxu2 }
 0xb4b   : > { %v2282_v57 = vpop.f32.mrf.mxu0  ;;  %v2183_v48 = vpop.f32.mrf.mxu2 }
 0xb4c   : > { %v4972_v58 = vpack.i.bf16 %v2183_v48, %v2181_v56 }
 0xb4e   : > { %4973 = vrot.lane.b32.xlu0 %v4972_v58, %s7017_s26  ;;  %s7110_s26 = sld [smem:[#allocation52_spill]] }
 0xb53   : > { %v2284_v59 = vpop.f32.mrf.mxu0 }
 0xb54   : > { %v4977_v61 = vpack.i.bf16 %v2284_v59, %v2282_v57 }
 0xb56   : > { %4978 = vrot.lane.b32.xlu2 %v4977_v61, %s7015_s28  ;;  %s7109_s28 = sld [smem:[#allocation49_spill]] }
 0xb59   : > { %v2383_v22 = vpop.f32.mrf.mxu2 }
 0xb5c   : > { %v5027_v63 = vld [vmem:[%s7109_s28] ss:$0 sm:$0xff] }
 0xb61   : > { %v2385_v62 = vpop.f32.mrf.mxu2 }
 0xb62   : > { %v4982_v10 = vpack.i.bf16 %v2385_v62, %v2383_v22 }
 0xb64   : > { %4983 = vrot.lane.b32.xlu0 %v4982_v10, %s7013_s7  ;;  %s7108_s7 = sld [smem:[#allocation48_spill]] }
 0xb6a   : > { %v5026_v61 = vld [vmem:[%s7108_s7] ss:$0 sm:$0xff] }
 0xbb0   : > { %v4979_v6 = vpop.permute.xlu2 %4978 }
 0xbb1   : > { %v4981_v12 = vunpack.i.h.bf16 %v4979_v6  ;;  %v4980_v13 = vunpack.i.l.bf16 %v4979_v6 }
 0xbc0   : > { %v4974_v0 = vpop.permute.xlu0 %4973 }
 0xbc1   : > { %v4976_v3 = vunpack.i.h.bf16 %v4974_v0  ;;  %v4975_v4 = vunpack.i.l.bf16 %v4974_v0 }
 0xbc3   : > { %v2413_v9 = vsel %vm1312_vm1, %v2082_v54, %v4976_v3  ;;  %v2412_v11 = vsel %vm1312_vm1, %v2080_v53, %v4975_v4 }
 0xbc4   : > { %v2414_v18 = vsel %vm1333_vm3, %v2412_v11, %v4980_v13  ;;  %v2415_v31 = vsel %vm1333_vm3, %v2413_v9, %v4981_v12  ;;  %v4749_v11 = vld [vmem:[%s7110_s26 + $0x18] sm:$0xff]  ;;  %v4748_v12 = vld [vmem:[%s7110_s26 + $0x10] sm:$0xff]  ;;  %v4747_v13 = vld [vmem:[%s7110_s26 + $0x8] sm:$0xff] }
 0xbc5   : > { %2595 = vmatpush.bf16.msra.mxu1 %v4749_v11 }
 0xbc9   : > { %2596 = vmatpush.bf16.msra.mxu1 %v4748_v12 }
 0xbcd   : > { %2597 = vmatpush.bf16.msra.mxu1 %v4747_v13 }
 0xbd6   : > { %v4984_v14 = vpop.permute.xlu0 %4983 }
 0xbd7   : > { %v4986_v16 = vunpack.i.h.bf16 %v4984_v14  ;;  %v4985_v17 = vunpack.i.l.bf16 %v4984_v14  ;;  %v4746_v14 = vld [vmem:[%s7110_s26] sm:$0xff] }
 0xbd8   : > { %2598 = vmatpush.bf16.msra.mxu1 %v4746_v14  ;;  %v6557_v14 = vld [vmem:[%s6100_s14] sm:$0xff] }
 0xbd9   : > { %v2417_v5 = vsel %vm1713_vm11, %v2415_v31, %v4986_v16  ;;  %v2416_v19 = vsel %vm1713_vm11, %v2414_v18, %v4985_v17  ;;  %v5028_v17 = vld [vmem:[%s7111_s10] ss:$0 sm:$0xff] }
 0xbda   : > { %v2418_v21 = vpack.c.bf16 %v2417_v5, %v2416_v19 }
 0xbdc   : > { %4557 = vmatmul.msk.bf16.vlgmr.msrb.gmra.mxu3 %vm1232_vm0, %v2418_v21 }
 0xc5f   : > { %v2447_v46 = vpop.f32.mrf.mxu3 }
 0xc60   : > { %v2448_v42 = vadd.f32 %v5025_v23, %v2447_v46  ;;  %v5029_v46 = vld [vmem:[%s7112_s8] ss:$0 sm:$0xff] }
 0xc62   : > { %v2452_v27 = vadd.f32 %v2448_v42, %v6334_v43 }
 0xc64   : > { %v2456_v29 = vsel %vm1232_vm0, %v2452_v27, 0.0 }
 0xc65   : > { %2457 = vadd.xlane.f32.xlu2 %v2456_v29 }
 0xc67   : > { %v2449_v30 = vpop.f32.mrf.mxu3 }
 0xc68   : > { %v2450_v32 = vadd.f32 %v5025_v23, %v2449_v30 }
 0xc6a   : > { %v2453_v60 = vadd.f32 %v2450_v32, %v6338_v51 }
 0xc6c   : > { %v2459_v33 = vsel %vm1232_vm0, %v2453_v60, 0.0 }
 0xc6d   : > { %2460 = vadd.xlane.f32.xlu0 %v2459_v33 }
 0xcd8   : > { %v2458_v15 = vpop.xlane.xlu2 %2457 }
 0xcd9   : > { %v2462_v7 = vmul.f32 %v2458_v15, %v6309_v44 }
 0xcdb   : > { %v2464_v20 = vsub.f32 %v2452_v27, %v2462_v7 }
 0xcdd   : > { %v2466_v34 = vmul.f32 %v2464_v20, %v2464_v20 }
 0xcdf   : > { %v2468_v1 = vsel %vm1232_vm0, %v2466_v34, 0.0 }
 0xce0   : > { %v2461_v37 = vpop.xlane.xlu0 %2460  ;;  %2469 = vadd.xlane.f32.xlu1 %v2468_v1 }
 0xce1   : > { %v2463_v43 = vmul.f32 %v2461_v37, %v6309_v44 }
 0xce3   : > { %v2465_v35 = vsub.f32 %v2453_v60, %v2463_v43 }
 0xce5   : > { %v2467_v36 = vmul.f32 %v2465_v35, %v2465_v35 }
 0xce7   : > { %v2471_v24 = vsel %vm1232_vm0, %v2467_v36, 0.0 }
 0xce8   : > { %2472 = vadd.xlane.f32.xlu2 %v2471_v24 }
 0xd53   : > { %v2470_v51 = vpop.xlane.xlu1 %2469 }
 0xd54   : > { %v2474_v26 = vmul.f32 %v2470_v51, %v6309_v44 }
 0xd56   : > { %v2476_v47 = vadd.f32 1e-05, %v2474_v26  ;;  %v4753_v26 = vld [vmem:[#allocation8 + $0x18] sm:$0xff] }
 0xd57   : > { %2742 = vmatpush.bf16.msra.mxu3 %v4753_v26 }
 0xd58   : > { %5119 = vrsqrt.f32 %v2476_v47  ;;  %vm2484_vm2 = vweird.f32 %v2476_v47 }
 0xd5b   : > { %v2473_v40 = vpop.xlane.xlu2 %2472 }
 0xd5c   : > { %v2475_v41 = vmul.f32 %v2473_v40, %v6309_v44 }
 0xd5e   : > { %v5120_v8 = vpop.eup %5119  ;;  %v2477_v39 = vadd.f32 1e-05, %v2475_v41  ;;  %v4752_v41 = vld [vmem:[#allocation8 + $0x10] sm:$0xff] }
 0xd5f   : > { %v2479_v49 = vmul.f32 %v5120_v8, %v2476_v47  ;;  %vm2485_vm15 = vweird.f32 %v5120_v8  ;;  %2743 = vmatpush.bf16.msra.mxu3 %v4752_v41 }
 0xd60   : > { %5121 = vrsqrt.f32 %v2477_v39  ;;  %vm2486_vm4 = vmor %vm2484_vm2, %vm2485_vm15  ;;  %vm2494_vm6 = vweird.f32 %v2477_v39 }
 0xd61   : > { %v2480_v38 = vmul.f32 %v5120_v8, %v2479_v49 }
 0xd63   : > { %v2481_v45 = vmul.f32 0.5, %v2480_v38 }
 0xd65   : > { %v2482_v52 = vsub.f32 1.5, %v2481_v45 }
 0xd66   : > { %v5122_v53 = vpop.eup %5121 }
 0xd67   : > { %v2483_v54 = vmul.f32 %v5120_v8, %v2482_v52  ;;  %v2489_v56 = vmul.f32 %v5122_v53, %v2477_v39  ;;  %vm2495_vm5 = vweird.f32 %v5122_v53 }
 0xd68   : > { %vm2496_vm7 = vmor %vm2494_vm6, %vm2495_vm5 }
 0xd69   : > { %v2490_v57 = vmul.f32 %v5122_v53, %v2489_v56  ;;  %v2487_v48 = vsel %vm2486_vm4, %v5120_v8, %v2483_v54  ;;  %v4750_v8 = vld [vmem:[%s7059_s21 + $0x10] sm:$0xff]  ;;  %s7119_s21 = smov 112  }
 0xd6a   : > { %v2498_v22 = vmul.f32 %v2487_v48, %v2464_v20  ;;  %2703 = vmatpush.bf16.msra.mxu2 %v4750_v8 }
 0xd6b   : > { %v2491_v58 = vmul.f32 0.5, %v2490_v57 }
 0xd6c   : > { %v2503_v25 = vmul.f32 %v5026_v61, %v2498_v22 }
 0xd6d   : > { %v2492_v59 = vsub.f32 1.5, %v2491_v58 }
 0xd6e   : > { %v2508_v4 = vadd.f32 %v5027_v63, %v2503_v25 }
 0xd6f   : > { %v2493_v62 = vmul.f32 %v5122_v53, %v2492_v59 }
 0xd71   : > { %v2497_v10 = vsel %vm2496_vm7, %v5122_v53, %v2493_v62  ;;  %v5030_v62 = vld [vmem:[%s7113_s19] ss:$0 sm:$0xff] }
 0xd72   : > { %v2499_v0 = vmul.f32 %v2497_v10, %v2465_v35 }
 0xd74   : > { %v2504_v3 = vmul.f32 %v5026_v61, %v2499_v0  ;;  %v5031_v0 = vld [vmem:[#allocation19] ss:$0 sm:$0xff] }
 0xd76   : > { %v2509_v6 = vadd.f32 %v5027_v63, %v2504_v3 }
 0xd78   : > { %v2510_v9 = vpack.c.bf16 %v2509_v6, %v2508_v4 }
 0xd7a   : > { %4566 = vmatmul.msk.bf16.vlgmr.msrb.gmra.mxu0 %vm1232_vm0, %v2510_v9 }
 0xdf7   : > { %v2543_v16 = vpop.f32.mrf.mxu0 }
 0xdf8   : > { %v2544_v18 = vadd.f32 %v5028_v17, %v2543_v16 }
 0xdfa   : > { %v2548_v19 = vmax.f32 %v2544_v18, 0.0 }
 0xdff   : > { %v2545_v31 = vpop.f32.mrf.mxu0 }
 0xe00   : > { %v2546_v5 = vadd.f32 %v5028_v17, %v2545_v31  ;;  %v6562_v17 = vld [vmem:[%s6100_s14 + $0x8] sm:$0xff]  ;;  %s7114_s14 = smov 88  }
 0xe02   : > { %v2549_v21 = vmax.f32 %v2546_v5, 0.0  ;;  %v5032_v5 = vld [vmem:[%s7096_s27 + $0x1] ss:$0 sm:$0xff] }
 0xe04   : > { %v2550_v23 = vpack.c.bf16 %v2549_v21, %v2548_v19  ;;  %v5033_v21 = vld [vmem:[%s7095_s29 + $0x1] ss:$0 sm:$0xff] }
 0xe06   : > { %4583 = vmatmul.msk.bf16.vlgmr.msra.gmra.mxu1 %vm2587_vm8, %v2550_v23 }
 0xe83   : > { %v2600_v42 = vpop.f32.mrf.mxu1 }
 0xe84   : > { %v2601_v27 = vadd.f32 %v5029_v46, %v2600_v42 }
 0xe86   : > { %v2605_v29 = vadd.f32 %v2601_v27, %v2508_v4 }
 0xe88   : > { %v2609_v30 = vsel %vm1232_vm0, %v2605_v29, 0.0 }
 0xe89   : > { %2610 = vadd.xlane.f32.xlu0 %v2609_v30 }
 0xe8b   : > { %v2602_v32 = vpop.f32.mrf.mxu1 }
 0xe8c   : > { %v2603_v60 = vadd.f32 %v5029_v46, %v2602_v32 }
 0xe8e   : > { %v2606_v33 = vadd.f32 %v2603_v60, %v2509_v6 }
 0xe90   : > { %v2612_v15 = vsel %vm1232_vm0, %v2606_v33, 0.0 }
 0xe91   : > { %2613 = vadd.xlane.f32.xlu1 %v2612_v15 }
 0xefc   : > { %v2611_v7 = vpop.xlane.xlu0 %2610 }
 0xefd   : > { %v2615_v20 = vmul.f32 %v2611_v7, %v6309_v44 }
 0xeff   : > { %v2617_v34 = vsub.f32 %v2605_v29, %v2615_v20 }
 0xf01   : > { %v2619_v1 = vmul.f32 %v2617_v34, %v2617_v34 }
 0xf03   : > { %v2621_v37 = vsel %vm1232_vm0, %v2619_v1, 0.0 }
 0xf04   : > { %v2614_v43 = vpop.xlane.xlu1 %2613  ;;  %2622 = vadd.xlane.f32.xlu2 %v2621_v37 }
 0xf05   : > { %v2616_v35 = vmul.f32 %v2614_v43, %v6309_v44 }
 0xf07   : > { %v2618_v36 = vsub.f32 %v2606_v33, %v2616_v35 }
 0xf09   : > { %v2620_v24 = vmul.f32 %v2618_v36, %v2618_v36 }
 0xf0b   : > { %v2624_v51 = vsel %vm1232_vm0, %v2620_v24, 0.0 }
 0xf0c   : > { %2625 = vadd.xlane.f32.xlu0 %v2624_v51 }
 0xf77   : > { %v2623_v2 = vpop.xlane.xlu2 %2622 }
 0xf78   : > { %v2627_v47 = vmul.f32 %v2623_v2, %v6309_v44 }
 0xf7a   : > { %v2629_v40 = vadd.f32 1e-05, %v2627_v47 }
 0xf7c   : > { %5123 = vrsqrt.f32 %v2629_v40  ;;  %vm2637_vm10 = vweird.f32 %v2629_v40 }
 0xf7f   : > { %v2626_v39 = vpop.xlane.xlu0 %2625 }
 0xf80   : > { %v2628_v49 = vmul.f32 %v2626_v39, %v6309_v44 }
 0xf82   : > { %v5124_v38 = vpop.eup %5123  ;;  %v2630_v45 = vadd.f32 1e-05, %v2628_v49 }
 0xf83   : > { %v2632_v52 = vmul.f32 %v5124_v38, %v2629_v40  ;;  %vm2638_vm9 = vweird.f32 %v5124_v38 }
 0xf84   : > { %5125 = vrsqrt.f32 %v2630_v45  ;;  %vm2639_vm12 = vmor %vm2637_vm10, %vm2638_vm9  ;;  %vm2647_vm14 = vweird.f32 %v2630_v45 }
 0xf85   : > { %v2633_v53 = vmul.f32 %v5124_v38, %v2632_v52 }
 0xf87   : > { %v2634_v54 = vmul.f32 0.5, %v2633_v53 }
 0xf89   : > { %v2635_v56 = vsub.f32 1.5, %v2634_v54 }
 0xf8a   : > { %v5126_v57 = vpop.eup %5125 }
 0xf8b   : > { %v2636_v48 = vmul.f32 %v5124_v38, %v2635_v56  ;;  %v2642_v58 = vmul.f32 %v5126_v57, %v2630_v45  ;;  %vm2648_vm13 = vweird.f32 %v5126_v57 }
 0xf8c   : > { %vm2649_vm15 = vmor %vm2647_vm14, %vm2648_vm13 }
 0xf8d   : > { %v2640_v59 = vsel %vm2639_vm12, %v5124_v38, %v2636_v48  ;;  %v2643_v61 = vmul.f32 %v5126_v57, %v2642_v58 }
 0xf8e   : > { %v2651_v10 = vmul.f32 %v2640_v59, %v2617_v34 }
 0xf8f   : > { %v2644_v22 = vmul.f32 0.5, %v2643_v61 }
 0xf90   : > { %v2656_v3 = vmul.f32 %v5030_v62, %v2651_v10 }
 0xf91   : > { %v2645_v63 = vsub.f32 1.5, %v2644_v22 }
 0xf92   : > { %v6550_v9 = vadd.f32 %v5031_v0, %v2656_v3 }
 0xf93   : > { %v2646_v25 = vmul.f32 %v5126_v57, %v2645_v63 }
 0xf94   : > { %v2668_v16 = vadd.f32 %v6557_v14, %v6550_v9 }
 0xf95   : > { %v2650_v4 = vsel %vm2649_vm15, %v5126_v57, %v2646_v25 }
 0xf96   : > { %v2652_v6 = vmul.f32 %v2650_v4, %v2618_v36 }
 0xf98   : > { %v2657_v11 = vmul.f32 %v5030_v62, %v2652_v6 }
 0xf9a   : > { %v6552_v12 = vadd.f32 %v5031_v0, %v2657_v11 }
 0xf9c   : > { %v2710_v13 = vpack.c.bf16 %v6552_v12, %v6550_v9  ;;  %v2669_v18 = vadd.f32 %v6562_v17, %v6552_v12 }
 0xf9e   : > { %4611 = vmatmul.msk.bf16.vlgmr.msra.gmra.mxu3 %vm1232_vm0, %v2710_v13  ;;  %v2670_v31 = vpack.c.bf16 %v2669_v18, %v2668_v16 }
 0xfa0   : > { %4601 = vmatmul.msk.bf16.vlgmr.msra.gmra.mxu2 %vm1232_vm0, %v2670_v31 }
0x1021   : > { %v2745_v19 = vpop.f32.mrf.mxu3 }
0x1022   : > { %v2746_v46 = vadd.f32 %v5032_v5, %v2745_v19 }
0x1023   : > { %v2705_v23 = vpop.f32.mrf.mxu2 }
0x1024   : > { %v2706_v42 = vadd.f32 %v5033_v21, %v2705_v23  ;;  %v2761_v27 = vpack.c.bf16 %v2746_v46, %v2746_v46 }
0x1026   : > { %v2755_v30 = vmul.f32 0.35355338, %v2706_v42  ;;  %v2759_v33 = vpack.c.bf16 %v2706_v42, %v2706_v42  ;;  %v2846_v20 = vunpack.c.l.b16 %v2761_v27 }
0x1028   : > { %v2757_v34 = vpack.c.bf16 %v2755_v30, %v2755_v30  ;;  %v2770_v35 = vunpack.c.l.b16 %v2759_v33 }
0x1029   : > { %v2747_v29 = vpop.f32.mrf.mxu3 }
0x102a   : > { %v2748_v32 = vadd.f32 %v5032_v5, %v2747_v29  ;;  %v2765_v2 = vunpack.c.l.b16 %v2757_v34 }
0x102b   : > { %v2707_v60 = vpop.f32.mrf.mxu2 }
0x102c   : > { %v2762_v15 = vpack.c.bf16 %v2748_v32, %v2748_v32  ;;  %v2708_v7 = vadd.f32 %v5033_v21, %v2707_v60 }
0x102e   : > { %v2847_v1 = vunpack.c.l.b16 %v2762_v15  ;;  %v2756_v37 = vmul.f32 0.35355338, %v2708_v7  ;;  %v2760_v43 = vpack.c.bf16 %v2708_v7, %v2708_v7 }
0x1030   : > { %v6570_v36 = vpack.c.b16 %v2847_v1, %v2846_v20  ;;  %v2758_v24 = vpack.c.bf16 %v2756_v37, %v2756_v37  ;;  %v2771_v51 = vunpack.c.l.b16 %v2760_v43 }
0x1032   : > { %v2766_v26 = vunpack.c.l.b16 %v2758_v24  ;;  %v2772_v47 = vpack.c.b16 %v2771_v51, %v2770_v35  ;;  %2860 = vmatpush.bf16.msrb.mxu1 %v6570_v36 }
0x1034   : > { %v2767_v28 = vpack.c.b16 %v2766_v26, %v2765_v2  ;;  %2773 = vrot.lane.b32.xlu0 %v2772_v47, %s5678_s6  ;;  %2869 = vrot.lane.b32.xlu1 %v2772_v47, %s7114_s14  ;;  %s7134_s6 = smov 24  }
0x1036   : > { %2867 = vrot.lane.b32.xlu2 %v2767_v28, %s7115_s5 }
0x103c   : > { %2962 = vrot.lane.b32.xlu0 %v2772_v47, %s7116_s9  ;;  %3053 = vrot.lane.b32.xlu1 %v2767_v28, %s7117_s12  ;;  %s7132_s9 = smov 8  }
0x103e   : > { %3055 = vrot.lane.b32.xlu2 %v2772_v47, %s7118_s17  ;;  %s7133_s17 = smov 16  }
0x1046   : > { %2960 = vrot.lane.b32.xlu2 %v2767_v28, %s7119_s21 }
0x1090   : > { %v2868_v40 = vpop.permute.xlu2 %2867 }
0x1098   : > { %v3056_v41 = vpop.permute.xlu2 %3055 }
0x1099   : > { %v3061_v45 = vsel %vm1312_vm1, %v3056_v41, 0 }
0x10a0   : > { %v2961_v54 = vpop.permute.xlu2 %2960 }
0x10a6   : > { %v2774_v8 = vpop.permute.xlu0 %2773  ;;  %v2870_v39 = vpop.permute.xlu1 %2869 }
0x10a7   : > { %v2779_v49 = vsel %vm1312_vm1, %v2774_v8, 0  ;;  %v2875_v38 = vsel %vm1312_vm1, %v2870_v39, 0 }
0x10a8   : > { %2788 = vmatpush.bf16.xpose.msra.mxu0 %v2779_v49  ;;  %2884 = vmatpush.bf16.xpose.msrb.mxu2 %v2875_v38 }
0x10ae   : > { %v2963_v52 = vpop.permute.xlu0 %2962  ;;  %v3054_v56 = vpop.permute.xlu1 %3053 }
0x10af   : > { %v2968_v53 = vsel %vm1312_vm1, %v2963_v52, 0  ;;  %4612 = vmatmul.msk.bf16.vlgmr.msra.gmra.mxu0 %vm1312_vm1, %v2767_v28  ;;  %4614 = vmatmul.msk.bf16.vlgmr.msrb.gmra.mxu2 %vm1312_vm1, %v2868_v40 }
0x10b0   : > { %3070 = vmatpush.bf16.xpose.msra.mxu2 %v3061_v45  ;;  %2977 = vmatpush.bf16.xpose.msrb.mxu0 %v2968_v53 }
0x10bf   : > { %4616 = vmatmul.msk.bf16.vlgmr.msrb.gmra.mxu0 %vm1312_vm1, %v2961_v54  ;;  %4618 = vmatmul.msk.bf16.vlgmr.msra.gmra.mxu2 %vm1312_vm1, %v3054_v56 }
0x112c   : > { %v2790_v57 = vpop.f32.mrf.mxu0 }
0x112d   : > { %v2791_v48 = vadd.f32 %v2790_v57, %v6152_v50 }
0x112f   : > { %v2795_v58 = vsel %vm1333_vm3, %v2791_v48, -inf }
0x1130   : > { %2796 = vmax.xlane.f32.xlu2 %v2795_v58 }
0x1132   : > { %v2886_v59 = vpop.f32.mrf.mxu2 }
0x1133   : > { %v2887_v61 = vadd.f32 %v2886_v59, %v6152_v50 }
0x1134   : > { %v2792_v22 = vpop.f32.mrf.mxu0 }
0x1135   : > { %v2891_v62 = vsel %vm1333_vm3, %v2887_v61, -inf  ;;  %v2793_v10 = vadd.f32 %v2792_v22, %v6156_v55 }
0x1136   : > { %2892 = vmax.xlane.f32.xlu1 %v2891_v62 }
0x1137   : > { %v2798_v4 = vsel %vm1333_vm3, %v2793_v10, -inf }
0x113a   : > { %v2888_v63 = vpop.f32.mrf.mxu2 }
0x113b   : > { %v2889_v25 = vadd.f32 %v2888_v63, %v6156_v55 }
0x113c   : > { %v2979_v0 = vpop.f32.mrf.mxu0 }
0x113d   : > { %v2894_v3 = vsel %vm1333_vm3, %v2889_v25, -inf  ;;  %v2980_v6 = vadd.f32 %v2979_v0, %v6152_v50 }
0x113e   : > { %2895 = vmax.xlane.f32.xlu0 %v2894_v3  ;;  %2799 = vmax.xlane.f32.xlu1 %v2798_v4 }
0x113f   : > { %v2984_v18 = vsel %vm1333_vm3, %v2980_v6, -inf }
0x1142   : > { %v3072_v11 = vpop.f32.mrf.mxu2 }
0x1143   : > { %v3073_v13 = vadd.f32 %v3072_v11, %v6152_v50 }
0x1144   : > { %v2981_v31 = vpop.f32.mrf.mxu0 }
0x1145   : > { %v3077_v16 = vsel %vm1333_vm3, %v3073_v13, -inf  ;;  %v2982_v5 = vadd.f32 %v2981_v31, %v6156_v55 }
0x1146   : > { %3078 = vmax.xlane.f32.xlu0 %v3077_v16  ;;  %2985 = vmax.xlane.f32.xlu1 %v2984_v18 }
0x1147   : > { %v2987_v23 = vsel %vm1333_vm3, %v2982_v5, -inf }
0x114a   : > { %v3074_v19 = vpop.f32.mrf.mxu2 }
0x114b   : > { %v3075_v21 = vadd.f32 %v3074_v19, %v6156_v55 }
0x114d   : > { %v3080_v46 = vsel %vm1333_vm3, %v3075_v21, -inf }
0x114e   : > { %2988 = vmax.xlane.f32.xlu0 %v2987_v23  ;;  %3081 = vmax.xlane.f32.xlu2 %v3080_v46 }
0x11a3   : > { %v2797_v42 = vpop.xlane.xlu2 %2796 }
0x11a4   : > { %v2801_v27 = vsub.f32 %v2791_v48, %v2797_v42 }
0x11a6   : > { %v2803_v29 = vmul.f32 1.442695, %v2801_v27 }
0x11a8   : > { %5127 = vpow2.f32 %v2803_v29 }
0x11a9   : > { %v2893_v30 = vpop.xlane.xlu1 %2892 }
0x11aa   : > { %v2897_v32 = vsub.f32 %v2887_v61, %v2893_v30 }
0x11ac   : > { %v2899_v60 = vmul.f32 1.442695, %v2897_v32 }
0x11ae   : > { %v6604_v33 = vpop.eup %5127  ;;  %5129 = vpow2.f32 %v2899_v60 }
0x11af   : > { %v2807_v15 = vsel %vm1333_vm3, %v6604_v33, 0.0 }
0x11b0   : > { %2808 = vadd.xlane.f32.xlu0 %v2807_v15 }
0x11b1   : > { %v2896_v7 = vpop.xlane.xlu0 %2895  ;;  %v2800_v20 = vpop.xlane.xlu1 %2799 }
0x11b2   : > { %v2898_v34 = vsub.f32 %v2889_v25, %v2896_v7  ;;  %v2802_v1 = vsub.f32 %v2793_v10, %v2800_v20 }
0x11b4   : > { %v6608_v37 = vpop.eup %5129  ;;  %v2901_v43 = vmul.f32 1.442695, %v2898_v34  ;;  %v2805_v35 = vmul.f32 1.442695, %v2802_v1 }
0x11b5   : > { %v2903_v24 = vsel %vm1333_vm3, %v6608_v37, 0.0 }
0x11b6   : > { %5131 = vpow2.f32 %v2901_v43  ;;  %2904 = vadd.xlane.f32.xlu2 %v2903_v24 }
0x11b7   : > { %5133 = vpow2.f32 %v2805_v35 }
0x11b9   : > { %v3079_v51 = vpop.xlane.xlu0 %3078  ;;  %v2986_v2 = vpop.xlane.xlu1 %2985 }
0x11ba   : > { %v2990_v26 = vsub.f32 %v2980_v6, %v2986_v2  ;;  %v3083_v41 = vsub.f32 %v3073_v13, %v3079_v51 }
0x11bc   : > { %v6612_v47 = vpop.eup %5131  ;;  %v2992_v28 = vmul.f32 1.442695, %v2990_v26  ;;  %v3085_v49 = vmul.f32 1.442695, %v3083_v41 }
0x11bd   : > { %v6614_v40 = vpop.eup %5133  ;;  %v2906_v8 = vsel %vm1333_vm3, %v6612_v47, 0.0 }
0x11be   : > { %2907 = vadd.xlane.f32.xlu1 %v2906_v8  ;;  %v2810_v39 = vsel %vm1333_vm3, %v6614_v40, 0.0  ;;  %5135 = vpow2.f32 %v2992_v28 }
0x11bf   : > { %2811 = vadd.xlane.f32.xlu2 %v2810_v39  ;;  %5137 = vpow2.f32 %v3085_v49 }
0x11c1   : > { %v2989_v38 = vpop.xlane.xlu0 %2988  ;;  %v3082_v45 = vpop.xlane.xlu2 %3081 }
0x11c2   : > { %v2991_v52 = vsub.f32 %v2982_v5, %v2989_v38  ;;  %v3084_v54 = vsub.f32 %v3075_v21, %v3082_v45 }
0x11c4   : > { %v2994_v53 = vmul.f32 1.442695, %v2991_v52  ;;  %v6620_v56 = vpop.eup %5135  ;;  %v3087_v48 = vmul.f32 1.442695, %v3084_v54 }
0x11c5   : > { %v2996_v57 = vsel %vm1333_vm3, %v6620_v56, 0.0  ;;  %v6624_v58 = vpop.eup %5137 }
0x11c6   : > { %5139 = vpow2.f32 %v2994_v53  ;;  %2997 = vadd.xlane.f32.xlu1 %v2996_v57  ;;  %v3089_v22 = vsel %vm1333_vm3, %v6624_v58, 0.0 }
0x11c7   : > { %5141 = vpow2.f32 %v3087_v48 }
0x11cc   : > { %v6626_v59 = vpop.eup %5139 }
0x11cd   : > { %v2999_v61 = vsel %vm1333_vm3, %v6626_v59, 0.0  ;;  %v6632_v62 = vpop.eup %5141 }
0x11ce   : > { %3000 = vadd.xlane.f32.xlu0 %v2999_v61  ;;  %3090 = vadd.xlane.f32.xlu1 %v3089_v22  ;;  %v3092_v10 = vsel %vm1333_vm3, %v6632_v62, 0.0 }
0x11d6   : > { %3093 = vadd.xlane.f32.xlu0 %v3092_v10 }
0x11d7   : > { %2940 = vrot.lane.b32.xlu2 %v6570_v36, %s7115_s5 }
0x11e7   : > { %3126 = vrot.lane.b32.xlu1 %v6570_v36, %s7117_s12 }
0x11ea   : > { %3033 = vrot.lane.b32.xlu0 %v6570_v36, %s7119_s21 }
0x1223   : > { %v2809_v63 = vpop.xlane.xlu0 %2808 }
0x1224   : > { %5143 = vrcp.f32 %v2809_v63  ;;  %v2822_v31 = vand.u32 2147483647, %v2809_v63  ;;  %v2824_v5 = vand.u32 2147483648, %v2809_v63  ;;  %vm2818_vm2 = vweird.f32 %v2809_v63 }
0x1226   : > { %vm6642_vm4 = vcmp.eq.f32.partialorder %v2822_v31, 8.507059e+37  ;;  %v2825_v42 = vor.u32 1.1754944e-38, %v2824_v5 }
0x1229   : > { %v2905_v25 = vpop.xlane.xlu2 %2904 }
0x122a   : > { %5145 = vrcp.f32 %v2905_v25  ;;  %v5144_v0 = vpop.eup %5143  ;;  %vm2914_vm6 = vweird.f32 %v2905_v25  ;;  %v2918_v7 = vand.u32 2147483647, %v2905_v25  ;;  %v2920_v34 = vand.u32 2147483648, %v2905_v25 }
0x122b   : > { %v2814_v3 = vmul.f32 %v5144_v0, %v2809_v63  ;;  %vm2819_vm5 = vweird.f32 %v5144_v0 }
0x122c   : > { %vm6649_vm9 = vmor %vm2818_vm2, %vm2819_vm5  ;;  %vm2919_vm14 = vcmp.eq.f32.partialorder %v2918_v7, 8.507059e+37  ;;  %v2921_v38 = vor.u32 1.1754944e-38, %v2920_v34 }
0x122d   : > { %v2815_v13 = vsub.f32 1.0, %v2814_v3 }
0x122f   : > { %v2816_v19 = vmul.f32 %v5144_v0, %v2815_v13 }
0x1230   : > { %v5146_v4 = vpop.eup %5145 }
0x1231   : > { %v2910_v6 = vmul.f32 %v5146_v4, %v2905_v25  ;;  %v2908_v11 = vpop.xlane.xlu1 %2907  ;;  %v2817_v29 = vadd.f32 %v5144_v0, %v2816_v19  ;;  %vm2915_vm7 = vweird.f32 %v5146_v4 }
0x1232   : > { %5147 = vrcp.f32 %v2908_v11  ;;  %v2812_v16 = vpop.xlane.xlu2 %2811  ;;  %v2932_v1 = vand.u32 2147483647, %v2908_v11  ;;  %v2934_v43 = vand.u32 2147483648, %v2908_v11  ;;  %vm6657_vm12 = vmor %vm2914_vm6, %vm2915_vm7  ;;  %vm2928_vm15 = vweird.f32 %v2908_v11 }
0x1233   : > { %v2911_v18 = vsub.f32 1.0, %v2910_v6  ;;  %5149 = vrcp.f32 %v2812_v16  ;;  %v2838_v2 = vand.u32 2147483648, %v2812_v16  ;;  %v2821_v26 = vsel %vm6649_vm9, %v5144_v0, %v2817_v29 }
0x1234   : > { %v2836_v8 = vand.u32 2147483647, %v2812_v16  ;;  %v2935_v45 = vor.u32 1.1754944e-38, %v2934_v43  ;;  %vm2832_vm5 = vweird.f32 %v2812_v16  ;;  %v2826_v53 = vsel %vm6642_vm4, %v2825_v42, %v2821_v26 }
0x1235   : > { %v2912_v21 = vmul.f32 %v5146_v4, %v2911_v18  ;;  %vm2933_vm6 = vcmp.eq.f32.partialorder %v2932_v1, 8.507059e+37  ;;  %v2839_v57 = vor.u32 1.1754944e-38, %v2838_v2 }
0x1236   : > { %vm2837_vm9 = vcmp.eq.f32.partialorder %v2836_v8, 8.507059e+37 }
0x1237   : > { %v2913_v15 = vadd.f32 %v5146_v4, %v2912_v21 }
0x1238   : > { %v5148_v23 = vpop.eup %5147 }
0x1239   : > { %v5150_v36 = vpop.eup %5149  ;;  %v2924_v27 = vmul.f32 %v5148_v23, %v2908_v11  ;;  %v6646_v32 = vpop.xlane.xlu1 %2997  ;;  %vm2929_vm10 = vweird.f32 %v5148_v23  ;;  %v2917_v39 = vsel %vm6657_vm12, %v5146_v4, %v2913_v15  ;;  %v2841_v4 = vmul.f32 %v6604_v33, %v2826_v53 }
0x123a   : > { %v2828_v30 = vmul.f32 %v5150_v36, %v2812_v16  ;;  %v2941_v60 = vpop.permute.xlu2 %2940  ;;  %5151 = vrcp.f32 %v6646_v32  ;;  %vm2833_vm13 = vweird.f32 %v5150_v36  ;;  %vm2930_vm2 = vmor %vm2928_vm15, %vm2929_vm10  ;;  %v2922_v61 = vsel %vm2919_vm14, %v2921_v38, %v2917_v39 }
0x123b   : > { %v2925_v20 = vsub.f32 1.0, %v2924_v27  ;;  %2953 = vmatpush.bf16.msrb.mxu3 %v2941_v60  ;;  %vm2834_vm7 = vmor %vm2832_vm5, %vm2833_vm13  ;;  %v2937_v11 = vmul.f32 %v6608_v37, %v2922_v61  ;;  %v3013_v46 = vand.u32 2147483648, %v6646_v32  ;;  %vm3007_vm14 = vweird.f32 %v6646_v32 }
0x123c   : > { %v2829_v35 = vsub.f32 1.0, %v2828_v30  ;;  %v3011_v24 = vand.u32 2147483647, %v6646_v32 }
0x123d   : > { %v2926_v51 = vmul.f32 %v5148_v23, %v2925_v20  ;;  %v3014_v38 = vor.u32 1.1754944e-38, %v3013_v46 }
0x123e   : > { %v2830_v41 = vmul.f32 %v5150_v36, %v2829_v35 }
0x123f   : > { %v2927_v49 = vadd.f32 %v5148_v23, %v2926_v51 }
0x1240   : > { %v2831_v52 = vadd.f32 %v5150_v36, %v2830_v41  ;;  %v6665_v25 = vpop.eup %5151 }
0x1241   : > { %v2931_v54 = vsel %vm2930_vm2, %v5148_v23, %v2927_v49  ;;  %v3001_v48 = vpop.xlane.xlu0 %3000  ;;  %v3091_v63 = vpop.xlane.xlu1 %3090  ;;  %v3003_v13 = vmul.f32 %v6665_v25, %v6646_v32  ;;  %vm3008_vm4 = vweird.f32 %v6665_v25 }
0x1242   : > { %v2936_v22 = vsel %vm2933_vm6, %v2935_v45, %v2931_v54  ;;  %v2835_v10 = vsel %vm2834_vm7, %v5150_v36, %v2831_v52  ;;  %5153 = vrcp.f32 %v3091_v63  ;;  %v3027_v29 = vand.u32 2147483648, %v3001_v48  ;;  %vm6693_vm6 = vmor %vm3007_vm14, %vm3008_vm4 }
0x1243   : > { %v2938_v0 = vmul.f32 %v6612_v47, %v2936_v22  ;;  %v2840_v3 = vsel %vm2837_vm9, %v2839_v57, %v2835_v10  ;;  %5155 = vrcp.f32 %v3001_v48  ;;  %v3004_v5 = vsub.f32 1.0, %v3003_v13 }
0x1244   : > { %v2842_v6 = vmul.f32 %v6614_v40, %v2840_v3  ;;  %v3106_v60 = vand.u32 2147483648, %v3091_v63  ;;  %vm3021_vm13 = vweird.f32 %v3001_v48  ;;  %v3025_v34 = vand.u32 2147483647, %v3001_v48 }
0x1245   : > { %v2939_v18 = vpack.c.bf16 %v2938_v0, %v2937_v11  ;;  %v3005_v37 = vmul.f32 %v6665_v25, %v3004_v5  ;;  %vm3100_vm15 = vweird.f32 %v3091_v63  ;;  %v3104_v1 = vand.u32 2147483647, %v3091_v63 }
0x1246   : > { %v2843_v16 = vpack.c.bf16 %v2842_v6, %v2841_v4  ;;  %v3028_v26 = vor.u32 1.1754944e-38, %v3027_v29  ;;  %v3107_v45 = vor.u32 1.1754944e-38, %v3106_v60  ;;  %vm3026_vm9 = vcmp.eq.f32.partialorder %v3025_v34, 8.507059e+37 }
0x1247   : > { %4615 = vmatmul.msk.bf16.vlgmr.msrb.gmra.mxu3 %vm1333_vm3, %v2939_v18  ;;  %v3006_v7 = vadd.f32 %v6665_v25, %v3005_v37 }
0x1248   : > { %4613 = vmatmul.msk.bf16.vlgmr.msrb.gmra.mxu1 %vm1333_vm3, %v2843_v16  ;;  %v5154_v31 = vpop.eup %5153 }
0x1249   : > { %v3094_v47 = vpop.xlane.xlu0 %3093  ;;  %v3096_v19 = vmul.f32 %v5154_v31, %v3091_v63  ;;  %v5156_v33 = vpop.eup %5155  ;;  %vm3101_vm12 = vweird.f32 %v5154_v31  ;;  %v3010_v49 = vsel %vm6693_vm6, %v6665_v25, %v3006_v7 }
0x124a   : > { %5157 = vrcp.f32 %v3094_v47  ;;  %v3017_v40 = vmul.f32 %v5156_v33, %v3001_v48  ;;  %vm3022_vm10 = vweird.f32 %v5156_v33  ;;  %vm6685_vm5 = vmor %vm3100_vm15, %vm3101_vm12  ;;  %v3120_v28 = vand.u32 2147483648, %v3094_v47 }
0x124b   : > { %v3097_v21 = vsub.f32 1.0, %v3096_v19  ;;  %vm6680_vm2 = vmor %vm3021_vm13, %vm3022_vm10  ;;  %v3118_v32 = vand.u32 2147483647, %v3094_v47  ;;  %vm3105_vm10 = vcmp.eq.f32.partialorder %v3104_v1, 8.507059e+37  ;;  %vm3114_vm4 = vweird.f32 %v3094_v47 }
0x124c   : > { %v3018_v36 = vsub.f32 1.0, %v3017_v40  ;;  %vm3012_vm12 = vcmp.eq.f32.partialorder %v3011_v24, 8.507059e+37  ;;  %v3121_v57 = vor.u32 1.1754944e-38, %v3120_v28 }
0x124d   : > { %v3098_v23 = vmul.f32 %v5154_v31, %v3097_v21  ;;  %v3015_v48 = vsel %vm3012_vm12, %v3014_v38, %v3010_v49  ;;  %vm3119_vm14 = vcmp.eq.f32.partialorder %v3118_v32, 8.507059e+37  ;;  %v4754_v21 = vld [vmem:[#allocation10 + $0x10] sm:$0xff]  ;;  %v4759_v32 = vld [vmem:[#allocation13 + $0x18] sm:$0xff]  ;;  %v6724_v49 = vld [vmem:[%s6090_s13 + $0x20] sm:$0xff] }
0x124e   : > { %v3019_v27 = vmul.f32 %v5156_v33, %v3018_v36  ;;  %v3030_v3 = vmul.f32 %v6620_v56, %v3015_v48  ;;  %v6727_v38 = vld [vmem:[%s6090_s13 + $0x28] sm:$0xff]  ;;  %3353 = vmatpush.bf16.msrb.mxu2 %v4759_v32  ;;  %v6738_v48 = vld [vmem:[%s6090_s13 + $0x38] sm:$0xff] }
0x124f   : > { %v3099_v30 = vadd.f32 %v5154_v31, %v3098_v23 }
0x1250   : > { %v5158_v42 = vpop.eup %5157  ;;  %v3020_v20 = vadd.f32 %v5156_v33, %v3019_v27 }
0x1251   : > { %v3110_v15 = vmul.f32 %v5158_v42, %v3094_v47  ;;  %v3103_v8 = vsel %vm6685_vm5, %v5154_v31, %v3099_v30  ;;  %vm3115_vm7 = vweird.f32 %v5158_v42 }
0x1252   : > { %v3024_v2 = vsel %vm6680_vm2, %v5156_v33, %v3020_v20  ;;  %v3108_v54 = vsel %vm3105_vm10, %v3107_v45, %v3103_v8  ;;  %vm3116_vm13 = vmor %vm3114_vm4, %vm3115_vm7  ;;  %v4755_v33 = vld [vmem:[#allocation10 + $0x18] sm:$0xff] }
0x1253   : > { %v3111_v35 = vsub.f32 1.0, %v3110_v15  ;;  %v3029_v52 = vsel %vm3026_vm9, %v3028_v26, %v3024_v2  ;;  %v3123_v25 = vmul.f32 %v6624_v58, %v3108_v54  ;;  %3203 = vmatpush.bf16.msra.mxu0 %v4755_v33 }
0x1254   : > { %v3031_v22 = vmul.f32 %v6626_v59, %v3029_v52  ;;  %v4758_v52 = vld [vmem:[#allocation13 + $0x10] sm:$0xff] }
0x1255   : > { %v3112_v39 = vmul.f32 %v5158_v42, %v3111_v35  ;;  %v5034_v35 = vld [vmem:[%s7099_s3 + $0x1] ss:$0 sm:$0xff]  ;;  %3354 = vmatpush.bf16.msrb.mxu2 %v4758_v52 }
0x1256   : > { %v3032_v11 = vpack.c.bf16 %v3031_v22, %v3030_v3 }
0x1257   : > { %v3113_v53 = vadd.f32 %v5158_v42, %v3112_v39  ;;  %3204 = vmatpush.bf16.msra.mxu0 %v4754_v21 }
0x1259   : > { %v3117_v61 = vsel %vm3116_vm13, %v5158_v42, %v3113_v53  ;;  %v3127_v63 = vpop.permute.xlu1 %3126  ;;  %v5212_v53 = vld [vmem:[%s6107_s11 + $0x8] sm:$0xff] }
0x125a   : > { %v3122_v10 = vsel %vm3119_vm14, %v3121_v57, %v3117_v61  ;;  %3139 = vmatpush.bf16.msra.mxu3 %v3127_v63  ;;  %v3314_v54 = vadd.f32 %v5212_v53, %v6727_v38  ;;  %v6735_v57 = vld [vmem:[%s6090_s13 + $0x30] sm:$0xff]  ;;  %s4770_s13 = sshll.u32 %s5874_s23, 4  ;;  %s4193_s23 = scalar_lea.sflag [#allocation4], %s6086_s18 }
0x125b   : > { %v3124_v0 = vmul.f32 %v6632_v62, %v3122_v10  ;;  %v5213_v10 = vld [vmem:[%s6107_s11 + $0x10] sm:$0xff] }
0x125c   : > { %v3034_v4 = vpop.permute.xlu0 %3033  ;;  %v3315_v63 = vadd.f32 %v5213_v10, %v6735_v57 }
0x125d   : > { %3046 = vmatpush.bf16.msra.mxu1 %v3034_v4  ;;  %v3125_v6 = vpack.c.bf16 %v3124_v0, %v3123_v25  ;;  %v5214_v25 = vld [vmem:[%s6107_s11 + $0x18] sm:$0xff] }
0x125e   : > { %v3316_v0 = vadd.f32 %v5214_v25, %v6738_v48 }
0x125f   : > { %4619 = vmatmul.msk.bf16.vlgmr.msra.gmra.mxu3 %vm1333_vm3, %v3125_v6 }
0x1260   : > { %4617 = vmatmul.msk.bf16.vlgmr.msra.gmra.mxu1 %vm1333_vm3, %v3032_v11  ;;  %v3318_v6 = vpack.c.bf16 %v3316_v0, %v3315_v63 }
0x12c5   : > { %v2862_v13 = vpop.f32.mrf.mxu1 }
0x12ca   : > { %v2955_v16 = vpop.f32.mrf.mxu3 }
0x12cd   : > { %v2864_v18 = vpop.f32.mrf.mxu1 }
0x12d2   : > { %v2957_v59 = vpop.f32.mrf.mxu3 }
0x12d3   : > { %v4987_v31 = vpack.i.bf16 %v2957_v59, %v2955_v16 }
0x12d5   : > { %4988 = vrot.lane.b32.xlu2 %v4987_v31, %s7132_s9 }
0x12dd   : > { %v3048_v58 = vpop.f32.mrf.mxu1 }
0x12e2   : > { %v3141_v62 = vpop.f32.mrf.mxu3 }
0x12e5   : > { %v3050_v47 = vpop.f32.mrf.mxu1 }
0x12e6   : > { %v4992_v5 = vpack.i.bf16 %v3050_v47, %v3048_v58 }
0x12e8   : > { %4993 = vrot.lane.b32.xlu2 %v4992_v5, %s7133_s17  ;;  %v4757_v5 = vld [vmem:[#allocation11 + $0x18] sm:$0xff] }
0x12e9   : > { %3305 = vmatpush.bf16.msrb.mxu1 %v4757_v5 }
0x12ea   : > { %v3143_v56 = vpop.f32.mrf.mxu3 }
0x12eb   : > { %v4997_v19 = vpack.i.bf16 %v3143_v56, %v3141_v62  ;;  %v4756_v56 = vld [vmem:[#allocation11 + $0x10] sm:$0xff] }
0x12ed   : > { %4998 = vrot.lane.b32.xlu0 %v4997_v19, %s7134_s6  ;;  %3306 = vmatpush.bf16.msrb.mxu1 %v4756_v56 }
0x132f   : > { %v4989_v40 = vpop.permute.xlu2 %4988 }
0x1330   : > { %v4991_v23 = vunpack.i.h.bf16 %v4989_v40  ;;  %v4990_v36 = vunpack.i.l.bf16 %v4989_v40  ;;  %v5037_v40 = vld [vmem:[%s7100_s4 + $0x1] ss:$0 sm:$0xff] }
0x1332   : > { %v3171_v29 = vsel %vm1312_vm1, %v2864_v18, %v4991_v23  ;;  %v3170_v30 = vsel %vm1312_vm1, %v2862_v13, %v4990_v36 }
0x1342   : > { %v4994_v37 = vpop.permute.xlu2 %4993 }
0x1343   : > { %v4996_v46 = vunpack.i.h.bf16 %v4994_v37  ;;  %v4995_v42 = vunpack.i.l.bf16 %v4994_v37 }
0x1345   : > { %v3172_v7 = vsel %vm1333_vm3, %v3170_v30, %v4995_v42  ;;  %v3173_v20 = vsel %vm1333_vm3, %v3171_v29, %v4996_v46 }
0x135f   : > { %v4999_v27 = vpop.permute.xlu0 %4998 }
0x1360   : > { %v5001_v60 = vunpack.i.h.bf16 %v4999_v27  ;;  %v5000_v15 = vunpack.i.l.bf16 %v4999_v27 }
0x1362   : > { %v3175_v34 = vsel %vm1713_vm11, %v3173_v20, %v5001_v60  ;;  %v3174_v1 = vsel %vm1713_vm11, %v3172_v7, %v5000_v15 }
0x1363   : > { %v3176_v43 = vpack.c.bf16 %v3175_v34, %v3174_v1 }
0x1365   : > { %4629 = vmatmul.msk.bf16.vlgmr.msra.gmra.mxu0 %vm1232_vm0, %v3176_v43 }
0x13e2   : > { %v3206_v24 = vpop.f32.mrf.mxu0 }
0x13e3   : > { %v3207_v51 = vadd.f32 %v5034_v35, %v3206_v24 }
0x13e5   : > { %v3211_v2 = vadd.f32 %v3207_v51, %v6550_v9  ;;  %v5211_v9 = vld [vmem:[%s6107_s11] sm:$0xff]  ;;  %s7140_s11 = sshll.u32 %s6086_s18, 4 }
0x13e6   : > { %v3313_v45 = vadd.f32 %v5211_v9, %v6724_v49  ;;  %s1178_s14 = scalar_lea.vmem [#allocation20], %s7140_s11 }
0x13e7   : > { %v3217_v26 = vsel %vm1232_vm0, %v3211_v2, 0.0 }
0x13e8   : > { %3218 = vadd.xlane.f32.xlu1 %v3217_v26 }
0x13ea   : > { %v3208_v28 = vpop.f32.mrf.mxu0 }
0x13eb   : > { %v3209_v41 = vadd.f32 %v5034_v35, %v3208_v28  ;;  %v5035_v28 = vld [vmem:[%s7101_s0 + $0x1] ss:$0 sm:$0xff] }
0x13ed   : > { %v3212_v8 = vadd.f32 %v3209_v41, %v6552_v12  ;;  %v3317_v12 = vpack.c.bf16 %v3314_v54, %v3313_v45  ;;  %v5036_v45 = vld [vmem:[%s7102_s1 + $0x1] ss:$0 sm:$0xff] }
0x13ef   : > { %v3220_v39 = vsel %vm1232_vm0, %v3212_v8, 0.0  ;;  %4651 = vmatmul.msk.bf16.vlgmr.msrb.gmra.mxu2 %vm1232_vm0, %v3317_v12 }
0x13f0   : > { %3221 = vadd.xlane.f32.xlu2 %v3220_v39 }
0x13ff   : > { %4652 = vmatmul.msk.bf16.gmra.mxu2 %vm1232_vm0, %v3318_v6 }
0x145b   : > { %v3219_v61 = vpop.xlane.xlu1 %3218 }
0x145c   : > { %v3223_v22 = vmul.f32 %v3219_v61, %v6309_v44 }
0x145e   : > { %v3225_v3 = vsub.f32 %v3211_v2, %v3223_v22 }
0x1460   : > { %v3227_v4 = vmul.f32 %v3225_v3, %v3225_v3 }
0x1462   : > { %v3229_v11 = vsel %vm1232_vm0, %v3227_v4, 0.0 }
0x1463   : > { %v3222_v13 = vpop.xlane.xlu2 %3221  ;;  %3230 = vadd.xlane.f32.xlu0 %v3229_v11 }
0x1464   : > { %v3224_v16 = vmul.f32 %v3222_v13, %v6309_v44 }
0x1466   : > { %v3226_v59 = vsub.f32 %v3212_v8, %v3224_v16 }
0x1468   : > { %v3228_v18 = vmul.f32 %v3226_v59, %v3226_v59 }
0x146a   : > { %v3232_v31 = vsel %vm1232_vm0, %v3228_v18, 0.0 }
0x146b   : > { %3233 = vadd.xlane.f32.xlu1 %v3232_v31 }
0x1472   : > { %v3356_v21 = vpop.f32.mrf.mxu2 }
0x1473   : > { %v3357_v46 = vadd.f32 %v5037_v40, %v3356_v21 }
0x1475   : > { %v3424_v29 = vpack.c.bf16 %v3357_v46, %v3357_v46 }
0x1477   : > { %v3441_v1 = vunpack.c.l.b16 %v3424_v29 }
0x147a   : > { %v3358_v30 = vpop.f32.mrf.mxu2 }
0x147b   : > { %v3359_v15 = vadd.f32 %v5037_v40, %v3358_v30 }
0x147d   : > { %v3425_v43 = vpack.c.bf16 %v3359_v15, %v3359_v15 }
0x147f   : > { %v3442_v51 = vunpack.c.l.b16 %v3425_v43 }
0x1481   : > { %v6752_v26 = vpack.c.b16 %v3442_v51, %v3441_v1 }
0x1482   : > { %v3361_v8 = vpop.f32.mrf.mxu2 }
0x1483   : > { %v3362_v9 = vadd.f32 %v5037_v40, %v3361_v8 }
0x1484   : > { %3550 = vrot.lane.b32.xlu1 %v6752_v26, %s7115_s5 }
0x1485   : > { %v3426_v12 = vpack.c.bf16 %v3362_v9, %v3362_v9 }
0x1487   : > { %v3443_v0 = vunpack.c.l.b16 %v3426_v12 }
0x148a   : > { %v3363_v10 = vpop.f32.mrf.mxu2 }
0x148b   : > { %v3364_v63 = vadd.f32 %v5037_v40, %v3363_v10 }
0x14d6   : > { %v3231_v58 = vpop.xlane.xlu0 %3230 }
0x14d7   : > { %v3235_v62 = vmul.f32 %v3231_v58, %v6309_v44 }
0x14d9   : > { %v3237_v47 = vadd.f32 1e-05, %v3235_v62  ;;  %v5038_v62 = vld [vmem:[%s7103_s25 + $0x1] ss:$0 sm:$0xff] }
0x14db   : > { %5159 = vrsqrt.f32 %v3237_v47  ;;  %vm3245_vm2 = vweird.f32 %v3237_v47 }
0x14de   : > { %v3234_v19 = vpop.xlane.xlu1 %3233 }
0x14df   : > { %v3236_v33 = vmul.f32 %v3234_v19, %v6309_v44 }
0x14e1   : > { %v5160_v37 = vpop.eup %5159  ;;  %v3238_v23 = vadd.f32 1e-05, %v3236_v33 }
0x14e2   : > { %v3240_v36 = vmul.f32 %v5160_v37, %v3237_v47  ;;  %vm3246_vm15 = vweird.f32 %v5160_v37 }
0x14e3   : > { %5161 = vrsqrt.f32 %v3238_v23  ;;  %vm3247_vm5 = vmor %vm3245_vm2, %vm3246_vm15  ;;  %vm3255_vm7 = vweird.f32 %v3238_v23 }
0x14e4   : > { %v3241_v42 = vmul.f32 %v5160_v37, %v3240_v36 }
0x14e6   : > { %v3242_v27 = vmul.f32 0.5, %v3241_v42 }
0x14e8   : > { %v3243_v60 = vsub.f32 1.5, %v3242_v27 }
0x14e9   : > { %v5162_v7 = vpop.eup %5161 }
0x14ea   : > { %v3244_v20 = vmul.f32 %v5160_v37, %v3243_v60  ;;  %v3250_v34 = vmul.f32 %v5162_v7, %v3238_v23  ;;  %vm3256_vm6 = vweird.f32 %v5162_v7 }
0x14eb   : > { %vm3257_vm9 = vmor %vm3255_vm7, %vm3256_vm6 }
0x14ec   : > { %v3248_v35 = vsel %vm3247_vm5, %v5160_v37, %v3244_v20  ;;  %v3251_v24 = vmul.f32 %v5162_v7, %v3250_v34  ;;  %v4760_v20 = vld [vmem:[#allocation14 + $0x10] sm:$0xff]  ;;  %v3366_v34 = vpack.c.bf16 %v6727_v38, %v6724_v49 }
0x14ed   : > { %v3259_v41 = vmul.f32 %v3248_v35, %v3225_v3  ;;  %v3427_v3 = vpack.c.bf16 %v3364_v63, %v3364_v63 }
0x14ee   : > { %v3252_v2 = vmul.f32 0.5, %v3251_v24  ;;  %v3367_v24 = vpack.c.bf16 %v6738_v48, %v6735_v57 }
0x14ef   : > { %v3264_v52 = vmul.f32 %v5035_v28, %v3259_v41  ;;  %v3444_v11 = vunpack.c.l.b16 %v3427_v3 }
0x14f0   : > { %v3253_v39 = vsub.f32 1.5, %v3252_v2 }
0x14f1   : > { %v6758_v61 = vadd.f32 %v5036_v45, %v3264_v52  ;;  %v3446_v16 = vpack.c.b16 %v3444_v11, %v3443_v0 }
0x14f2   : > { %v3254_v32 = vmul.f32 %v5162_v7, %v3253_v39 }
0x14f3   : > { %v3271_v4 = vadd.f32 %v6557_v14, %v6758_v61  ;;  %3653 = vrot.lane.b32.xlu0 %v3446_v16, %s7119_s21  ;;  %3552 = vrot.lane.b32.xlu2 %v3446_v16, %s7115_s5  ;;  %v3451_v14 = vsel %vm1312_vm1, %v6752_v26, 0 }
0x14f4   : > { %v3258_v53 = vsel %vm3257_vm9, %v5162_v7, %v3254_v32  ;;  %3754 = vrot.lane.b32.xlu1 %v3446_v16, %s7117_s12  ;;  %v4761_v7 = vld [vmem:[#allocation14 + $0x18] sm:$0xff] }
0x14f5   : > { %v3260_v54 = vmul.f32 %v3258_v53, %v3226_v59  ;;  %v3454_v59 = vsel %vm1312_vm1, %v3446_v16, 0  ;;  %3402 = vmatpush.bf16.msrb.mxu3 %v4761_v7 }
0x14f6   : > { %3462 = vmatpush.bf16.xpose.msrb.mxu0 %v3454_v59  ;;  %v3551_v5 = vpop.permute.xlu1 %3550 }
0x14f7   : > { %v3265_v22 = vmul.f32 %v5035_v28, %v3260_v54  ;;  %v3558_v19 = vsel %vm1312_vm1, %v3551_v5, 0 }
0x14f9   : > { %v6760_v25 = vadd.f32 %v5036_v45, %v3265_v22  ;;  %3403 = vmatpush.bf16.msrb.mxu3 %v4760_v20  ;;  %v5039_v22 = vld [vmem:[%s7104_s30 + $0x1] ss:$0 sm:$0xff] }
0x14fb   : > { %v3272_v6 = vadd.f32 %v6562_v17, %v6760_v25  ;;  %3651 = vrot.lane.b32.xlu0 %v6752_v26, %s7119_s21 }
0x14fc   : > { %4662 = vmatmul.msk.bf16.vlgmr.msrb.gmra.mxu3 %vm1232_vm0, %v3366_v34 }
0x14fd   : > { %v3273_v13 = vpack.c.bf16 %v3272_v6, %v3271_v4 }
0x14fe   : > { %3463 = vmatpush.bf16.xpose.msrb.mxu0 %v3451_v14 }
0x14ff   : > { %4641 = vmatmul.msk.bf16.vlgmr.msrb.gmra.mxu1 %vm1232_vm0, %v3273_v13 }
0x150c   : > { %4663 = vmatmul.msk.bf16.gmra.mxu3 %vm1232_vm0, %v3367_v24 }
0x154d   : > { %v3553_v17 = vpop.permute.xlu2 %3552 }
0x154e   : > { %v3561_v31 = vsel %vm1312_vm1, %v3553_v17, 0 }
0x154f   : > { %3569 = vmatpush.bf16.xpose.msra.mxu0 %v3561_v31 }
0x1557   : > { %3570 = vmatpush.bf16.xpose.msra.mxu0 %v3558_v19 }
0x1565   : > { %v3654_v18 = vpop.permute.xlu0 %3653 }
0x1566   : > { %v3662_v58 = vsel %vm1312_vm1, %v3654_v18, 0  ;;  %v3755_v60 = vpop.permute.xlu1 %3754 }
0x1567   : > { %3670 = vmatpush.bf16.xpose.msra.mxu2 %v3662_v58  ;;  %v3763_v15 = vsel %vm1312_vm1, %v3755_v60, 0 }
0x156d   : > { %v3652_v33 = vpop.permute.xlu0 %3651 }
0x156e   : > { %v3659_v21 = vsel %vm1312_vm1, %v3652_v33, 0 }
0x156f   : > { %3671 = vmatpush.bf16.xpose.msra.mxu2 %v3659_v21 }
0x157c   : > { %v3308_v47 = vpop.f32.mrf.mxu1 }
0x157d   : > { %v3309_v56 = vadd.f32 %v5038_v62, %v3308_v47 }
0x157f   : > { %v3420_v40 = vmul.f32 0.35355338, %v3309_v56  ;;  %v3405_v32 = vpop.f32.mrf.mxu3 }
0x1580   : > { %v3406_v4 = vadd.f32 %v5039_v22, %v3405_v32 }
0x1581   : > { %v3422_v36 = vpack.c.bf16 %v3420_v40, %v3420_v40 }
0x1582   : > { %v3428_v31 = vpack.c.bf16 %v3406_v4, %v3406_v4 }
0x1583   : > { %v3434_v27 = vunpack.c.l.b16 %v3422_v36 }
0x1584   : > { %v3310_v37 = vpop.f32.mrf.mxu1  ;;  %v3523_v21 = vunpack.c.l.b16 %v3428_v31 }
0x1585   : > { %v3311_v23 = vadd.f32 %v5038_v62, %v3310_v37 }
0x1587   : > { %v3421_v46 = vmul.f32 0.35355338, %v3311_v23  ;;  %v3407_v53 = vpop.f32.mrf.mxu3 }
0x1588   : > { %v3408_v13 = vadd.f32 %v5039_v22, %v3407_v53 }
0x1589   : > { %v3423_v42 = vpack.c.bf16 %v3421_v46, %v3421_v46 }
0x158a   : > { %v3429_v47 = vpack.c.bf16 %v3408_v13, %v3408_v13 }
0x158b   : > { %v3435_v29 = vunpack.c.l.b16 %v3423_v42 }
0x158c   : > { %v3524_v40 = vunpack.c.l.b16 %v3429_v47 }
0x158d   : > { %v3436_v30 = vpack.c.b16 %v3435_v29, %v3434_v27 }
0x158e   : > { %v3527_v42 = vpack.c.b16 %v3524_v40, %v3523_v21 }
0x158f   : > { %3750 = vrot.lane.b32.xlu1 %v3436_v30, %s7117_s12  ;;  %3649 = vrot.lane.b32.xlu0 %v3436_v30, %s7119_s21  ;;  %v3410_v54 = vpop.f32.mrf.mxu3 }
0x1590   : > { %3548 = vrot.lane.b32.xlu2 %v3436_v30, %s7115_s5  ;;  %4664 = vmatmul.msk.bf16.vlgmr.msrb.gmra.mxu0 %vm1312_vm1, %v3436_v30  ;;  %v3411_v63 = vadd.f32 %v5039_v22, %v3410_v54 }
0x1591   : > { %3771 = vmatpush.bf16.xpose.msrb.mxu0 %v3763_v15 }
0x1592   : > { %v3430_v16 = vpack.c.bf16 %v3411_v63, %v3411_v63 }
0x1594   : > { %v3525_v5 = vunpack.c.l.b16 %v3430_v16 }
0x1597   : > { %v3412_v14 = vpop.f32.mrf.mxu3 }
0x1598   : > { %3752 = vrot.lane.b32.xlu2 %v6752_v26, %s7117_s12  ;;  %v3413_v18 = vadd.f32 %v5039_v22, %v3412_v14 }
0x159a   : > { %v3431_v56 = vpack.c.bf16 %v3413_v18, %v3413_v18 }
0x159c   : > { %v3526_v19 = vunpack.c.l.b16 %v3431_v56 }
0x159e   : > { %v6814_v37 = vpack.c.b16 %v3526_v19, %v3525_v5 }
0x15a0   : > { %3540 = vmatpush.bf16.msra.mxu1 %v6814_v37 }
0x15a4   : > { %3541 = vmatpush.bf16.msra.mxu1 %v3527_v42 }
0x15ea   : > { %v3549_v1 = vpop.permute.xlu2 %3548 }
0x15eb   : > { %4666 = vmatmul.msk.bf16.vlgmr.msra.gmra.mxu0 %vm1312_vm1, %v3549_v1 }
0x15f2   : > { %v3753_v43 = vpop.permute.xlu2 %3752 }
0x15f3   : > { %v3760_v35 = vsel %vm1312_vm1, %v3753_v43, 0 }
0x15f4   : > { %3772 = vmatpush.bf16.xpose.msrb.mxu0 %v3760_v35 }
0x1601   : > { %v3650_v51 = vpop.permute.xlu0 %3649  ;;  %v3751_v2 = vpop.permute.xlu1 %3750 }
0x1602   : > { %4668 = vmatmul.msk.bf16.vlgmr.msra.gmra.mxu2 %vm1312_vm1, %v3650_v51  ;;  %4670 = vmatmul.msk.bf16.vlgmr.msrb.gmra.mxu0 %vm1312_vm1, %v3751_v2 }
0x160d   : > { %v3465_v49 = vpop.f32.mrf.mxu0 }
0x160e   : > { %v3466_v38 = vadd.f32 %v3465_v49, %v6152_v50 }
0x1610   : > { %v3470_v26 = vsel %vm1232_vm0, %v3466_v38, -inf }
0x1611   : > { %3471 = vmax.xlane.f32.xlu0 %v3470_v26 }
0x1615   : > { %v3467_v28 = vpop.f32.mrf.mxu0 }
0x1616   : > { %v3468_v41 = vadd.f32 %v3467_v28, %v6156_v55 }
0x1618   : > { %v3473_v57 = vsel %vm1232_vm0, %v3468_v41, -inf }
0x1619   : > { %3474 = vmax.xlane.f32.xlu2 %v3473_v57 }
0x1668   : > { %v3572_v48 = vpop.f32.mrf.mxu0 }
0x1669   : > { %v3573_v8 = vadd.f32 %v3572_v48, %v6152_v50 }
0x166b   : > { %v3577_v39 = vsel %vm1232_vm0, %v3573_v8, -inf }
0x166c   : > { %3578 = vmax.xlane.f32.xlu1 %v3577_v39 }
0x1670   : > { %v3574_v9 = vpop.f32.mrf.mxu0 }
0x1671   : > { %v3575_v45 = vadd.f32 %v3574_v9, %v6156_v55 }
0x1673   : > { %v3580_v52 = vsel %vm1232_vm0, %v3575_v45, -inf }
0x1674   : > { %3581 = vmax.xlane.f32.xlu0 %v3580_v52 }
0x167f   : > { %v3774_v12 = vpop.f32.mrf.mxu0 }
0x1680   : > { %v6807_v10 = vadd.f32 %v3774_v12, %v6152_v50 }
0x1682   : > { %v3779_v0 = vsel %vm1232_vm0, %v6807_v10, -inf }
0x1683   : > { %3780 = vmax.xlane.f32.xlu0 %v3779_v0 }
0x1684   : > { %v3472_v3 = vpop.xlane.xlu0 %3471 }
0x1685   : > { %v3476_v6 = vsub.f32 %v3466_v38, %v3472_v3  ;;  %v3673_v11 = vpop.f32.mrf.mxu2 }
0x1686   : > { %v3674_v59 = vadd.f32 %v3673_v11, %v6152_v50 }
0x1687   : > { %v3478_v17 = vmul.f32 1.442695, %v3476_v6  ;;  %v3776_v62 = vpop.f32.mrf.mxu0 }
0x1688   : > { %v3678_v58 = vsel %vm1232_vm0, %v3674_v59, -inf  ;;  %v3777_v33 = vadd.f32 %v3776_v62, %v6156_v55 }
0x1689   : > { %5163 = vpow2.f32 %v3478_v17  ;;  %3679 = vmax.xlane.f32.xlu2 %v3678_v58 }
0x168a   : > { %v3782_v36 = vsel %vm1232_vm0, %v3777_v33, -inf }
0x168c   : > { %v3475_v30 = vpop.xlane.xlu2 %3474 }
0x168d   : > { %v3675_v46 = vpop.f32.mrf.mxu2  ;;  %v3477_v60 = vsub.f32 %v3468_v41, %v3475_v30 }
0x168e   : > { %v3676_v27 = vadd.f32 %v3675_v46, %v6156_v55 }
0x168f   : > { %v6816_v50 = vpop.eup %5163  ;;  %v3480_v15 = vmul.f32 1.442695, %v3477_v60 }
0x1690   : > { %v3482_v23 = vsel %vm1232_vm0, %v6816_v50, 0.0  ;;  %v3681_v29 = vsel %vm1232_vm0, %v3676_v27, -inf }
0x1691   : > { %3483 = vadd.xlane.f32.xlu1 %v3482_v23  ;;  %3783 = vmax.xlane.f32.xlu2 %v3782_v36  ;;  %5165 = vpow2.f32 %v3480_v15 }
0x1697   : > { %3626 = vrot.lane.b32.xlu0 %v3527_v42, %s7115_s5  ;;  %v6827_v7 = vpop.eup %5165 }
0x1698   : > { %v3485_v20 = vsel %vm1232_vm0, %v6827_v7, 0.0 }
0x1699   : > { %3682 = vmax.xlane.f32.xlu1 %v3681_v29 }
0x16b2   : > { %3628 = vrot.lane.b32.xlu1 %v6814_v37, %s7115_s5  ;;  %s7137_s5 = sld [smem:[#allocation55_spill]] }
0x16c1   : > { %3486 = vadd.xlane.f32.xlu0 %v3485_v20 }
0x16df   : > { %v3579_v34 = vpop.xlane.xlu1 %3578 }
0x16e0   : > { %v3583_v55 = vsub.f32 %v3573_v8, %v3579_v34 }
0x16e2   : > { %v3585_v1 = vmul.f32 1.442695, %v3583_v55 }
0x16e4   : > { %5167 = vpow2.f32 %v3585_v1 }
0x16e7   : > { %v3582_v43 = vpop.xlane.xlu0 %3581 }
0x16e8   : > { %v3584_v35 = vsub.f32 %v3575_v45, %v3582_v43 }
0x16ea   : > { %v6831_v24 = vpop.eup %5167  ;;  %v3587_v51 = vmul.f32 1.442695, %v3584_v35 }
0x16eb   : > { %v3589_v2 = vsel %vm1232_vm0, %v6831_v24, 0.0 }
0x16ec   : > { %5169 = vpow2.f32 %v3587_v51  ;;  %3590 = vadd.xlane.f32.xlu2 %v3589_v2 }
0x16f2   : > { %v6835_v49 = vpop.eup %5169 }
0x16f3   : > { %v3592_v38 = vsel %vm1232_vm0, %v6835_v49, 0.0 }
0x16f4   : > { %3593 = vadd.xlane.f32.xlu1 %v3592_v38 }
0x16f6   : > { %v3781_v26 = vpop.xlane.xlu0 %3780 }
0x16f7   : > { %v3785_v57 = vsub.f32 %v6807_v10, %v3781_v26 }
0x16f9   : > { %v3787_v8 = vmul.f32 1.442695, %v3785_v57 }
0x16fc   : > { %v3680_v28 = vpop.xlane.xlu2 %3679 }
0x16fd   : > { %v3684_v41 = vsub.f32 %v3674_v59, %v3680_v28 }
0x16ff   : > { %v3686_v48 = vmul.f32 1.442695, %v3684_v41 }
0x1701   : > { %5171 = vpow2.f32 %v3686_v48 }
0x1702   : > { %5173 = vpow2.f32 %v3787_v8 }
0x1704   : > { %v3484_v39 = vpop.xlane.xlu1 %3483  ;;  %v3784_v45 = vpop.xlane.xlu2 %3783 }
0x1705   : > { %v3786_v12 = vsub.f32 %v3777_v33, %v3784_v45  ;;  %v3499_v47 = vand.u32 2147483648, %v3484_v39  ;;  %vm3493_vm4 = vweird.f32 %v3484_v39  ;;  %v3497_v5 = vand.u32 2147483647, %v3484_v39 }
0x1707   : > { %v6840_v32 = vpop.eup %5171  ;;  %v3789_v63 = vmul.f32 1.442695, %v3786_v12  ;;  %v3500_v23 = vor.u32 1.1754944e-38, %v3499_v47  ;;  %vm3498_vm14 = vcmp.eq.f32.partialorder %v3497_v5, 8.507059e+37 }
0x1708   : > { %v3690_v9 = vsel %vm1232_vm0, %v6840_v32, 0.0  ;;  %v6844_v53 = vpop.eup %5173 }
0x1709   : > { %3691 = vadd.xlane.f32.xlu0 %v3690_v9  ;;  %v3791_v10 = vsel %vm1232_vm0, %v6844_v53, 0.0  ;;  %v3627_v13 = vpop.permute.xlu0 %3626 }
0x170c   : > { %v3683_v52 = vpop.xlane.xlu1 %3682 }
0x170d   : > { %v3685_v54 = vsub.f32 %v3676_v27, %v3683_v52  ;;  %3727 = vrot.lane.b32.xlu1 %v3527_v42, %s7119_s21 }
0x170f   : > { %v3688_v22 = vmul.f32 1.442695, %v3685_v54 }
0x1711   : > { %5175 = vpow2.f32 %v3688_v22  ;;  %3792 = vadd.xlane.f32.xlu0 %v3791_v10 }
0x1712   : > { %5177 = vpow2.f32 %v3789_v63 }
0x1713   : > { %5179 = vrcp.f32 %v3484_v39 }
0x1715   : > { %3828 = vrot.lane.b32.xlu1 %v3527_v42, %s7117_s12 }
0x1717   : > { %v6850_v0 = vpop.eup %5175 }
0x1718   : > { %v3693_v3 = vsel %vm1232_vm0, %v6850_v0, 0.0  ;;  %v6854_v4 = vpop.eup %5177 }
0x1719   : > { %3694 = vadd.xlane.f32.xlu2 %v3693_v3  ;;  %v3794_v6 = vsel %vm1232_vm0, %v6854_v4, 0.0  ;;  %v5180_v16 = vpop.eup %5179 }
0x171a   : > { %v3489_v59 = vmul.f32 %v5180_v16, %v3484_v39  ;;  %vm3494_vm10 = vweird.f32 %v5180_v16 }
0x171b   : > { %vm3495_vm12 = vmor %vm3493_vm4, %vm3494_vm10 }
0x171c   : > { %v3490_v14 = vsub.f32 1.0, %v3489_v59 }
0x171e   : > { %v3491_v18 = vmul.f32 %v5180_v16, %v3490_v14 }
0x1720   : > { %v3492_v58 = vadd.f32 %v5180_v16, %v3491_v18 }
0x1721   : > { %3795 = vadd.xlane.f32.xlu2 %v3794_v6 }
0x1722   : > { %v3496_v33 = vsel %vm3495_vm12, %v5180_v16, %v3492_v58 }
0x1723   : > { %v3501_v46 = vsel %vm3498_vm14, %v3500_v23, %v3496_v33 }
0x1724   : > { %v3629_v11 = vpop.permute.xlu1 %3628  ;;  %v3516_v29 = vmul.f32 %v6816_v50, %v3501_v46 }
0x1725   : > { %3830 = vrot.lane.b32.xlu0 %v6814_v37, %s7117_s12  ;;  %3641 = vmatpush.bf16.msrb.mxu1 %v3629_v11  ;;  %s7139_s12 = sld [smem:[#allocation57_spill]] }
0x1729   : > { %3642 = vmatpush.bf16.msrb.mxu1 %v3627_v13 }
0x1734   : > { %v3487_v17 = vpop.xlane.xlu0 %3486 }
0x1735   : > { %5181 = vrcp.f32 %v3487_v17  ;;  %v3513_v19 = vand.u32 2147483648, %v3487_v17  ;;  %v3511_v40 = vand.u32 2147483647, %v3487_v17  ;;  %vm3507_vm15 = vweird.f32 %v3487_v17 }
0x1737   : > { %vm3512_vm5 = vcmp.eq.f32.partialorder %v3511_v40, 8.507059e+37 }
0x1739   : > { %3729 = vrot.lane.b32.xlu2 %v6814_v37, %s7119_s21  ;;  %v3514_v37 = vor.u32 1.1754944e-38, %v3513_v19  ;;  %s7138_s21 = sld [smem:[#allocation56_spill]] }
0x173b   : > { %v5182_v31 = vpop.eup %5181 }
0x173c   : > { %v3503_v62 = vmul.f32 %v5182_v31, %v3487_v17  ;;  %vm3508_vm13 = vweird.f32 %v5182_v31 }
0x173d   : > { %vm3509_vm2 = vmor %vm3507_vm15, %vm3508_vm13 }
0x173e   : > { %v3504_v56 = vsub.f32 1.0, %v3503_v62 }
0x1740   : > { %v3505_v21 = vmul.f32 %v5182_v31, %v3504_v56 }
0x1742   : > { %v3506_v36 = vadd.f32 %v5182_v31, %v3505_v21 }
0x1744   : > { %v3510_v42 = vsel %vm3509_vm2, %v5182_v31, %v3506_v36 }
0x1745   : > { %v3515_v27 = vsel %vm3512_vm5, %v3514_v37, %v3510_v42 }
0x1746   : > { %v3517_v30 = vmul.f32 %v6827_v7, %v3515_v27 }
0x1748   : > { %v3518_v60 = vpack.c.bf16 %v3517_v30, %v3516_v29 }
0x174a   : > { %4665 = vmatmul.msk.bf16.vlgmr.msra.gmra.mxu1 %vm1232_vm0, %v3518_v60 }
0x175f   : > { %v3591_v15 = vpop.xlane.xlu2 %3590 }
0x1760   : > { %5183 = vrcp.f32 %v3591_v15  ;;  %v3606_v38 = vand.u32 2147483648, %v3591_v15  ;;  %vm3600_vm7 = vweird.f32 %v3591_v15  ;;  %v3604_v50 = vand.u32 2147483647, %v3591_v15 }
0x1762   : > { %v3607_v48 = vor.u32 1.1754944e-38, %v3606_v38  ;;  %vm3605_vm4 = vcmp.eq.f32.partialorder %v3604_v50, 8.507059e+37 }
0x1766   : > { %v5184_v20 = vpop.eup %5183 }
0x1767   : > { %v3596_v34 = vmul.f32 %v5184_v20, %v3591_v15  ;;  %v3594_v55 = vpop.xlane.xlu1 %3593  ;;  %vm3601_vm6 = vweird.f32 %v5184_v20 }
0x1768   : > { %5185 = vrcp.f32 %v3594_v55  ;;  %vm3602_vm9 = vmor %vm3600_vm7, %vm3601_vm6  ;;  %v3620_v7 = vand.u32 2147483648, %v3594_v55  ;;  %v3618_v57 = vand.u32 2147483647, %v3594_v55  ;;  %vm3614_vm12 = vweird.f32 %v3594_v55 }
0x1769   : > { %v3597_v1 = vsub.f32 1.0, %v3596_v34 }
0x176a   : > { %v3621_v9 = vor.u32 1.1754944e-38, %v3620_v7  ;;  %vm3619_vm14 = vcmp.eq.f32.partialorder %v3618_v57, 8.507059e+37 }
0x176b   : > { %v3598_v43 = vmul.f32 %v5184_v20, %v3597_v1 }
0x176d   : > { %v3599_v51 = vadd.f32 %v5184_v20, %v3598_v43 }
0x176e   : > { %v5186_v35 = vpop.eup %5185 }
0x176f   : > { %v3610_v2 = vmul.f32 %v5186_v35, %v3594_v55  ;;  %v3603_v28 = vsel %vm3602_vm9, %v5184_v20, %v3599_v51  ;;  %vm3615_vm10 = vweird.f32 %v5186_v35 }
0x1770   : > { %v3608_v39 = vsel %vm3605_vm4, %v3607_v48, %v3603_v28  ;;  %vm3616_vm13 = vmor %vm3614_vm12, %vm3615_vm10 }
0x1771   : > { %v3611_v26 = vsub.f32 1.0, %v3610_v2  ;;  %v3623_v54 = vmul.f32 %v6831_v24, %v3608_v39 }
0x1773   : > { %v3612_v41 = vmul.f32 %v5186_v35, %v3611_v26 }
0x1775   : > { %v3613_v8 = vadd.f32 %v5186_v35, %v3612_v41 }
0x1777   : > { %v3617_v45 = vsel %vm3616_vm13, %v5186_v35, %v3613_v8 }
0x1778   : > { %v3622_v52 = vsel %vm3619_vm14, %v3621_v9, %v3617_v45 }
0x1779   : > { %v3624_v12 = vmul.f32 %v6835_v49, %v3622_v52 }
0x177b   : > { %v3625_v22 = vpack.c.bf16 %v3624_v12, %v3623_v54 }
0x177c   : > { %v3692_v10 = vpop.xlane.xlu0 %3691 }
0x177d   : > { %4667 = vmatmul.msk.bf16.vlgmr.msrb.gmra.mxu1 %vm1232_vm0, %v3625_v22  ;;  %5187 = vrcp.f32 %v3692_v10  ;;  %vm3701_vm2 = vweird.f32 %v3692_v10  ;;  %v3707_v62 = vand.u32 2147483648, %v3692_v10  ;;  %v3705_v5 = vand.u32 2147483647, %v3692_v10 }
0x177f   : > { %v3728_v24 = vpop.permute.xlu1 %3727  ;;  %v3708_v46 = vor.u32 1.1754944e-38, %v3707_v62  ;;  %vm3706_vm7 = vcmp.eq.f32.partialorder %v3705_v5, 8.507059e+37 }
0x1783   : > { %v5188_v63 = vpop.eup %5187 }
0x1784   : > { %v3793_v3 = vpop.xlane.xlu0 %3792  ;;  %v3697_v6 = vmul.f32 %v5188_v63, %v3692_v10  ;;  %vm3702_vm15 = vweird.f32 %v5188_v63 }
0x1785   : > { %5189 = vrcp.f32 %v3793_v3  ;;  %vm6871_vm5 = vmor %vm3701_vm2, %vm3702_vm15  ;;  %v3808_v55 = vand.u32 2147483648, %v3793_v3  ;;  %vm3802_vm13 = vweird.f32 %v3793_v3  ;;  %v3806_v43 = vand.u32 2147483647, %v3793_v3 }
0x1786   : > { %v3698_v11 = vsub.f32 1.0, %v3697_v6 }
0x1787   : > { %v3829_v29 = vpop.permute.xlu1 %3828  ;;  %v3809_v28 = vor.u32 1.1754944e-38, %v3808_v55  ;;  %vm3807_vm2 = vcmp.eq.f32.partialorder %v3806_v43, 8.507059e+37 }
0x1788   : > { %v3699_v59 = vmul.f32 %v5188_v63, %v3698_v11 }
0x178a   : > { %v3700_v49 = vadd.f32 %v5188_v63, %v3699_v59 }
0x178b   : > { %v6868_v16 = vpop.eup %5189 }
0x178c   : > { %v3695_v13 = vpop.xlane.xlu2 %3694  ;;  %v3798_v14 = vmul.f32 %v6868_v16, %v3793_v3  ;;  %v3704_v19 = vsel %vm6871_vm5, %v5188_v63, %v3700_v49  ;;  %vm3803_vm10 = vweird.f32 %v6868_v16 }
0x178d   : > { %5191 = vrcp.f32 %v3695_v13  ;;  %v3721_v33 = vand.u32 2147483648, %v3695_v13  ;;  %v3719_v36 = vand.u32 2147483647, %v3695_v13  ;;  %vm3715_vm9 = vweird.f32 %v3695_v13  ;;  %vm3804_vm14 = vmor %vm3802_vm13, %vm3803_vm10 }
0x178e   : > { %v3799_v18 = vsub.f32 1.0, %v3798_v14  ;;  %v3709_v27 = vsel %vm3706_vm7, %v3708_v46, %v3704_v19 }
0x178f   : > { %v3722_v30 = vor.u32 1.1754944e-38, %v3721_v33  ;;  %vm3720_vm12 = vcmp.eq.f32.partialorder %v3719_v36, 8.507059e+37  ;;  %v3724_v2 = vmul.f32 %v6840_v32, %v3709_v27 }
0x1790   : > { %v3800_v40 = vmul.f32 %v6868_v16, %v3799_v18 }
0x1792   : > { %v3801_v60 = vadd.f32 %v6868_v16, %v3800_v40 }
0x1793   : > { %v5192_v17 = vpop.eup %5191 }
0x1794   : > { %v3711_v31 = vmul.f32 %v5192_v17, %v3695_v13  ;;  %v3796_v58 = vpop.xlane.xlu2 %3795  ;;  %vm3716_vm6 = vweird.f32 %v5192_v17  ;;  %v3805_v50 = vsel %vm3804_vm14, %v6868_v16, %v3801_v60 }
0x1795   : > { %5193 = vrcp.f32 %v3796_v58  ;;  %vm3717_vm4 = vmor %vm3715_vm9, %vm3716_vm6  ;;  %v3822_v38 = vand.u32 2147483648, %v3796_v58  ;;  %v3820_v7 = vand.u32 2147483647, %v3796_v58  ;;  %vm3816_vm5 = vweird.f32 %v3796_v58 }
0x1796   : > { %v3712_v56 = vsub.f32 1.0, %v3711_v31  ;;  %v3810_v48 = vsel %vm3807_vm2, %v3809_v28, %v3805_v50 }
0x1797   : > { %v3831_v21 = vpop.permute.xlu0 %3830  ;;  %vm3821_vm7 = vcmp.eq.f32.partialorder %v3820_v7, 8.507059e+37  ;;  %v3825_v39 = vmul.f32 %v6844_v53, %v3810_v48  ;;  %v4763_v53 = vld [vmem:[#allocation16 + $0x18] sm:$0xff]  ;;  %v4764_v7 = vld [vmem:[#allocation17 + $0x10] sm:$0xff] }
0x1798   : > { %v3713_v23 = vmul.f32 %v5192_v17, %v3712_v56  ;;  %3843 = vmatpush.bf16.msra.mxu1 %v3831_v21  ;;  %3908 = vmatpush.bf16.msrb.mxu2 %v4763_v53 }
0x179a   : > { %v3714_v37 = vadd.f32 %v5192_v17, %v3713_v23  ;;  %v5040_v23 = vld [vmem:[%s7107_s20 + $0x1] ss:$0 sm:$0xff] }
0x179b   : > { %v5194_v42 = vpop.eup %5193 }
0x179c   : > { %v3718_v15 = vsel %vm3717_vm4, %v5192_v17, %v3714_v37  ;;  %v3812_v20 = vmul.f32 %v5194_v42, %v3796_v58  ;;  %v3730_v34 = vpop.permute.xlu2 %3729  ;;  %3844 = vmatpush.bf16.msra.mxu1 %v3829_v29  ;;  %vm3817_vm15 = vweird.f32 %v5194_v42 }
0x179d   : > { %v3723_v1 = vsel %vm3720_vm12, %v3722_v30, %v3718_v15  ;;  %3742 = vmatpush.bf16.msra.mxu3 %v3730_v34  ;;  %vm3818_vm6 = vmor %vm3816_vm5, %vm3817_vm15 }
0x179e   : > { %v3725_v35 = vmul.f32 %v6850_v0, %v3723_v1  ;;  %v3813_v51 = vsub.f32 1.0, %v3812_v20  ;;  %v3823_v0 = vor.u32 1.1754944e-38, %v3822_v38  ;;  %v4765_v38 = vld [vmem:[#allocation17 + $0x18] sm:$0xff] }
0x17a0   : > { %v3814_v26 = vmul.f32 %v5194_v42, %v3813_v51  ;;  %v3726_v41 = vpack.c.bf16 %v3725_v35, %v3724_v2 }
0x17a1   : > { %3743 = vmatpush.bf16.msra.mxu3 %v3728_v24 }
0x17a2   : > { %v3815_v57 = vadd.f32 %v5194_v42, %v3814_v26 }
0x17a4   : > { %v3819_v8 = vsel %vm3818_vm6, %v5194_v42, %v3815_v57  ;;  %4669 = vmatmul.msk.bf16.vlgmr.msra.gmra.mxu3 %vm1232_vm0, %v3726_v41 }
0x17a5   : > { %v3824_v32 = vsel %vm3821_vm7, %v3823_v0, %v3819_v8  ;;  %4008 = vmatpush.bf16.msrb.mxu3 %v4765_v38 }
0x17a6   : > { %v3826_v9 = vmul.f32 %v6854_v4, %v3824_v32  ;;  %v4762_v4 = vld [vmem:[#allocation16 + $0x10] sm:$0xff] }
0x17a7   : > { %3909 = vmatpush.bf16.msrb.mxu2 %v4762_v4 }
0x17a8   : > { %v3827_v45 = vpack.c.bf16 %v3826_v9, %v3825_v39 }
0x17a9   : > { %4009 = vmatpush.bf16.msrb.mxu3 %v4764_v7 }
0x17aa   : > { %4671 = vmatmul.msk.bf16.vlgmr.msra.gmra.mxu1 %vm1232_vm0, %v3827_v45 }
0x17c7   : > { %v3543_v52 = vpop.f32.mrf.mxu1 }
0x17cf   : > { %v3545_v54 = vpop.f32.mrf.mxu1 }
0x17fa   : > { %v3644_v12 = vpop.f32.mrf.mxu1 }
0x1802   : > { %v3646_v22 = vpop.f32.mrf.mxu1 }
0x1803   : > { %v5002_v10 = vpack.i.bf16 %v3646_v22, %v3644_v12 }
0x1805   : > { %5003 = vrot.lane.b32.xlu2 %v5002_v10, %s7132_s9 }
0x1827   : > { %v3745_v63 = vpop.f32.mrf.mxu3  ;;  %v3846_v3 = vpop.f32.mrf.mxu1 }
0x182f   : > { %v3747_v6 = vpop.f32.mrf.mxu3  ;;  %v3848_v11 = vpop.f32.mrf.mxu1 }
0x1830   : > { %v5007_v13 = vpack.i.bf16 %v3747_v6, %v3745_v63  ;;  %v5012_v16 = vpack.i.bf16 %v3848_v11, %v3846_v3  ;;  %v5041_v63 = vld [vmem:[%s7108_s7 + $0x1] ss:$0 sm:$0xff] }
0x1832   : > { %5008 = vrot.lane.b32.xlu0 %v5007_v13, %s7133_s17  ;;  %5013 = vrot.lane.b32.xlu1 %v5012_v16, %s7134_s6  ;;  %v5042_v13 = vld [vmem:[%s7109_s28 + $0x1] ss:$0 sm:$0xff]  ;;  %s4204_s17 = scalar_lea.hbm %s7139_s12, %s4770_s13  ;;  %s4205_s6 = sshll.u32 %s1178_s14, 4  ;;  %s4206_s6 = int_to_ptr.vmem [resolvable:$true] %s4205_s6 }
0x1833   : > { %s5565_s13 = scalar_lea.hbm %s7139_s12, 64 }
0x185f   : > { %v5004_v59 = vpop.permute.xlu2 %5003 }
0x1860   : > { %v5006_v14 = vunpack.i.h.bf16 %v5004_v59  ;;  %v5005_v24 = vunpack.i.l.bf16 %v5004_v59 }
0x1862   : > { %v3876_v47 = vsel %vm1312_vm1, %v3545_v54, %v5006_v14  ;;  %v3875_v5 = vsel %vm1312_vm1, %v3543_v52, %v5005_v24 }
0x18a4   : > { %v5009_v17 = vpop.permute.xlu0 %5008  ;;  %v5014_v49 = vpop.permute.xlu1 %5013 }
0x18a5   : > { %v5011_v18 = vunpack.i.h.bf16 %v5009_v17  ;;  %v5010_v31 = vunpack.i.l.bf16 %v5009_v17  ;;  %v5016_v58 = vunpack.i.h.bf16 %v5014_v49  ;;  %v5015_v62 = vunpack.i.l.bf16 %v5014_v49  ;;  %v4769_v17 = vld [vmem:[%s7110_s26 + $0x38] sm:$0xff]  ;;  %v4768_v49 = vld [vmem:[%s7110_s26 + $0x30] sm:$0xff] }
0x18a6   : > { %4064 = vmatpush.bf16.msra.mxu0 %v4769_v17 }
0x18a7   : > { %v3877_v56 = vsel %vm1333_vm3, %v3875_v5, %v5010_v31  ;;  %v3878_v19 = vsel %vm1333_vm3, %v3876_v47, %v5011_v18  ;;  %v4767_v18 = vld [vmem:[%s7110_s26 + $0x28] sm:$0xff]  ;;  %v4766_v31 = vld [vmem:[%s7110_s26 + $0x20] sm:$0xff] }
0x18a8   : > { %v3880_v33 = vsel %vm1713_vm11, %v3878_v19, %v5016_v58  ;;  %v3879_v21 = vsel %vm1713_vm11, %v3877_v56, %v5015_v62  ;;  %v5043_v62 = vld [vmem:[%s7111_s10 + $0x1] ss:$0 sm:$0xff] }
0x18a9   : > { %v3881_v40 = vpack.c.bf16 %v3880_v33, %v3879_v21 }
0x18aa   : > { %4065 = vmatpush.bf16.msra.mxu0 %v4768_v49 }
0x18ab   : > { %4681 = vmatmul.msk.bf16.vlgmr.msrb.gmra.mxu2 %vm1232_vm0, %v3881_v40  ;;  %v5044_v40 = vld [vmem:[%s7112_s8 + $0x1] ss:$0 sm:$0xff] }
0x18ae   : > { %4066 = vmatpush.bf16.msra.mxu0 %v4767_v18 }
0x18b2   : > { %4067 = vmatpush.bf16.msra.mxu0 %v4766_v31 }
0x192e   : > { %v3911_v36 = vpop.f32.mrf.mxu2 }
0x192f   : > { %v3912_v46 = vadd.f32 %v5040_v23, %v3911_v36 }
0x1931   : > { %v3916_v37 = vadd.f32 %v3912_v46, %v6758_v61 }
0x1933   : > { %v3922_v42 = vsel %vm1232_vm0, %v3916_v37, 0.0 }
0x1934   : > { %3923 = vadd.xlane.f32.xlu2 %v3922_v42 }
0x1936   : > { %v3913_v27 = vpop.f32.mrf.mxu2 }
0x1937   : > { %v3914_v29 = vadd.f32 %v5040_v23, %v3913_v27 }
0x1939   : > { %v3917_v30 = vadd.f32 %v3914_v29, %v6760_v25 }
0x193b   : > { %v3925_v60 = vsel %vm1232_vm0, %v3917_v30, 0.0 }
0x193c   : > { %3926 = vadd.xlane.f32.xlu0 %v3925_v60 }
0x19a7   : > { %v3924_v15 = vpop.xlane.xlu2 %3923 }
0x19a8   : > { %v3928_v20 = vmul.f32 %v3924_v15, %v6309_v44 }
0x19aa   : > { %v3930_v34 = vsub.f32 %v3916_v37, %v3928_v20 }
0x19ac   : > { %v3932_v55 = vmul.f32 %v3930_v34, %v3930_v34 }
0x19ae   : > { %v3934_v1 = vsel %vm1232_vm0, %v3932_v55, 0.0 }
0x19af   : > { %v3927_v43 = vpop.xlane.xlu0 %3926  ;;  %3935 = vadd.xlane.f32.xlu1 %v3934_v1 }
0x19b0   : > { %v3929_v61 = vmul.f32 %v3927_v43, %v6309_v44 }
0x19b2   : > { %v3931_v35 = vsub.f32 %v3917_v30, %v3929_v61 }
0x19b4   : > { %v3933_v51 = vmul.f32 %v3931_v35, %v3931_v35 }
0x19b6   : > { %v3937_v2 = vsel %vm1232_vm0, %v3933_v51, 0.0 }
0x19b7   : > { %3938 = vadd.xlane.f32.xlu2 %v3937_v2 }
0x1a22   : > { %v3936_v25 = vpop.xlane.xlu1 %3935 }
0x1a23   : > { %v3940_v50 = vmul.f32 %v3936_v25, %v6309_v44 }
0x1a25   : > { %v3942_v26 = vadd.f32 1e-05, %v3940_v50 }
0x1a27   : > { %5195 = vrsqrt.f32 %v3942_v26  ;;  %vm3950_vm3 = vweird.f32 %v3942_v26 }
0x1a2a   : > { %v3939_v28 = vpop.xlane.xlu2 %3938 }
0x1a2b   : > { %v3941_v41 = vmul.f32 %v3939_v28, %v6309_v44 }
0x1a2d   : > { %v5196_v57 = vpop.eup %5195  ;;  %v3943_v48 = vadd.f32 1e-05, %v3941_v41 }
0x1a2e   : > { %v3945_v0 = vmul.f32 %v5196_v57, %v3942_v26  ;;  %vm3951_vm1 = vweird.f32 %v5196_v57 }
0x1a2f   : > { %5197 = vrsqrt.f32 %v3943_v48  ;;  %vm3952_vm11 = vmor %vm3950_vm3, %vm3951_vm1  ;;  %vm3960_vm10 = vweird.f32 %v3943_v48 }
0x1a30   : > { %v3946_v8 = vmul.f32 %v5196_v57, %v3945_v0 }
0x1a32   : > { %v3947_v32 = vmul.f32 0.5, %v3946_v8 }
0x1a34   : > { %v3948_v39 = vsub.f32 1.5, %v3947_v32 }
0x1a35   : > { %v5198_v9 = vpop.eup %5197 }
0x1a36   : > { %v3949_v45 = vmul.f32 %v5196_v57, %v3948_v39  ;;  %v3955_v52 = vmul.f32 %v5198_v9, %v3943_v48  ;;  %vm3961_vm9 = vweird.f32 %v5198_v9 }
0x1a37   : > { %vm3962_vm4 = vmor %vm3960_vm10, %vm3961_vm9 }
0x1a38   : > { %v3956_v54 = vmul.f32 %v5198_v9, %v3955_v52  ;;  %v3953_v12 = vsel %vm3952_vm11, %v5196_v57, %v3949_v45 }
0x1a39   : > { %v3964_v3 = vmul.f32 %v3953_v12, %v3930_v34  ;;  %v5046_v12 = vld [vmem:[#allocation19 + $0x1] ss:$0 sm:$0xff] }
0x1a3a   : > { %v3957_v22 = vmul.f32 0.5, %v3956_v54 }
0x1a3b   : > { %v3969_v16 = vmul.f32 %v5041_v63, %v3964_v3 }
0x1a3c   : > { %v3958_v10 = vsub.f32 1.5, %v3957_v22 }
0x1a3d   : > { %v3974_v59 = vadd.f32 %v5042_v13, %v3969_v16 }
0x1a3e   : > { %v3959_v6 = vmul.f32 %v5198_v9, %v3958_v10 }
0x1a40   : > { %v3963_v11 = vsel %vm3962_vm4, %v5198_v9, %v3959_v6  ;;  %v5045_v9 = vld [vmem:[%s7113_s19 + $0x1] ss:$0 sm:$0xff] }
0x1a41   : > { %v3965_v53 = vmul.f32 %v3963_v11, %v3931_v35 }
0x1a43   : > { %v3970_v4 = vmul.f32 %v5041_v63, %v3965_v53 }
0x1a45   : > { %v3975_v14 = vadd.f32 %v5042_v13, %v3970_v4 }
0x1a47   : > { %v3976_v24 = vpack.c.bf16 %v3975_v14, %v3974_v59 }
0x1a49   : > { %4693 = vmatmul.msk.bf16.vlgmr.msrb.gmra.mxu3 %vm1232_vm0, %v3976_v24 }
0x1acc   : > { %v4011_v58 = vpop.f32.mrf.mxu3 }
0x1acd   : > { %v4012_v47 = vadd.f32 %v5043_v62, %v4011_v58 }
0x1acf   : > { %v4016_v19 = vmax.f32 %v4012_v47, 0.0 }
0x1ad4   : > { %v4013_v5 = vpop.f32.mrf.mxu3 }
0x1ad5   : > { %v4014_v56 = vadd.f32 %v5043_v62, %v4013_v5 }
0x1ad7   : > { %v4017_v33 = vmax.f32 %v4014_v56, 0.0 }
0x1ad9   : > { %v4018_v21 = vpack.c.bf16 %v4017_v33, %v4016_v19 }
0x1adb   : > { %4719 = vmatmul.msk.bf16.vlgmr.msra.gmra.mxu0 %vm2587_vm8, %v4018_v21 }
0x1b58   : > { %v4069_v23 = vpop.f32.mrf.mxu0 }
0x1b59   : > { %v4070_v36 = vadd.f32 %v5044_v40, %v4069_v23 }
0x1b5b   : > { %v4074_v46 = vadd.f32 %v4070_v36, %v3974_v59 }
0x1b5d   : > { %v4080_v37 = vsel %vm1232_vm0, %v4074_v46, 0.0 }
0x1b5e   : > { %4081 = vadd.xlane.f32.xlu0 %v4080_v37 }
0x1b60   : > { %v4071_v42 = vpop.f32.mrf.mxu0 }
0x1b61   : > { %v4072_v27 = vadd.f32 %v5044_v40, %v4071_v42 }
0x1b63   : > { %v4075_v29 = vadd.f32 %v4072_v27, %v3975_v14 }
0x1b65   : > { %v4083_v30 = vsel %vm1232_vm0, %v4075_v29, 0.0 }
0x1b66   : > { %4084 = vadd.xlane.f32.xlu1 %v4083_v30 }
0x1bd1   : > { %v4082_v60 = vpop.xlane.xlu0 %4081 }
0x1bd2   : > { %v4086_v15 = vmul.f32 %v4082_v60, %v6309_v44 }
0x1bd4   : > { %v4088_v20 = vsub.f32 %v4074_v46, %v4086_v15  ;;  %v5047_v15 = vld [vmem:[%s7137_s5] ss:$0 sm:$0xff]  ;;  %s4207_s5 = sshll.u32 %s4204_s17, 4  ;;  %s4208_s5 = int_to_ptr.hbm [resolvable:$true] %s4207_s5 }
0x1bd6   : > { %v4090_v34 = vmul.f32 %v4088_v20, %v4088_v20 }
0x1bd8   : > { %v4092_v55 = vsel %vm1232_vm0, %v4090_v34, 0.0  ;;  %v5048_v34 = vld [vmem:[%s7138_s21] ss:$0 sm:$0xff]  ;;  %s5559_s21 = sshra.s32 %s4208_s5, 4  ;;  %s5560_s21 = int_to_ptr.hbm [resolvable:$true] %s5559_s21 }
0x1bd9   : > { %v4085_v1 = vpop.xlane.xlu1 %4084  ;;  %4093 = vadd.xlane.f32.xlu2 %v4092_v55  ;;  %s5561_s11 = scalar_lea.hbm %s5560_s21, 16  ;;  %p5566_p2 = scmp.lt.s32.totalorder %s5560_s21, %s7139_s12 }
0x1bda   : > { %v4087_v43 = vmul.f32 %v4085_v1, %v6309_v44  ;;  %p5562_p4 = scmp.ne.s32.totalorder %s5560_s21, %s5561_s11  ;;  %p5567_p6 = scmp.lt.s32.totalorder %s5565_s13, %s5561_s11 }
0x1bdc   : > { %v4089_v61 = vsub.f32 %v4075_v29, %v4087_v43  ;;  %p5563_p8 = pnand %p5562_p4, %p5979_p0  ;;  %p5568_p11 = por %p5567_p6, %p5566_p2 }
0x1bde   : > { %v4091_v35 = vmul.f32 %v4089_v61, %v4089_v61  ;;  %p5564_p9 = pneg %p5563_p8 }
0x1be0   : > { %v4095_v51 = vsel %vm1232_vm0, %v4091_v35, 0.0  ;;  %p5569_p12 = pnand %p5568_p11, %p5564_p9 }
0x1be1   : > { %4096 = vadd.xlane.f32.xlu0 %v4095_v51 }
0x1c4c   : > { %v4094_v2 = vpop.xlane.xlu2 %4093 }
0x1c4d   : > { %v4098_v25 = vmul.f32 %v4094_v2, %v6309_v44 }
0x1c4f   : > { %v4100_v38 = vadd.f32 1e-05, %v4098_v25 }
0x1c51   : > { %5199 = vrsqrt.f32 %v4100_v38  ;;  %vm4108_vm12 = vweird.f32 %v4100_v38 }
0x1c54   : > { %v4097_v50 = vpop.xlane.xlu0 %4096 }
0x1c55   : > { %v4099_v26 = vmul.f32 %v4097_v50, %v6309_v44 }
0x1c57   : > { %v5200_v7 = vpop.eup %5199  ;;  %v4101_v28 = vadd.f32 1e-05, %v4099_v26 }
0x1c58   : > { %v4103_v41 = vmul.f32 %v5200_v7, %v4100_v38  ;;  %vm4109_vm8 = vweird.f32 %v5200_v7 }
0x1c59   : > { %5201 = vrsqrt.f32 %v4101_v28  ;;  %vm4110_vm13 = vmor %vm4108_vm12, %vm4109_vm8  ;;  %vm4118_vm15 = vweird.f32 %v4101_v28 }
0x1c5a   : > { %v4104_v57 = vmul.f32 %v5200_v7, %v4103_v41 }
0x1c5c   : > { %v4105_v48 = vmul.f32 0.5, %v4104_v57 }
0x1c5e   : > { %v4106_v0 = vsub.f32 1.5, %v4105_v48 }
0x1c5f   : > { %v5202_v8 = vpop.eup %5201 }
0x1c60   : > { %v4107_v32 = vmul.f32 %v5200_v7, %v4106_v0  ;;  %v4113_v39 = vmul.f32 %v5202_v8, %v4101_v28  ;;  %vm4119_vm14 = vweird.f32 %v5202_v8 }
0x1c61   : > { %vm4120_vm2 = vmor %vm4118_vm15, %vm4119_vm14 }
0x1c62   : > { %v4114_v45 = vmul.f32 %v5202_v8, %v4113_v39  ;;  %v4111_v52 = vsel %vm4110_vm13, %v5200_v7, %v4107_v32 }
0x1c63   : > { %v4122_v54 = vmul.f32 %v4111_v52, %v4088_v20 }
0x1c64   : > { %v4115_v22 = vmul.f32 0.5, %v4114_v45 }
0x1c65   : > { %v4127_v10 = vmul.f32 %v5045_v9, %v4122_v54 }
0x1c66   : > { %v4116_v63 = vsub.f32 1.5, %v4115_v22 }
0x1c67   : > { %v4132_v3 = vadd.f32 %v5046_v12, %v4127_v10 }
0x1c68   : > { %v4117_v6 = vmul.f32 %v5202_v8, %v4116_v63 }
0x1c69   : > { %v4136_v11 = vsel %vm1232_vm0, %v4132_v3, 0.0 }
0x1c6a   : > { %4137 = vadd.xlane.f32.xlu1 %v4136_v11  ;;  %v4121_v13 = vsel %vm4120_vm2, %v5202_v8, %v4117_v6 }
0x1c6b   : > { %v4123_v16 = vmul.f32 %v4121_v13, %v4089_v61 }
0x1c6d   : > { %v4128_v53 = vmul.f32 %v5045_v9, %v4123_v16 }
0x1c6f   : > { %v4133_v4 = vadd.f32 %v5046_v12, %v4128_v53 }
0x1c71   : > { %v4139_v59 = vsel %vm1232_vm0, %v4133_v4, 0.0 }
0x1c72   : > { %4140 = vadd.xlane.f32.xlu2 %v4139_v59 }
0x1cdd   : > { %v4138_v14 = vpop.xlane.xlu1 %4137 }
0x1cde   : > { %v4142_v24 = vmul.f32 %v4138_v14, %v6309_v44 }
0x1ce0   : > { %v4144_v17 = vsub.f32 %v4132_v3, %v4142_v24 }
0x1ce2   : > { %v4146_v49 = vmul.f32 %v4144_v17, %v4144_v17 }
0x1ce4   : > { %v4148_v18 = vsel %vm1232_vm0, %v4146_v49, 0.0 }
0x1ce5   : > { %4149 = vadd.xlane.f32.xlu0 %v4148_v18  ;;  %v4141_v31 = vpop.xlane.xlu2 %4140 }
0x1ce6   : > { %v4143_v58 = vmul.f32 %v4141_v31, %v6309_v44 }
0x1ce8   : > { %v4145_v62 = vsub.f32 %v4133_v4, %v4143_v58 }
0x1cea   : > { %v4147_v47 = vmul.f32 %v4145_v62, %v4145_v62 }
0x1cec   : > { %v4151_v5 = vsel %vm1232_vm0, %v4147_v47, 0.0 }
0x1ced   : > { %4152 = vadd.xlane.f32.xlu1 %v4151_v5 }
0x1d58   : > { %v4150_v56 = vpop.xlane.xlu0 %4149 }
0x1d59   : > { %v4154_v19 = vmul.f32 %v4150_v56, %v6309_v44 }
0x1d5b   : > { %v4156_v33 = vadd.f32 1e-05, %v4154_v19 }
0x1d5d   : > { %5203 = vrsqrt.f32 %v4156_v33  ;;  %vm4164_vm6 = vweird.f32 %v4156_v33 }
0x1d60   : > { %v4153_v21 = vpop.xlane.xlu1 %4152 }
0x1d61   : > { %v4155_v40 = vmul.f32 %v4153_v21, %v6309_v44 }
0x1d63   : > { %v5204_v23 = vpop.eup %5203  ;;  %v4157_v36 = vadd.f32 1e-05, %v4155_v40 }
0x1d64   : > { %v4159_v46 = vmul.f32 %v5204_v23, %v4156_v33  ;;  %vm4165_vm5 = vweird.f32 %v5204_v23 }
0x1d65   : > { %5205 = vrsqrt.f32 %v4157_v36  ;;  %vm4166_vm7 = vmor %vm4164_vm6, %vm4165_vm5  ;;  %vm4174_vm3 = vweird.f32 %v4157_v36 }
0x1d66   : > { %v4160_v37 = vmul.f32 %v5204_v23, %v4159_v46 }
0x1d68   : > { %v4161_v42 = vmul.f32 0.5, %v4160_v37 }
0x1d6a   : > { %v4162_v27 = vsub.f32 1.5, %v4161_v42 }
0x1d6b   : > { %v5206_v29 = vpop.eup %5205 }
0x1d6c   : > { %v4163_v30 = vmul.f32 %v5204_v23, %v4162_v27  ;;  %v4169_v60 = vmul.f32 %v5206_v29, %v4157_v36  ;;  %vm4175_vm1 = vweird.f32 %v5206_v29 }
0x1d6d   : > { %vm4176_vm11 = vmor %vm4174_vm3, %vm4175_vm1 }
0x1d6e   : > { %v4167_v20 = vsel %vm4166_vm7, %v5204_v23, %v4163_v30  ;;  %v4170_v44 = vmul.f32 %v5206_v29, %v4169_v60 }
0x1d6f   : > { %v4178_v55 = vmul.f32 %v4167_v20, %v4144_v17 }
0x1d70   : > { %v4171_v1 = vmul.f32 0.5, %v4170_v44 }
0x1d71   : > { %v4183_v43 = vmul.f32 %v5047_v15, %v4178_v55 }
0x1d72   : > { %v4172_v61 = vsub.f32 1.5, %v4171_v1 }
0x1d73   : > { %v4188_v35 = vadd.f32 %v5048_v34, %v4183_v43 }
0x1d74   : > { %v4173_v51 = vmul.f32 %v5206_v29, %v4172_v61 }
0x1d75   : > { %4190 = vst.msk [vmem:[%s1178_s14] sm:$0xff] %vm1232_vm0, %v4188_v35 }
0x1d76   : > { %v4177_v2 = vsel %vm4176_vm11, %v5206_v29, %v4173_v51 }
0x1d77   : > { %v4179_v25 = vmul.f32 %v4177_v2, %v4145_v62 }
0x1d79   : > { %v4184_v38 = vmul.f32 %v5047_v15, %v4179_v25 }
0x1d7b   : > { %v4189_v50 = vadd.f32 %v5048_v34, %v4184_v38 }
0x1d7d   : > { %4191 = vst.msk [vmem:[%s1178_s14 + $0x8] sm:$0xff] %vm1232_vm0, %v4189_v50 }
0x1d7e   : > { %5572 = shalt.err (!%p5569_p12)
}
0x1d7f   : > { %s5689_s17 = smov 128  }
0x1d80   : > { %4809 = dma.vmem_to_hbm [thread:$0]  (%p5979_p0), %s4206_s6, 256, %s4208_s5, %s4193_s23, %s5689_s17, %s5689_s17, %s7132_s9  }
0x1d81 PF: > { %p4867_p13 = scmp.ge.s32.totalorder %s5631_s22, 2  ;;  %s4222_s14 = sand.u32 1, %s5619_s15  }
0x1d82   : > { %s4223_s0 = scalar_lea.sflag [#allocation4], %s4222_s14 }
0x1d83   : > { %p4847_p10 = pnand %p4867_p13, %p5983_p3 }
0x1d85   : > { %p4848_p7 = pneg %p4847_p10 }
0x1d87   : > { %5614 = dma.done.wait (%p4848_p7), %s4223_s0, 256  }
0x1d88   : > { %5616 = vsyncadd (%p4848_p7), %s4223_s0, 4294967040  ;;  %s7142_s22 = sld [smem:[#allocation59_spill]]  ;;  %s7145_s15 = smov %s5623_s16 }
0x1d89   : > { %s7143_s21 = sld [smem:[#allocation58_spill]] }
0x1d8a   : > { %s7144_s18 = sld [smem:[#allocation60_spill]] }
0x1d8e   : > { %p81_p1 = scmp.ge.s32.totalorder %s7142_s22, 6  }
0x1d8f   : > { %s7146_s16 = smov %s7143_s21 }
0x1d90   :  { %83 = sbr.rel (!%p81_p1) target bundleno = 77 (0x4d), region = 299 }
0x1d95   :  { %4229 = vsyncpa [#allocation3], 1 }
0x1d96   :  { %4231 = vsyncpa [#allocation3 + $0x1], 1 }
0x1d97   :  { %4232 = vsyncpa [#allocation6], 1 }
0x1d98   :  { %4234 = vsyncpa [#allocation6 + $0x1], 1 }
0x1d99   :  { %4235 = vsyncpa [#allocation9], 1 }
0x1d9a   :  { %4236 = vsyncpa [#allocation12], 1 }
0x1d9b   :  { %4237 = vsyncpa [#allocation15], 1 }
0x1d9c   :  { %4238 = vsyncpa [#allocation18], 1 }
0x1d9d   :  { %4239 = vsyncpa [#allocation4], 1 }
0x1d9e   :  { %4241 = vsyncpa [#allocation4 + $0x1], 1 }

</bundles_post_ra>
